<compile_context>
chip_gen: v6e
topology: v6e:2x2x1
jax: 0.10.0
libtpu: 0.0.40
codegen_flags: <defaults>
</compile_context>

<pallas_src>
import numpy as np

import jax
import jax.numpy as jnp
from jax.experimental import pallas as pl
from jax.experimental.pallas import tpu as pltpu


# -----------------------------------------------------------------------------
# Helpers
# -----------------------------------------------------------------------------
def _round_up(x, m):
    return ((x + m - 1) // m) * m


def _pick_chunk(s, max_t=16):
    """Largest divisor of s that is <= max_t (time steps per grid iteration)."""
    for t in range(min(max_t, s), 0, -1):
        if s % t == 0:
            return t
    return 1


def _pick_tile_v(v, max_tile=512):
    """Largest multiple of 128 that divides v and is <= max_tile."""
    t = min(max_tile, v)
    while v % t != 0:
        t -= 128
    return t


# -----------------------------------------------------------------------------
# Pallas kernels
# -----------------------------------------------------------------------------
def linear_kernel(x_ref, w_ref, b_ref, o_ref):
    """One (TILE_N, K) @ (K, TILE_V) + (1, TILE_V) tile of a linear layer.

    x/w are bf16, accumulation in f32 on the MXU.
    """
    o_ref[...] = (
        jnp.dot(x_ref[...], w_ref[...], preferred_element_type=jnp.float32)
        + b_ref[...]
    ).astype(o_ref.dtype)


def bilstm_kernel(gx_ref, whh_ref, out_ref, h_sc, c_sc):
    """Fused fwd+bwd LSTM recurrence for one layer.

    grid = (direction d in {0,1}, time-chunk c).  The index maps already deliver
    the correct time chunk (reversed chunk order for d=1) and the correct
    direction slice of the pre-computed input gates / recurrent weights / output.
    Inside the chunk we walk rows forward for d=0 and backward for d=1.

    gx_ref : (T, B, 4H) f32   x @ W_ih^T + b_ih + b_hh for this direction/chunk
    whh_ref: (H, 4H)    bf16  recurrent weights (this direction)
    out_ref: (T, B, H)  bf16  this direction's half of the (S, B, 2H) output
    h_sc/c_sc: (B, H) f32 VMEM scratch carrying recurrent state across chunks.
    """
    d = pl.program_id(0)

    @pl.when(pl.program_id(1) == 0)
    def _():
        h_sc[...] = jnp.zeros_like(h_sc)
        c_sc[...] = jnp.zeros_like(c_sc)

    T = gx_ref.shape[0]
    H = h_sc.shape[1]

    def step(i, carry):
        h, c = carry                               # f32 (B, H)
        row = i + d * (T - 1 - 2 * i)              # fwd: i,  bwd: T-1-i
        g = gx_ref[row] + jnp.dot(h.astype(jnp.bfloat16), whh_ref[...],
                                  preferred_element_type=jnp.float32)   # (B, 4H) f32
        ig = jax.nn.sigmoid(g[:, 0 * H:1 * H])
        fg = jax.nn.sigmoid(g[:, 1 * H:2 * H])
        gg = jnp.tanh(g[:, 2 * H:3 * H])
        og = jax.nn.sigmoid(g[:, 3 * H:4 * H])
        c_new = fg * c + ig * gg
        h_new = og * jnp.tanh(c_new)
        out_ref[row] = h_new.astype(out_ref.dtype)
        return (h_new, c_new)

    h_fin, c_fin = jax.lax.fori_loop(0, T, step, (h_sc[...], c_sc[...]),
                                     unroll=True)
    h_sc[...] = h_fin
    c_sc[...] = c_fin


# -----------------------------------------------------------------------------
# Wrappers
# -----------------------------------------------------------------------------
_VMEM_LIMIT = 48 * 1024 * 1024    # generation-safe (leaves headroom on v7x's 64 MiB)


def tiled_linear(x2d, w, b, *, out_dtype=jnp.float32, tile_n=256, tile_v=512):
    """x2d: (N, K), w: (K, V), b: (V,) -> (N, V).  V must be a multiple of 128."""
    N, K = x2d.shape
    K2, V = w.shape
    assert K == K2 and V % 128 == 0, (K, K2, V)

    tile_v = _pick_tile_v(V, tile_v)
    tile_n = min(tile_n, _round_up(N, 8))
    N_pad = _round_up(N, tile_n)
    if N_pad != N:
        x2d = jnp.pad(x2d, ((0, N_pad - N), (0, 0)))

    x_bf = x2d.astype(jnp.bfloat16)
    w_bf = w.astype(jnp.bfloat16)
    b2 = b.reshape(1, V).astype(jnp.float32)

    out = pl.pallas_call(
        linear_kernel,
        out_shape=jax.ShapeDtypeStruct((N_pad, V), out_dtype),
        grid_spec=pltpu.PrefetchScalarGridSpec(
            num_scalar_prefetch=0,
            grid=(N_pad // tile_n, V // tile_v),
            in_specs=[
                pl.BlockSpec((tile_n, K), lambda i, j: (i, 0)),
                pl.BlockSpec((K, tile_v), lambda i, j: (0, j)),
                pl.BlockSpec((1, tile_v), lambda i, j: (0, j)),
            ],
            out_specs=pl.BlockSpec((tile_n, tile_v), lambda i, j: (i, j)),
        ),
        compiler_params=pltpu.CompilerParams(
            dimension_semantics=("parallel", "parallel"),
            vmem_limit_bytes=_VMEM_LIMIT,
        ),
    )(x_bf, w_bf, b2)
    return out[:N] if N_pad != N else out


def bilstm_layer(gx, whh_cat, *, t_chunk):
    """One bidirectional LSTM layer given pre-computed input gates.

    gx      : (S, B, 8H) f32  — [fwd 4H | bwd 4H] input-projected gates (bias included)
    whh_cat : (H, 8H)         — [W_hh_fwd^T | W_hh_bwd^T]
    returns (S, B, 2H) bf16   — [h_fwd | h_bwd] per time step (PyTorch layout)
    """
    S, B, G8 = gx.shape
    H = G8 // 8
    assert G8 == 8 * H and H % 128 == 0, (G8, H)
    T = t_chunk
    assert S % T == 0
    C = S // T

    def io_map(d, c):
        # forward direction walks chunks 0..C-1, backward walks C-1..0
        ce = c + d * (C - 1 - 2 * c)
        return (ce, 0, d)

    return pl.pallas_call(
        bilstm_kernel,
        out_shape=jax.ShapeDtypeStruct((S, B, 2 * H), jnp.bfloat16),
        grid_spec=pltpu.PrefetchScalarGridSpec(
            num_scalar_prefetch=0,
            grid=(2, C),                                   # (direction, time-chunk)
            in_specs=[
                pl.BlockSpec((T, B, 4 * H), io_map),       # gates_x for this dir/chunk
                pl.BlockSpec((H, 4 * H), lambda d, c: (0, d)),   # W_hh for this dir
            ],
            out_specs=pl.BlockSpec((T, B, H), io_map),     # this dir's half of (S,B,2H)
            scratch_shapes=[
                pltpu.VMEM((B, H), jnp.float32),           # h carry
                pltpu.VMEM((B, H), jnp.float32),           # c carry
            ],
        ),
        compiler_params=pltpu.CompilerParams(
            # direction axis is fully independent -> parallel (2 TCs on v7x);
            # time axis carries the recurrence through scratch -> MUST stay arbitrary.
            dimension_semantics=("parallel", "arbitrary"),
            vmem_limit_bytes=_VMEM_LIMIT,
        ),
    )(gx, whh_cat.astype(jnp.bfloat16))


def lstm_model_forward(last_hidden_state, lstm_params, fc_w, fc_b):
    """last_hidden_state: (B, S, D) batch-first.  Returns logits (B, S, V)."""
    B, S, D = last_hidden_state.shape
    # time-major once, keep it that way until the very end
    x = jnp.transpose(last_hidden_state, (1, 0, 2)).reshape(S * B, D)

    t_chunk = _pick_chunk(S)
    for layer in lstm_params:
        wih_f, whh_f, bih_f, bhh_f = layer["fwd"]
        wih_b, whh_b, bih_b, bhh_b = layer["bwd"]
        H = whh_f.shape[1]

        # hoisted input projection for BOTH directions: (S*B, D_in) @ (D_in, 8H)
        w_ih_cat = jnp.concatenate([wih_f.T, wih_b.T], axis=1)      # (D_in, 8H)
        b_cat = jnp.concatenate([bih_f + bhh_f, bih_b + bhh_b])     # (8H,)
        w_hh_cat = jnp.concatenate([whh_f.T, whh_b.T], axis=1)      # (H, 8H)

        gx = tiled_linear(x, w_ih_cat, b_cat, out_dtype=jnp.float32)    # (S*B, 8H)
        h = bilstm_layer(gx.reshape(S, B, 8 * H), w_hh_cat, t_chunk=t_chunk)  # (S,B,2H) bf16
        x = h.reshape(S * B, 2 * H)

    # final fc with vocab padded to a lane-dense multiple of 128
    V = fc_w.shape[0]
    K = fc_w.shape[1]
    V_pad = _round_up(V, 128)
    w_fc = jnp.zeros((K, V_pad), jnp.float32).at[:, :V].set(fc_w.T)
    b_fc = jnp.zeros((V_pad,), jnp.float32).at[:V].set(fc_b)
    logits = tiled_linear(x, w_fc, b_fc, out_dtype=jnp.float32)     # (S*B, V_pad)
    logits = logits.reshape(S, B, V_pad)[:, :, :V]
    return jnp.transpose(logits, (1, 0, 2))                         # (B, S, V)


# -----------------------------------------------------------------------------
# Pure-JAX reference (for correctness check)
# -----------------------------------------------------------------------------
def _ref_lstm_dir(x_tm, w_ih, w_hh, b_ih, b_hh, reverse):
    H = w_hh.shape[1]
    B = x_tm.shape[1]

    def step(carry, x):
        hp, cp = carry
        g = x @ w_ih.T + b_ih + hp @ w_hh.T + b_hh
        i, f, gg, o = jnp.split(g, 4, axis=-1)
        i = jax.nn.sigmoid(i); f = jax.nn.sigmoid(f)
        gg = jnp.tanh(gg); o = jax.nn.sigmoid(o)
        c = f * cp + i * gg
        hh = o * jnp.tanh(c)
        return (hh, c), hh

    xs = x_tm[::-1] if reverse else x_tm
    init = (jnp.zeros((B, H), jnp.float32), jnp.zeros((B, H), jnp.float32))
    _, hs = jax.lax.scan(step, init, xs)
    return hs[::-1] if reverse else hs


def _ref_forward(x, lstm_params, fc_w, fc_b):
    h = jnp.transpose(x, (1, 0, 2))
    for layer in lstm_params:
        fwd = _ref_lstm_dir(h, *layer["fwd"], reverse=False)
        bwd = _ref_lstm_dir(h, *layer["bwd"], reverse=True)
        h = jnp.concatenate([fwd, bwd], axis=-1)
    h = jnp.transpose(h, (1, 0, 2))
    return h @ fc_w.T + fc_b


# -----------------------------------------------------------------------------
# Deterministic parameter init (PyTorch nn.LSTM / nn.Linear shapes)
# -----------------------------------------------------------------------------
def init_params(key, d_model, hidden, num_layers, vocab):
    k = 1.0 / np.sqrt(hidden)
    params = []
    for l in range(num_layers):
        d_in = d_model if l == 0 else 2 * hidden
        layer = {}
        for d in ("fwd", "bwd"):
            key, k1, k2, k3, k4 = jax.random.split(key, 5)
            layer[d] = (
                jax.random.uniform(k1, (4 * hidden, d_in), jnp.float32, -k, k),   # W_ih
                jax.random.uniform(k2, (4 * hidden, hidden), jnp.float32, -k, k), # W_hh
                jax.random.uniform(k3, (4 * hidden,), jnp.float32, -k, k),        # b_ih
                jax.random.uniform(k4, (4 * hidden,), jnp.float32, -k, k),        # b_hh
            )
        params.append(layer)
    key, k1, k2 = jax.random.split(key, 3)
    kf = 1.0 / np.sqrt(2 * hidden)
    fc_w = jax.random.uniform(k1, (vocab, 2 * hidden), jnp.float32, -kf, kf)
    fc_b = jax.random.uniform(k2, (vocab,), jnp.float32, -kf, kf)
    return params, fc_w, fc_b


if __name__ == "__main__":
    # Small shapes (original: D=768 BERT hidden, H=768, vocab ~30, layers=3, bidirectional)
    B, S, D = 2, 8, 128          # batch, sequence, BERT hidden size
    HIDDEN, LAYERS, VOCAB = 128, 3, 30

    key = jax.random.PRNGKey(0)
    key, xk = jax.random.split(key)
    # stand-in for protein_bert(...).last_hidden_state
    last_hidden_state = jax.random.normal(xk, (B, S, D), jnp.float32)

    lstm_params, fc_w, fc_b = init_params(key, D, HIDDEN, LAYERS, VOCAB)

    fwd_fn = jax.jit(lstm_model_forward)
    out = jax.block_until_ready(fwd_fn(last_hidden_state, lstm_params, fc_w, fc_b))

    ref = jax.block_until_ready(_ref_forward(last_hidden_state, lstm_params, fc_w, fc_b))
    assert out.shape == (B, S, VOCAB), out.shape
    # kernels use bf16 on the MXU (f32 accumulation / state), so allow bf16-level tolerance
    max_diff = float(np.max(np.abs(np.asarray(out) - np.asarray(ref))))
    assert np.allclose(np.asarray(out), np.asarray(ref), atol=5e-2, rtol=5e-2), max_diff

    print("KERNEL_OK")
</pallas_src>

<mosaic_0001>
module attributes {stable_mosaic.version = 11 : i64} {
  func.func @linear_kernel(%arg0: i32, %arg1: i32, %arg2: memref<16x128xbf16, #tpu.memory_space<vmem>>, %arg3: memref<128x512xbf16, #tpu.memory_space<vmem>>, %arg4: memref<1x512xf32, #tpu.memory_space<vmem>>, %arg5: memref<16x512xf32, #tpu.memory_space<vmem>>) attributes {dimension_semantics = [#tpu.dimension_semantics<parallel>, #tpu.dimension_semantics<parallel>], iteration_bounds = array<i64: 1, 2>, scalar_prefetch = 0 : i64, scratch_operands = 0 : i64, tpu.core_type = #tpu.core_type<tc>, window_params = [{transform_indices = @transform_0, window_bounds = array<i64: 16, 128>}, {transform_indices = @transform_1, window_bounds = array<i64: 128, 512>}, {transform_indices = @transform_2, window_bounds = array<i64: 1, 512>}, {transform_indices = @transform_3, window_bounds = array<i64: 16, 512>}]} {
    %c0 = arith.constant 0 : index
    %c0_0 = arith.constant 0 : index
    %0 = vector.load %arg2[%c0, %c0_0] : memref<16x128xbf16, #tpu.memory_space<vmem>>, vector<16x128xbf16>
    %c0_1 = arith.constant 0 : index
    %c0_2 = arith.constant 0 : index
    %1 = vector.load %arg3[%c0_1, %c0_2] : memref<128x512xbf16, #tpu.memory_space<vmem>>, vector<128x512xbf16>
    %cst = arith.constant dense<0.000000e+00> : vector<16x512xf32>
    %2 = tpu.matmul %0, %1, %cst {dimension_numbers = #tpu.dot_dimension_numbers<[1], [0], [0], [1], [0, 0, 1, 1], [], []>} : vector<16x128xbf16>, vector<128x512xbf16>, vector<16x512xf32> -> vector<16x512xf32>
    %c0_3 = arith.constant 0 : index
    %c0_4 = arith.constant 0 : index
    %3 = vector.load %arg4[%c0_3, %c0_4] : memref<1x512xf32, #tpu.memory_space<vmem>>, vector<1x512xf32>
    %4 = vector.broadcast %3 : vector<1x512xf32> to vector<16x512xf32>
    %5 = arith.addf %2, %4 : vector<16x512xf32>
    %c0_5 = arith.constant 0 : index
    %c0_6 = arith.constant 0 : index
    %6 = vector.load %arg5[%c0_5, %c0_6] : memref<16x512xf32, #tpu.memory_space<vmem>>, vector<16x512xf32>
    tpu.vector_store %arg5[%c0_5, %c0_6], %5 {strides = array<i32>} : memref<16x512xf32, #tpu.memory_space<vmem>>, vector<16x512xf32>,
    return
  }
  func.func @transform_0(%arg0: i32, %arg1: i32) -> (i32, i32) {
    %c0_i32 = arith.constant 0 : i32
    %c0_i32_0 = arith.constant 0 : i32
    return %arg0, %c0_i32 : i32, i32
  }
  func.func @transform_1(%arg0: i32, %arg1: i32) -> (i32, i32) {
    %c0_i32 = arith.constant 0 : i32
    %c0_i32_0 = arith.constant 0 : i32
    return %c0_i32, %arg1 : i32, i32
  }
  func.func @transform_2(%arg0: i32, %arg1: i32) -> (i32, i32) {
    %c0_i32 = arith.constant 0 : i32
    %c0_i32_0 = arith.constant 0 : i32
    return %c0_i32, %arg1 : i32, i32
  }
  func.func @transform_3(%arg0: i32, %arg1: i32) -> (i32, i32) {
    %c0_i32 = arith.constant 0 : i32
    return %arg0, %arg1 : i32, i32
  }
}

module attributes {stable_mosaic.version = 11 : i64} {
  func.func @bilstm_kernel(%arg0: i32, %arg1: i32, %arg2: memref<8x2x512xf32, #tpu.memory_space<vmem>>, %arg3: memref<128x512xbf16, #tpu.memory_space<vmem>>, %arg4: memref<8x2x128xbf16, #tpu.memory_space<vmem>>, %arg5: memref<2x128xf32, #tpu.memory_space<vmem>>, %arg6: memref<2x128xf32, #tpu.memory_space<vmem>>) attributes {dimension_semantics = [#tpu.dimension_semantics<parallel>, #tpu.dimension_semantics<arbitrary>], iteration_bounds = array<i64: 2, 1>, scalar_prefetch = 0 : i64, scratch_operands = 2 : i64, tpu.core_type = #tpu.core_type<tc>, window_params = [{transform_indices = @transform_0, window_bounds = array<i64: 8, 2, 512>}, {transform_indices = @transform_1, window_bounds = array<i64: 128, 512>}, {transform_indices = @transform_2, window_bounds = array<i64: 8, 2, 128>}]} {
    %c0_i32 = arith.constant 0 : i32
    %0 = arith.cmpi eq, %arg1, %c0_i32 : i32
    %1 = arith.extui %0 : i1 to i32
    %c0_i32_0 = arith.constant 0 : i32
    %2 = arith.cmpi ne, %1, %c0_i32_0 : i32
    scf.if %2 {
      %cst_104 = arith.constant 0.000000e+00 : f32
      %335 = vector.broadcast %cst_104 : f32 to vector<2x128xf32>
      %c0_105 = arith.constant 0 : index
      %c0_106 = arith.constant 0 : index
      %336 = vector.load %arg5[%c0_105, %c0_106] : memref<2x128xf32, #tpu.memory_space<vmem>>, vector<2x128xf32>
      tpu.vector_store %arg5[%c0_105, %c0_106], %335 {strides = array<i32>} : memref<2x128xf32, #tpu.memory_space<vmem>>, vector<2x128xf32>,
      %cst_107 = arith.constant 0.000000e+00 : f32
      %337 = vector.broadcast %cst_107 : f32 to vector<2x128xf32>
      %c0_108 = arith.constant 0 : index
      %c0_109 = arith.constant 0 : index
      %338 = vector.load %arg6[%c0_108, %c0_109] : memref<2x128xf32, #tpu.memory_space<vmem>>, vector<2x128xf32>
      tpu.vector_store %arg6[%c0_108, %c0_109], %337 {strides = array<i32>} : memref<2x128xf32, #tpu.memory_space<vmem>>, vector<2x128xf32>,
    } else {
    }
    %c0 = arith.constant 0 : index
    %c0_1 = arith.constant 0 : index
    %3 = vector.load %arg5[%c0, %c0_1] : memref<2x128xf32, #tpu.memory_space<vmem>>, vector<2x128xf32>
    %c0_2 = arith.constant 0 : index
    %c0_3 = arith.constant 0 : index
    %4 = vector.load %arg6[%c0_2, %c0_3] : memref<2x128xf32, #tpu.memory_space<vmem>>, vector<2x128xf32>
    %c0_i32_4 = arith.constant 0 : i32
    %c2_i32 = arith.constant 2 : i32
    %5 = arith.muli %c2_i32, %c0_i32_4 : i32
    %c7_i32 = arith.constant 7 : i32
    %6 = arith.subi %c7_i32, %5 : i32
    %7 = arith.muli %arg0, %6 : i32
    %8 = arith.addi %c0_i32_4, %7 : i32
    %9 = arith.index_cast %8 : i32 to index
    %c0_5 = arith.constant 0 : index
    %c0_6 = arith.constant 0 : index
    %10 = vector.load %arg2[%9, %c0_5, %c0_6] : memref<8x2x512xf32, #tpu.memory_space<vmem>>, vector<1x2x512xf32>
    %11 = vector.shape_cast %10 : vector<1x2x512xf32> to vector<2x512xf32>
    %12 = arith.truncf %3 : vector<2x128xf32> to vector<2x128xbf16>
    %c0_7 = arith.constant 0 : index
    %c0_8 = arith.constant 0 : index
    %13 = vector.load %arg3[%c0_7, %c0_8] : memref<128x512xbf16, #tpu.memory_space<vmem>>, vector<128x512xbf16>
    %cst = arith.constant dense<0.000000e+00> : vector<2x512xf32>
    %14 = tpu.matmul %12, %13, %cst {dimension_numbers = #tpu.dot_dimension_numbers<[1], [0], [0], [1], [0, 0, 1, 1], [], []>} : vector<2x128xbf16>, vector<128x512xbf16>, vector<2x512xf32> -> vector<2x512xf32>
    %15 = arith.addf %11, %14 : vector<2x512xf32>
    %16 = vector.extract_strided_slice %15 {offsets = [0, 0], sizes = [2, 128], strides = [1, 1]} : vector<2x512xf32> to vector<2x128xf32>
    %17 = arith.negf %16 : vector<2x128xf32>
    %18 = math.exp %17 : vector<2x128xf32>
    %cst_9 = arith.constant 1.000000e+00 : f32
    %19 = vector.broadcast %cst_9 : f32 to vector<2x128xf32>
    %20 = arith.addf %19, %18 : vector<2x128xf32>
    %21 = arith.divf %19, %20 : vector<2x128xf32>
    %22 = vector.extract_strided_slice %15 {offsets = [0, 128], sizes = [2, 128], strides = [1, 1]} : vector<2x512xf32> to vector<2x128xf32>
    %23 = arith.negf %22 : vector<2x128xf32>
    %24 = math.exp %23 : vector<2x128xf32>
    %cst_10 = arith.constant 1.000000e+00 : f32
    %25 = vector.broadcast %cst_10 : f32 to vector<2x128xf32>
    %26 = arith.addf %25, %24 : vector<2x128xf32>
    %27 = arith.divf %25, %26 : vector<2x128xf32>
    %28 = vector.extract_strided_slice %15 {offsets = [0, 256], sizes = [2, 128], strides = [1, 1]} : vector<2x512xf32> to vector<2x128xf32>
    %29 = math.tanh %28 : vector<2x128xf32>
    %30 = vector.extract_strided_slice %15 {offsets = [0, 384], sizes = [2, 128], strides = [1, 1]} : vector<2x512xf32> to vector<2x128xf32>
    %31 = arith.negf %30 : vector<2x128xf32>
    %32 = math.exp %31 : vector<2x128xf32>
    %cst_11 = arith.constant 1.000000e+00 : f32
    %33 = vector.broadcast %cst_11 : f32 to vector<2x128xf32>
    %34 = arith.addf %33, %32 : vector<2x128xf32>
    %35 = arith.divf %33, %34 : vector<2x128xf32>
    %36 = arith.mulf %27, %4 : vector<2x128xf32>
    %37 = arith.mulf %21, %29 : vector<2x128xf32>
    %38 = arith.addf %36, %37 : vector<2x128xf32>
    %39 = math.tanh %38 : vector<2x128xf32>
    %40 = arith.mulf %35, %39 : vector<2x128xf32>
    %41 = arith.truncf %40 : vector<2x128xf32> to vector<2x128xbf16>
    %42 = arith.index_cast %8 : i32 to index
    %c0_12 = arith.constant 0 : index
    %c0_13 = arith.constant 0 : index
    %43 = vector.load %arg4[%42, %c0_12, %c0_13] : memref<8x2x128xbf16, #tpu.memory_space<vmem>>, vector<1x2x128xbf16>
    %44 = vector.shape_cast %43 : vector<1x2x128xbf16> to vector<2x128xbf16>
    %45 = vector.shape_cast %41 : vector<2x128xbf16> to vector<1x2x128xbf16>
    tpu.vector_store %arg4[%42, %c0_12, %c0_13], %45 {strides = array<i32>} : memref<8x2x128xbf16, #tpu.memory_space<vmem>>, vector<1x2x128xbf16>,
    %c1_i32 = arith.constant 1 : i32
    %c2_i32_14 = arith.constant 2 : i32
    %46 = arith.muli %c2_i32_14, %c1_i32 : i32
    %c7_i32_15 = arith.constant 7 : i32
    %47 = arith.subi %c7_i32_15, %46 : i32
    %48 = arith.muli %arg0, %47 : i32
    %49 = arith.addi %c1_i32, %48 : i32
    %50 = arith.index_cast %49 : i32 to index
    %c0_16 = arith.constant 0 : index
    %c0_17 = arith.constant 0 : index
    %51 = vector.load %arg2[%50, %c0_16, %c0_17] : memref<8x2x512xf32, #tpu.memory_space<vmem>>, vector<1x2x512xf32>
    %52 = vector.shape_cast %51 : vector<1x2x512xf32> to vector<2x512xf32>
    %53 = arith.truncf %40 : vector<2x128xf32> to vector<2x128xbf16>
    %c0_18 = arith.constant 0 : index
    %c0_19 = arith.constant 0 : index
    %54 = vector.load %arg3[%c0_18, %c0_19] : memref<128x512xbf16, #tpu.memory_space<vmem>>, vector<128x512xbf16>
    %cst_20 = arith.constant dense<0.000000e+00> : vector<2x512xf32>
    %55 = tpu.matmul %53, %54, %cst_20 {dimension_numbers = #tpu.dot_dimension_numbers<[1], [0], [0], [1], [0, 0, 1, 1], [], []>} : vector<2x128xbf16>, vector<128x512xbf16>, vector<2x512xf32> -> vector<2x512xf32>
    %56 = arith.addf %52, %55 : vector<2x512xf32>
    %57 = vector.extract_strided_slice %56 {offsets = [0, 0], sizes = [2, 128], strides = [1, 1]} : vector<2x512xf32> to vector<2x128xf32>
    %58 = arith.negf %57 : vector<2x128xf32>
    %59 = math.exp %58 : vector<2x128xf32>
    %cst_21 = arith.constant 1.000000e+00 : f32
    %60 = vector.broadcast %cst_21 : f32 to vector<2x128xf32>
    %61 = arith.addf %60, %59 : vector<2x128xf32>
    %62 = arith.divf %60, %61 : vector<2x128xf32>
    %63 = vector.extract_strided_slice %56 {offsets = [0, 128], sizes = [2, 128], strides = [1, 1]} : vector<2x512xf32> to vector<2x128xf32>
    %64 = arith.negf %63 : vector<2x128xf32>
    %65 = math.exp %64 : vector<2x128xf32>
    %cst_22 = arith.constant 1.000000e+00 : f32
    %66 = vector.broadcast %cst_22 : f32 to vector<2x128xf32>
    %67 = arith.addf %66, %65 : vector<2x128xf32>
    %68 = arith.divf %66, %67 : vector<2x128xf32>
    %69 = vector.extract_strided_slice %56 {offsets = [0, 256], sizes = [2, 128], strides = [1, 1]} : vector<2x512xf32> to vector<2x128xf32>
    %70 = math.tanh %69 : vector<2x128xf32>
    %71 = vector.extract_strided_slice %56 {offsets = [0, 384], sizes = [2, 128], strides = [1, 1]} : vector<2x512xf32> to vector<2x128xf32>
    %72 = arith.negf %71 : vector<2x128xf32>
    %73 = math.exp %72 : vector<2x128xf32>
    %cst_23 = arith.constant 1.000000e+00 : f32
    %74 = vector.broadcast %cst_23 : f32 to vector<2x128xf32>
    %75 = arith.addf %74, %73 : vector<2x128xf32>
    %76 = arith.divf %74, %75 : vector<2x128xf32>
    %77 = arith.mulf %68, %38 : vector<2x128xf32>
    %78 = arith.mulf %62, %70 : vector<2x128xf32>
    %79 = arith.addf %77, %78 : vector<2x128xf32>
    %80 = math.tanh %79 : vector<2x128xf32>
    %81 = arith.mulf %76, %80 : vector<2x128xf32>
    %82 = arith.truncf %81 : vector<2x128xf32> to vector<2x128xbf16>
    %83 = arith.index_cast %49 : i32 to index
    %c0_24 = arith.constant 0 : index
    %c0_25 = arith.constant 0 : index
    %84 = vector.load %arg4[%83, %c0_24, %c0_25] : memref<8x2x128xbf16, #tpu.memory_space<vmem>>, vector<1x2x128xbf16>
    %85 = vector.shape_cast %84 : vector<1x2x128xbf16> to vector<2x128xbf16>
    %86 = vector.shape_cast %82 : vector<2x128xbf16> to vector<1x2x128xbf16>
    tpu.vector_store %arg4[%83, %c0_24, %c0_25], %86 {strides = array<i32>} : memref<8x2x128xbf16, #tpu.memory_space<vmem>>, vector<1x2x128xbf16>,
    %c2_i32_26 = arith.constant 2 : i32
    %c2_i32_27 = arith.constant 2 : i32
    %87 = arith.muli %c2_i32_27, %c2_i32_26 : i32
    %c7_i32_28 = arith.constant 7 : i32
    %88 = arith.subi %c7_i32_28, %87 : i32
    %89 = arith.muli %arg0, %88 : i32
    %90 = arith.addi %c2_i32_26, %89 : i32
    %91 = arith.index_cast %90 : i32 to index
    %c0_29 = arith.constant 0 : index
    %c0_30 = arith.constant 0 : index
    %92 = vector.load %arg2[%91, %c0_29, %c0_30] : memref<8x2x512xf32, #tpu.memory_space<vmem>>, vector<1x2x512xf32>
    %93 = vector.shape_cast %92 : vector<1x2x512xf32> to vector<2x512xf32>
    %94 = arith.truncf %81 : vector<2x128xf32> to vector<2x128xbf16>
    %c0_31 = arith.constant 0 : index
    %c0_32 = arith.constant 0 : index
    %95 = vector.load %arg3[%c0_31, %c0_32] : memref<128x512xbf16, #tpu.memory_space<vmem>>, vector<128x512xbf16>
    %cst_33 = arith.constant dense<0.000000e+00> : vector<2x512xf32>
    %96 = tpu.matmul %94, %95, %cst_33 {dimension_numbers = #tpu.dot_dimension_numbers<[1], [0], [0], [1], [0, 0, 1, 1], [], []>} : vector<2x128xbf16>, vector<128x512xbf16>, vector<2x512xf32> -> vector<2x512xf32>
    %97 = arith.addf %93, %96 : vector<2x512xf32>
    %98 = vector.extract_strided_slice %97 {offsets = [0, 0], sizes = [2, 128], strides = [1, 1]} : vector<2x512xf32> to vector<2x128xf32>
    %99 = arith.negf %98 : vector<2x128xf32>
    %100 = math.exp %99 : vector<2x128xf32>
    %cst_34 = arith.constant 1.000000e+00 : f32
    %101 = vector.broadcast %cst_34 : f32 to vector<2x128xf32>
    %102 = arith.addf %101, %100 : vector<2x128xf32>
    %103 = arith.divf %101, %102 : vector<2x128xf32>
    %104 = vector.extract_strided_slice %97 {offsets = [0, 128], sizes = [2, 128], strides = [1, 1]} : vector<2x512xf32> to vector<2x128xf32>
    %105 = arith.negf %104 : vector<2x128xf32>
    %106 = math.exp %105 : vector<2x128xf32>
    %cst_35 = arith.constant 1.000000e+00 : f32
    %107 = vector.broadcast %cst_35 : f32 to vector<2x128xf32>
    %108 = arith.addf %107, %106 : vector<2x128xf32>
    %109 = arith.divf %107, %108 : vector<2x128xf32>
    %110 = vector.extract_strided_slice %97 {offsets = [0, 256], sizes = [2, 128], strides = [1, 1]} : vector<2x512xf32> to vector<2x128xf32>
    %111 = math.tanh %110 : vector<2x128xf32>
    %112 = vector.extract_strided_slice %97 {offsets = [0, 384], sizes = [2, 128], strides = [1, 1]} : vector<2x512xf32> to vector<2x128xf32>
    %113 = arith.negf %112 : vector<2x128xf32>
    %114 = math.exp %113 : vector<2x128xf32>
    %cst_36 = arith.constant 1.000000e+00 : f32
    %115 = vector.broadcast %cst_36 : f32 to vector<2x128xf32>
    %116 = arith.addf %115, %114 : vector<2x128xf32>
    %117 = arith.divf %115, %116 : vector<2x128xf32>
    %118 = arith.mulf %109, %79 : vector<2x128xf32>
    %119 = arith.mulf %103, %111 : vector<2x128xf32>
    %120 = arith.addf %118, %119 : vector<2x128xf32>
    %121 = math.tanh %120 : vector<2x128xf32>
    %122 = arith.mulf %117, %121 : vector<2x128xf32>
    %123 = arith.truncf %122 : vector<2x128xf32> to vector<2x128xbf16>
    %124 = arith.index_cast %90 : i32 to index
    %c0_37 = arith.constant 0 : index
    %c0_38 = arith.constant 0 : index
    %125 = vector.load %arg4[%124, %c0_37, %c0_38] : memref<8x2x128xbf16, #tpu.memory_space<vmem>>, vector<1x2x128xbf16>
    %126 = vector.shape_cast %125 : vector<1x2x128xbf16> to vector<2x128xbf16>
    %127 = vector.shape_cast %123 : vector<2x128xbf16> to vector<1x2x128xbf16>
    tpu.vector_store %arg4[%124, %c0_37, %c0_38], %127 {strides = array<i32>} : memref<8x2x128xbf16, #tpu.memory_space<vmem>>, vector<1x2x128xbf16>,
    %c3_i32 = arith.constant 3 : i32
    %c2_i32_39 = arith.constant 2 : i32
    %128 = arith.muli %c2_i32_39, %c3_i32 : i32
    %c7_i32_40 = arith.constant 7 : i32
    %129 = arith.subi %c7_i32_40, %128 : i32
    %130 = arith.muli %arg0, %129 : i32
    %131 = arith.addi %c3_i32, %130 : i32
    %132 = arith.index_cast %131 : i32 to index
    %c0_41 = arith.constant 0 : index
    %c0_42 = arith.constant 0 : index
    %133 = vector.load %arg2[%132, %c0_41, %c0_42] : memref<8x2x512xf32, #tpu.memory_space<vmem>>, vector<1x2x512xf32>
    %134 = vector.shape_cast %133 : vector<1x2x512xf32> to vector<2x512xf32>
    %135 = arith.truncf %122 : vector<2x128xf32> to vector<2x128xbf16>
    %c0_43 = arith.constant 0 : index
    %c0_44 = arith.constant 0 : index
    %136 = vector.load %arg3[%c0_43, %c0_44] : memref<128x512xbf16, #tpu.memory_space<vmem>>, vector<128x512xbf16>
    %cst_45 = arith.constant dense<0.000000e+00> : vector<2x512xf32>
    %137 = tpu.matmul %135, %136, %cst_45 {dimension_numbers = #tpu.dot_dimension_numbers<[1], [0], [0], [1], [0, 0, 1, 1], [], []>} : vector<2x128xbf16>, vector<128x512xbf16>, vector<2x512xf32> -> vector<2x512xf32>
    %138 = arith.addf %134, %137 : vector<2x512xf32>
    %139 = vector.extract_strided_slice %138 {offsets = [0, 0], sizes = [2, 128], strides = [1, 1]} : vector<2x512xf32> to vector<2x128xf32>
    %140 = arith.negf %139 : vector<2x128xf32>
    %141 = math.exp %140 : vector<2x128xf32>
    %cst_46 = arith.constant 1.000000e+00 : f32
    %142 = vector.broadcast %cst_46 : f32 to vector<2x128xf32>
    %143 = arith.addf %142, %141 : vector<2x128xf32>
    %144 = arith.divf %142, %143 : vector<2x128xf32>
    %145 = vector.extract_strided_slice %138 {offsets = [0, 128], sizes = [2, 128], strides = [1, 1]} : vector<2x512xf32> to vector<2x128xf32>
    %146 = arith.negf %145 : vector<2x128xf32>
    %147 = math.exp %146 : vector<2x128xf32>
    %cst_47 = arith.constant 1.000000e+00 : f32
    %148 = vector.broadcast %cst_47 : f32 to vector<2x128xf32>
    %149 = arith.addf %148, %147 : vector<2x128xf32>
    %150 = arith.divf %148, %149 : vector<2x128xf32>
    %151 = vector.extract_strided_slice %138 {offsets = [0, 256], sizes = [2, 128], strides = [1, 1]} : vector<2x512xf32> to vector<2x128xf32>
    %152 = math.tanh %151 : vector<2x128xf32>
    %153 = vector.extract_strided_slice %138 {offsets = [0, 384], sizes = [2, 128], strides = [1, 1]} : vector<2x512xf32> to vector<2x128xf32>
    %154 = arith.negf %153 : vector<2x128xf32>
    %155 = math.exp %154 : vector<2x128xf32>
    %cst_48 = arith.constant 1.000000e+00 : f32
    %156 = vector.broadcast %cst_48 : f32 to vector<2x128xf32>
    %157 = arith.addf %156, %155 : vector<2x128xf32>
    %158 = arith.divf %156, %157 : vector<2x128xf32>
    %159 = arith.mulf %150, %120 : vector<2x128xf32>
    %160 = arith.mulf %144, %152 : vector<2x128xf32>
    %161 = arith.addf %159, %160 : vector<2x128xf32>
    %162 = math.tanh %161 : vector<2x128xf32>
    %163 = arith.mulf %158, %162 : vector<2x128xf32>
    %164 = arith.truncf %163 : vector<2x128xf32> to vector<2x128xbf16>
    %165 = arith.index_cast %131 : i32 to index
    %c0_49 = arith.constant 0 : index
    %c0_50 = arith.constant 0 : index
    %166 = vector.load %arg4[%165, %c0_49, %c0_50] : memref<8x2x128xbf16, #tpu.memory_space<vmem>>, vector<1x2x128xbf16>
    %167 = vector.shape_cast %166 : vector<1x2x128xbf16> to vector<2x128xbf16>
    %168 = vector.shape_cast %164 : vector<2x128xbf16> to vector<1x2x128xbf16>
    tpu.vector_store %arg4[%165, %c0_49, %c0_50], %168 {strides = array<i32>} : memref<8x2x128xbf16, #tpu.memory_space<vmem>>, vector<1x2x128xbf16>,
    %c4_i32 = arith.constant 4 : i32
    %c2_i32_51 = arith.constant 2 : i32
    %169 = arith.muli %c2_i32_51, %c4_i32 : i32
    %c7_i32_52 = arith.constant 7 : i32
    %170 = arith.subi %c7_i32_52, %169 : i32
    %171 = arith.muli %arg0, %170 : i32
    %172 = arith.addi %c4_i32, %171 : i32
    %173 = arith.index_cast %172 : i32 to index
    %c0_53 = arith.constant 0 : index
    %c0_54 = arith.constant 0 : index
    %174 = vector.load %arg2[%173, %c0_53, %c0_54] : memref<8x2x512xf32, #tpu.memory_space<vmem>>, vector<1x2x512xf32>
    %175 = vector.shape_cast %174 : vector<1x2x512xf32> to vector<2x512xf32>
    %176 = arith.truncf %163 : vector<2x128xf32> to vector<2x128xbf16>
    %c0_55 = arith.constant 0 : index
    %c0_56 = arith.constant 0 : index
    %177 = vector.load %arg3[%c0_55, %c0_56] : memref<128x512xbf16, #tpu.memory_space<vmem>>, vector<128x512xbf16>
    %cst_57 = arith.constant dense<0.000000e+00> : vector<2x512xf32>
    %178 = tpu.matmul %176, %177, %cst_57 {dimension_numbers = #tpu.dot_dimension_numbers<[1], [0], [0], [1], [0, 0, 1, 1], [], []>} : vector<2x128xbf16>, vector<128x512xbf16>, vector<2x512xf32> -> vector<2x512xf32>
    %179 = arith.addf %175, %178 : vector<2x512xf32>
    %180 = vector.extract_strided_slice %179 {offsets = [0, 0], sizes = [2, 128], strides = [1, 1]} : vector<2x512xf32> to vector<2x128xf32>
    %181 = arith.negf %180 : vector<2x128xf32>
    %182 = math.exp %181 : vector<2x128xf32>
    %cst_58 = arith.constant 1.000000e+00 : f32
    %183 = vector.broadcast %cst_58 : f32 to vector<2x128xf32>
    %184 = arith.addf %183, %182 : vector<2x128xf32>
    %185 = arith.divf %183, %184 : vector<2x128xf32>
    %186 = vector.extract_strided_slice %179 {offsets = [0, 128], sizes = [2, 128], strides = [1, 1]} : vector<2x512xf32> to vector<2x128xf32>
    %187 = arith.negf %186 : vector<2x128xf32>
    %188 = math.exp %187 : vector<2x128xf32>
    %cst_59 = arith.constant 1.000000e+00 : f32
    %189 = vector.broadcast %cst_59 : f32 to vector<2x128xf32>
    %190 = arith.addf %189, %188 : vector<2x128xf32>
    %191 = arith.divf %189, %190 : vector<2x128xf32>
    %192 = vector.extract_strided_slice %179 {offsets = [0, 256], sizes = [2, 128], strides = [1, 1]} : vector<2x512xf32> to vector<2x128xf32>
    %193 = math.tanh %192 : vector<2x128xf32>
    %194 = vector.extract_strided_slice %179 {offsets = [0, 384], sizes = [2, 128], strides = [1, 1]} : vector<2x512xf32> to vector<2x128xf32>
    %195 = arith.negf %194 : vector<2x128xf32>
    %196 = math.exp %195 : vector<2x128xf32>
    %cst_60 = arith.constant 1.000000e+00 : f32
    %197 = vector.broadcast %cst_60 : f32 to vector<2x128xf32>
    %198 = arith.addf %197, %196 : vector<2x128xf32>
    %199 = arith.divf %197, %198 : vector<2x128xf32>
    %200 = arith.mulf %191, %161 : vector<2x128xf32>
    %201 = arith.mulf %185, %193 : vector<2x128xf32>
    %202 = arith.addf %200, %201 : vector<2x128xf32>
    %203 = math.tanh %202 : vector<2x128xf32>
    %204 = arith.mulf %199, %203 : vector<2x128xf32>
    %205 = arith.truncf %204 : vector<2x128xf32> to vector<2x128xbf16>
    %206 = arith.index_cast %172 : i32 to index
    %c0_61 = arith.constant 0 : index
    %c0_62 = arith.constant 0 : index
    %207 = vector.load %arg4[%206, %c0_61, %c0_62] : memref<8x2x128xbf16, #tpu.memory_space<vmem>>, vector<1x2x128xbf16>
    %208 = vector.shape_cast %207 : vector<1x2x128xbf16> to vector<2x128xbf16>
    %209 = vector.shape_cast %205 : vector<2x128xbf16> to vector<1x2x128xbf16>
    tpu.vector_store %arg4[%206, %c0_61, %c0_62], %209 {strides = array<i32>} : memref<8x2x128xbf16, #tpu.memory_space<vmem>>, vector<1x2x128xbf16>,
    %c5_i32 = arith.constant 5 : i32
    %c2_i32_63 = arith.constant 2 : i32
    %210 = arith.muli %c2_i32_63, %c5_i32 : i32
    %c7_i32_64 = arith.constant 7 : i32
    %211 = arith.subi %c7_i32_64, %210 : i32
    %212 = arith.muli %arg0, %211 : i32
    %213 = arith.addi %c5_i32, %212 : i32
    %214 = arith.index_cast %213 : i32 to index
    %c0_65 = arith.constant 0 : index
    %c0_66 = arith.constant 0 : index
    %215 = vector.load %arg2[%214, %c0_65, %c0_66] : memref<8x2x512xf32, #tpu.memory_space<vmem>>, vector<1x2x512xf32>
    %216 = vector.shape_cast %215 : vector<1x2x512xf32> to vector<2x512xf32>
    %217 = arith.truncf %204 : vector<2x128xf32> to vector<2x128xbf16>
    %c0_67 = arith.constant 0 : index
    %c0_68 = arith.constant 0 : index
    %218 = vector.load %arg3[%c0_67, %c0_68] : memref<128x512xbf16, #tpu.memory_space<vmem>>, vector<128x512xbf16>
    %cst_69 = arith.constant dense<0.000000e+00> : vector<2x512xf32>
    %219 = tpu.matmul %217, %218, %cst_69 {dimension_numbers = #tpu.dot_dimension_numbers<[1], [0], [0], [1], [0, 0, 1, 1], [], []>} : vector<2x128xbf16>, vector<128x512xbf16>, vector<2x512xf32> -> vector<2x512xf32>
    %220 = arith.addf %216, %219 : vector<2x512xf32>
    %221 = vector.extract_strided_slice %220 {offsets = [0, 0], sizes = [2, 128], strides = [1, 1]} : vector<2x512xf32> to vector<2x128xf32>
    %222 = arith.negf %221 : vector<2x128xf32>
    %223 = math.exp %222 : vector<2x128xf32>
    %cst_70 = arith.constant 1.000000e+00 : f32
    %224 = vector.broadcast %cst_70 : f32 to vector<2x128xf32>
    %225 = arith.addf %224, %223 : vector<2x128xf32>
    %226 = arith.divf %224, %225 : vector<2x128xf32>
    %227 = vector.extract_strided_slice %220 {offsets = [0, 128], sizes = [2, 128], strides = [1, 1]} : vector<2x512xf32> to vector<2x128xf32>
    %228 = arith.negf %227 : vector<2x128xf32>
    %229 = math.exp %228 : vector<2x128xf32>
    %cst_71 = arith.constant 1.000000e+00 : f32
    %230 = vector.broadcast %cst_71 : f32 to vector<2x128xf32>
    %231 = arith.addf %230, %229 : vector<2x128xf32>
    %232 = arith.divf %230, %231 : vector<2x128xf32>
    %233 = vector.extract_strided_slice %220 {offsets = [0, 256], sizes = [2, 128], strides = [1, 1]} : vector<2x512xf32> to vector<2x128xf32>
    %234 = math.tanh %233 : vector<2x128xf32>
    %235 = vector.extract_strided_slice %220 {offsets = [0, 384], sizes = [2, 128], strides = [1, 1]} : vector<2x512xf32> to vector<2x128xf32>
    %236 = arith.negf %235 : vector<2x128xf32>
    %237 = math.exp %236 : vector<2x128xf32>
    %cst_72 = arith.constant 1.000000e+00 : f32
    %238 = vector.broadcast %cst_72 : f32 to vector<2x128xf32>
    %239 = arith.addf %238, %237 : vector<2x128xf32>
    %240 = arith.divf %238, %239 : vector<2x128xf32>
    %241 = arith.mulf %232, %202 : vector<2x128xf32>
    %242 = arith.mulf %226, %234 : vector<2x128xf32>
    %243 = arith.addf %241, %242 : vector<2x128xf32>
    %244 = math.tanh %243 : vector<2x128xf32>
    %245 = arith.mulf %240, %244 : vector<2x128xf32>
    %246 = arith.truncf %245 : vector<2x128xf32> to vector<2x128xbf16>
    %247 = arith.index_cast %213 : i32 to index
    %c0_73 = arith.constant 0 : index
    %c0_74 = arith.constant 0 : index
    %248 = vector.load %arg4[%247, %c0_73, %c0_74] : memref<8x2x128xbf16, #tpu.memory_space<vmem>>, vector<1x2x128xbf16>
    %249 = vector.shape_cast %248 : vector<1x2x128xbf16> to vector<2x128xbf16>
    %250 = vector.shape_cast %246 : vector<2x128xbf16> to vector<1x2x128xbf16>
    tpu.vector_store %arg4[%247, %c0_73, %c0_74], %250 {strides = array<i32>} : memref<8x2x128xbf16, #tpu.memory_space<vmem>>, vector<1x2x128xbf16>,
    %c6_i32 = arith.constant 6 : i32
    %c2_i32_75 = arith.constant 2 : i32
    %251 = arith.muli %c2_i32_75, %c6_i32 : i32
    %c7_i32_76 = arith.constant 7 : i32
    %252 = arith.subi %c7_i32_76, %251 : i32
    %253 = arith.muli %arg0, %252 : i32
    %254 = arith.addi %c6_i32, %253 : i32
    %255 = arith.index_cast %254 : i32 to index
    %c0_77 = arith.constant 0 : index
    %c0_78 = arith.constant 0 : index
    %256 = vector.load %arg2[%255, %c0_77, %c0_78] : memref<8x2x512xf32, #tpu.memory_space<vmem>>, vector<1x2x512xf32>
    %257 = vector.shape_cast %256 : vector<1x2x512xf32> to vector<2x512xf32>
    %258 = arith.truncf %245 : vector<2x128xf32> to vector<2x128xbf16>
    %c0_79 = arith.constant 0 : index
    %c0_80 = arith.constant 0 : index
    %259 = vector.load %arg3[%c0_79, %c0_80] : memref<128x512xbf16, #tpu.memory_space<vmem>>, vector<128x512xbf16>
    %cst_81 = arith.constant dense<0.000000e+00> : vector<2x512xf32>
    %260 = tpu.matmul %258, %259, %cst_81 {dimension_numbers = #tpu.dot_dimension_numbers<[1], [0], [0], [1], [0, 0, 1, 1], [], []>} : vector<2x128xbf16>, vector<128x512xbf16>, vector<2x512xf32> -> vector<2x512xf32>
    %261 = arith.addf %257, %260 : vector<2x512xf32>
    %262 = vector.extract_strided_slice %261 {offsets = [0, 0], sizes = [2, 128], strides = [1, 1]} : vector<2x512xf32> to vector<2x128xf32>
    %263 = arith.negf %262 : vector<2x128xf32>
    %264 = math.exp %263 : vector<2x128xf32>
    %cst_82 = arith.constant 1.000000e+00 : f32
    %265 = vector.broadcast %cst_82 : f32 to vector<2x128xf32>
    %266 = arith.addf %265, %264 : vector<2x128xf32>
    %267 = arith.divf %265, %266 : vector<2x128xf32>
    %268 = vector.extract_strided_slice %261 {offsets = [0, 128], sizes = [2, 128], strides = [1, 1]} : vector<2x512xf32> to vector<2x128xf32>
    %269 = arith.negf %268 : vector<2x128xf32>
    %270 = math.exp %269 : vector<2x128xf32>
    %cst_83 = arith.constant 1.000000e+00 : f32
    %271 = vector.broadcast %cst_83 : f32 to vector<2x128xf32>
    %272 = arith.addf %271, %270 : vector<2x128xf32>
    %273 = arith.divf %271, %272 : vector<2x128xf32>
    %274 = vector.extract_strided_slice %261 {offsets = [0, 256], sizes = [2, 128], strides = [1, 1]} : vector<2x512xf32> to vector<2x128xf32>
    %275 = math.tanh %274 : vector<2x128xf32>
    %276 = vector.extract_strided_slice %261 {offsets = [0, 384], sizes = [2, 128], strides = [1, 1]} : vector<2x512xf32> to vector<2x128xf32>
    %277 = arith.negf %276 : vector<2x128xf32>
    %278 = math.exp %277 : vector<2x128xf32>
    %cst_84 = arith.constant 1.000000e+00 : f32
    %279 = vector.broadcast %cst_84 : f32 to vector<2x128xf32>
    %280 = arith.addf %279, %278 : vector<2x128xf32>
    %281 = arith.divf %279, %280 : vector<2x128xf32>
    %282 = arith.mulf %273, %243 : vector<2x128xf32>
    %283 = arith.mulf %267, %275 : vector<2x128xf32>
    %284 = arith.addf %282, %283 : vector<2x128xf32>
    %285 = math.tanh %284 : vector<2x128xf32>
    %286 = arith.mulf %281, %285 : vector<2x128xf32>
    %287 = arith.truncf %286 : vector<2x128xf32> to vector<2x128xbf16>
    %288 = arith.index_cast %254 : i32 to index
    %c0_85 = arith.constant 0 : index
    %c0_86 = arith.constant 0 : index
    %289 = vector.load %arg4[%288, %c0_85, %c0_86] : memref<8x2x128xbf16, #tpu.memory_space<vmem>>, vector<1x2x128xbf16>
    %290 = vector.shape_cast %289 : vector<1x2x128xbf16> to vector<2x128xbf16>
    %291 = vector.shape_cast %287 : vector<2x128xbf16> to vector<1x2x128xbf16>
    tpu.vector_store %arg4[%288, %c0_85, %c0_86], %291 {strides = array<i32>} : memref<8x2x128xbf16, #tpu.memory_space<vmem>>, vector<1x2x128xbf16>,
    %c7_i32_87 = arith.constant 7 : i32
    %c2_i32_88 = arith.constant 2 : i32
    %292 = arith.muli %c2_i32_88, %c7_i32_87 : i32
    %c7_i32_89 = arith.constant 7 : i32
    %293 = arith.subi %c7_i32_89, %292 : i32
    %294 = arith.muli %arg0, %293 : i32
    %295 = arith.addi %c7_i32_87, %294 : i32
    %296 = arith.index_cast %295 : i32 to index
    %c0_90 = arith.constant 0 : index
    %c0_91 = arith.constant 0 : index
    %297 = vector.load %arg2[%296, %c0_90, %c0_91] : memref<8x2x512xf32, #tpu.memory_space<vmem>>, vector<1x2x512xf32>
    %298 = vector.shape_cast %297 : vector<1x2x512xf32> to vector<2x512xf32>
    %299 = arith.truncf %286 : vector<2x128xf32> to vector<2x128xbf16>
    %c0_92 = arith.constant 0 : index
    %c0_93 = arith.constant 0 : index
    %300 = vector.load %arg3[%c0_92, %c0_93] : memref<128x512xbf16, #tpu.memory_space<vmem>>, vector<128x512xbf16>
    %cst_94 = arith.constant dense<0.000000e+00> : vector<2x512xf32>
    %301 = tpu.matmul %299, %300, %cst_94 {dimension_numbers = #tpu.dot_dimension_numbers<[1], [0], [0], [1], [0, 0, 1, 1], [], []>} : vector<2x128xbf16>, vector<128x512xbf16>, vector<2x512xf32> -> vector<2x512xf32>
    %302 = arith.addf %298, %301 : vector<2x512xf32>
    %303 = vector.extract_strided_slice %302 {offsets = [0, 0], sizes = [2, 128], strides = [1, 1]} : vector<2x512xf32> to vector<2x128xf32>
    %304 = arith.negf %303 : vector<2x128xf32>
    %305 = math.exp %304 : vector<2x128xf32>
    %cst_95 = arith.constant 1.000000e+00 : f32
    %306 = vector.broadcast %cst_95 : f32 to vector<2x128xf32>
    %307 = arith.addf %306, %305 : vector<2x128xf32>
    %308 = arith.divf %306, %307 : vector<2x128xf32>
    %309 = vector.extract_strided_slice %302 {offsets = [0, 128], sizes = [2, 128], strides = [1, 1]} : vector<2x512xf32> to vector<2x128xf32>
    %310 = arith.negf %309 : vector<2x128xf32>
    %311 = math.exp %310 : vector<2x128xf32>
    %cst_96 = arith.constant 1.000000e+00 : f32
    %312 = vector.broadcast %cst_96 : f32 to vector<2x128xf32>
    %313 = arith.addf %312, %311 : vector<2x128xf32>
    %314 = arith.divf %312, %313 : vector<2x128xf32>
    %315 = vector.extract_strided_slice %302 {offsets = [0, 256], sizes = [2, 128], strides = [1, 1]} : vector<2x512xf32> to vector<2x128xf32>
    %316 = math.tanh %315 : vector<2x128xf32>
    %317 = vector.extract_strided_slice %302 {offsets = [0, 384], sizes = [2, 128], strides = [1, 1]} : vector<2x512xf32> to vector<2x128xf32>
    %318 = arith.negf %317 : vector<2x128xf32>
    %319 = math.exp %318 : vector<2x128xf32>
    %cst_97 = arith.constant 1.000000e+00 : f32
    %320 = vector.broadcast %cst_97 : f32 to vector<2x128xf32>
    %321 = arith.addf %320, %319 : vector<2x128xf32>
    %322 = arith.divf %320, %321 : vector<2x128xf32>
    %323 = arith.mulf %314, %284 : vector<2x128xf32>
    %324 = arith.mulf %308, %316 : vector<2x128xf32>
    %325 = arith.addf %323, %324 : vector<2x128xf32>
    %326 = math.tanh %325 : vector<2x128xf32>
    %327 = arith.mulf %322, %326 : vector<2x128xf32>
    %328 = arith.truncf %327 : vector<2x128xf32> to vector<2x128xbf16>
    %329 = arith.index_cast %295 : i32 to index
    %c0_98 = arith.constant 0 : index
    %c0_99 = arith.constant 0 : index
    %330 = vector.load %arg4[%329, %c0_98, %c0_99] : memref<8x2x128xbf16, #tpu.memory_space<vmem>>, vector<1x2x128xbf16>
    %331 = vector.shape_cast %330 : vector<1x2x128xbf16> to vector<2x128xbf16>
    %332 = vector.shape_cast %328 : vector<2x128xbf16> to vector<1x2x128xbf16>
    tpu.vector_store %arg4[%329, %c0_98, %c0_99], %332 {strides = array<i32>} : memref<8x2x128xbf16, #tpu.memory_space<vmem>>, vector<1x2x128xbf16>,
    %c8_i32 = arith.constant 8 : i32
    %c0_100 = arith.constant 0 : index
    %c0_101 = arith.constant 0 : index
    %333 = vector.load %arg5[%c0_100, %c0_101] : memref<2x128xf32, #tpu.memory_space<vmem>>, vector<2x128xf32>
    tpu.vector_store %arg5[%c0_100, %c0_101], %327 {strides = array<i32>} : memref<2x128xf32, #tpu.memory_space<vmem>>, vector<2x128xf32>,
    %c0_102 = arith.constant 0 : index
    %c0_103 = arith.constant 0 : index
    %334 = vector.load %arg6[%c0_102, %c0_103] : memref<2x128xf32, #tpu.memory_space<vmem>>, vector<2x128xf32>
    tpu.vector_store %arg6[%c0_102, %c0_103], %325 {strides = array<i32>} : memref<2x128xf32, #tpu.memory_space<vmem>>, vector<2x128xf32>,
    return
  }
  func.func @transform_0(%arg0: i32, %arg1: i32) -> (i32, i32, i32) {
    %c2_i32 = arith.constant 2 : i32
    %0 = arith.muli %c2_i32, %arg1 : i32
    %c0_i32 = arith.constant 0 : i32
    %1 = arith.subi %c0_i32, %0 : i32
    %2 = arith.muli %arg0, %1 : i32
    %3 = arith.addi %arg1, %2 : i32
    %c0_i32_0 = arith.constant 0 : i32
    %c0_i32_1 = arith.constant 0 : i32
    return %3, %c0_i32_0, %arg0 : i32, i32, i32
  }
  func.func @transform_1(%arg0: i32, %arg1: i32) -> (i32, i32) {
    %c0_i32 = arith.constant 0 : i32
    %c0_i32_0 = arith.constant 0 : i32
    return %c0_i32, %arg0 : i32, i32
  }
  func.func @transform_2(%arg0: i32, %arg1: i32) -> (i32, i32, i32) {
    %c2_i32 = arith.constant 2 : i32
    %0 = arith.muli %c2_i32, %arg1 : i32
    %c0_i32 = arith.constant 0 : i32
    %1 = arith.subi %c0_i32, %0 : i32
    %2 = arith.muli %arg0, %1 : i32
    %3 = arith.addi %arg1, %2 : i32
    %c0_i32_0 = arith.constant 0 : i32
    %c0_i32_1 = arith.constant 0 : i32
    return %3, %c0_i32_0, %arg0 : i32, i32, i32
  }
}

module attributes {stable_mosaic.version = 11 : i64} {
  func.func @linear_kernel(%arg0: i32, %arg1: i32, %arg2: memref<16x256xbf16, #tpu.memory_space<vmem>>, %arg3: memref<256x512xbf16, #tpu.memory_space<vmem>>, %arg4: memref<1x512xf32, #tpu.memory_space<vmem>>, %arg5: memref<16x512xf32, #tpu.memory_space<vmem>>) attributes {dimension_semantics = [#tpu.dimension_semantics<parallel>, #tpu.dimension_semantics<parallel>], iteration_bounds = array<i64: 1, 2>, scalar_prefetch = 0 : i64, scratch_operands = 0 : i64, tpu.core_type = #tpu.core_type<tc>, window_params = [{transform_indices = @transform_0, window_bounds = array<i64: 16, 256>}, {transform_indices = @transform_1, window_bounds = array<i64: 256, 512>}, {transform_indices = @transform_2, window_bounds = array<i64: 1, 512>}, {transform_indices = @transform_3, window_bounds = array<i64: 16, 512>}]} {
    %c0 = arith.constant 0 : index
    %c0_0 = arith.constant 0 : index
    %0 = vector.load %arg2[%c0, %c0_0] : memref<16x256xbf16, #tpu.memory_space<vmem>>, vector<16x256xbf16>
    %c0_1 = arith.constant 0 : index
    %c0_2 = arith.constant 0 : index
    %1 = vector.load %arg3[%c0_1, %c0_2] : memref<256x512xbf16, #tpu.memory_space<vmem>>, vector<256x512xbf16>
    %cst = arith.constant dense<0.000000e+00> : vector<16x512xf32>
    %2 = tpu.matmul %0, %1, %cst {dimension_numbers = #tpu.dot_dimension_numbers<[1], [0], [0], [1], [0, 0, 1, 1], [], []>} : vector<16x256xbf16>, vector<256x512xbf16>, vector<16x512xf32> -> vector<16x512xf32>
    %c0_3 = arith.constant 0 : index
    %c0_4 = arith.constant 0 : index
    %3 = vector.load %arg4[%c0_3, %c0_4] : memref<1x512xf32, #tpu.memory_space<vmem>>, vector<1x512xf32>
    %4 = vector.broadcast %3 : vector<1x512xf32> to vector<16x512xf32>
    %5 = arith.addf %2, %4 : vector<16x512xf32>
    %c0_5 = arith.constant 0 : index
    %c0_6 = arith.constant 0 : index
    %6 = vector.load %arg5[%c0_5, %c0_6] : memref<16x512xf32, #tpu.memory_space<vmem>>, vector<16x512xf32>
    tpu.vector_store %arg5[%c0_5, %c0_6], %5 {strides = array<i32>} : memref<16x512xf32, #tpu.memory_space<vmem>>, vector<16x512xf32>,
    return
  }
  func.func @transform_0(%arg0: i32, %arg1: i32) -> (i32, i32) {
    %c0_i32 = arith.constant 0 : i32
    %c0_i32_0 = arith.constant 0 : i32
    return %arg0, %c0_i32 : i32, i32
  }
  func.func @transform_1(%arg0: i32, %arg1: i32) -> (i32, i32) {
    %c0_i32 = arith.constant 0 : i32
    %c0_i32_0 = arith.constant 0 : i32
    return %c0_i32, %arg1 : i32, i32
  }
  func.func @transform_2(%arg0: i32, %arg1: i32) -> (i32, i32) {
    %c0_i32 = arith.constant 0 : i32
    %c0_i32_0 = arith.constant 0 : i32
    return %c0_i32, %arg1 : i32, i32
  }
  func.func @transform_3(%arg0: i32, %arg1: i32) -> (i32, i32) {
    %c0_i32 = arith.constant 0 : i32
    return %arg0, %arg1 : i32, i32
  }
}

module attributes {stable_mosaic.version = 11 : i64} {
  func.func @linear_kernel(%arg0: i32, %arg1: i32, %arg2: memref<16x256xbf16, #tpu.memory_space<vmem>>, %arg3: memref<256x128xbf16, #tpu.memory_space<vmem>>, %arg4: memref<1x128xf32, #tpu.memory_space<vmem>>, %arg5: memref<16x128xf32, #tpu.memory_space<vmem>>) attributes {dimension_semantics = [#tpu.dimension_semantics<parallel>, #tpu.dimension_semantics<parallel>], iteration_bounds = array<i64: 1, 1>, scalar_prefetch = 0 : i64, scratch_operands = 0 : i64, tpu.core_type = #tpu.core_type<tc>, window_params = [{transform_indices = @transform_0, window_bounds = array<i64: 16, 256>}, {transform_indices = @transform_1, window_bounds = array<i64: 256, 128>}, {transform_indices = @transform_2, window_bounds = array<i64: 1, 128>}, {transform_indices = @transform_3, window_bounds = array<i64: 16, 128>}]} {
    %c0 = arith.constant 0 : index
    %c0_0 = arith.constant 0 : index
    %0 = vector.load %arg2[%c0, %c0_0] : memref<16x256xbf16, #tpu.memory_space<vmem>>, vector<16x256xbf16>
    %c0_1 = arith.constant 0 : index
    %c0_2 = arith.constant 0 : index
    %1 = vector.load %arg3[%c0_1, %c0_2] : memref<256x128xbf16, #tpu.memory_space<vmem>>, vector<256x128xbf16>
    %cst = arith.constant dense<0.000000e+00> : vector<16x128xf32>
    %2 = tpu.matmul %0, %1, %cst {dimension_numbers = #tpu.dot_dimension_numbers<[1], [0], [0], [1], [0, 0, 1, 1], [], []>} : vector<16x256xbf16>, vector<256x128xbf16>, vector<16x128xf32> -> vector<16x128xf32>
    %c0_3 = arith.constant 0 : index
    %c0_4 = arith.constant 0 : index
    %3 = vector.load %arg4[%c0_3, %c0_4] : memref<1x128xf32, #tpu.memory_space<vmem>>, vector<1x128xf32>
    %4 = vector.broadcast %3 : vector<1x128xf32> to vector<16x128xf32>
    %5 = arith.addf %2, %4 : vector<16x128xf32>
    %c0_5 = arith.constant 0 : index
    %c0_6 = arith.constant 0 : index
    %6 = vector.load %arg5[%c0_5, %c0_6] : memref<16x128xf32, #tpu.memory_space<vmem>>, vector<16x128xf32>
    tpu.vector_store %arg5[%c0_5, %c0_6], %5 {strides = array<i32>} : memref<16x128xf32, #tpu.memory_space<vmem>>, vector<16x128xf32>,
    return
  }
  func.func @transform_0(%arg0: i32, %arg1: i32) -> (i32, i32) {
    %c0_i32 = arith.constant 0 : i32
    %c0_i32_0 = arith.constant 0 : i32
    return %arg0, %c0_i32 : i32, i32
  }
  func.func @transform_1(%arg0: i32, %arg1: i32) -> (i32, i32) {
    %c0_i32 = arith.constant 0 : i32
    %c0_i32_0 = arith.constant 0 : i32
    return %c0_i32, %arg1 : i32, i32
  }
  func.func @transform_2(%arg0: i32, %arg1: i32) -> (i32, i32) {
    %c0_i32 = arith.constant 0 : i32
    %c0_i32_0 = arith.constant 0 : i32
    return %c0_i32, %arg1 : i32, i32
  }
  func.func @transform_3(%arg0: i32, %arg1: i32) -> (i32, i32) {
    %c0_i32 = arith.constant 0 : i32
    return %arg0, %arg1 : i32, i32
  }
}

</mosaic_0001>

<bundles_post_ra>
// kernel: lstm_model_forward.7
= control target key start
LH: loop header
LB: loop body
LE: loop exit
PB: predicated region body
PF: predicated region fallthrough
CT: control target
= control target key end

     0   :  { %s961_s12 = smov 0   ;;  %s963_s13 = smov 0   ;;  %s1164_s0 = inlined_call_operand.vmem [shape: bf16[16,128], index: 0, kind: input, shape index: {}]   ;;  %s1165_s1 = inlined_call_operand.vmem [shape: bf16[128,1024], index: 1, kind: input, shape index: {}]   ;;  %s1166_s2 = inlined_call_operand.vmem [shape: f32[1,1024], index: 2, kind: input, shape index: {}]   ;;  %s1167_s3 = inlined_call_operand.vmem [shape: f32[16,1024], index: 3, kind: output, shape index: {}]  }
   0x1   :  { %s965_s14 = smov 0   ;;  %s967_s15 = smov 0  }
   0x2   :  { %s969_s16 = smov 0  }
   0x3 LB: > { %s22_s17 = sadd.s32 1, %s934_s15  ;;  %s758_s18 = sadd.s32 4294967295, %s938_s16   ;;  %s938_s16 = sphi %s969_s16, %s13_s16   ;;  %s934_s15 = sphi %s967_s15, %s1172_s15   ;;  %s930_s14 = sphi %s965_s14, %s1171_s14   ;;  %s926_s13 = sphi %s963_s13, %s1170_s13   ;;  %s922_s12 = sphi %s961_s12, %s1169_s12  }
   0x4   : > { %p23_p0 = scmp.ge.s32.totalorder %s22_s17, 2  ;;  %p65_p1 = scmp.ne.s32.totalorder %s926_s13, %s922_s12 }
   0x5   : > { %p66_p2 = scmp.eq.s32.totalorder %s938_s16, 0  ;;  %p123_p4 = scmp.eq.s32.totalorder %s758_s18, 1 }
   0x6   : > { %s1174_s17 = smov (%p23_p0, %s22_s17), 0  ;;  %s58_s20 = sadd.s32 1, %s926_s13 }
   0x7   : > { %p67_p3 = por %p66_p2, %p65_p1  ;;  %s55_s19 = ssub.s32 %s934_s15, %s1174_s17 }
   0x8   : > { %p56_p5 = scmp.eq.s32.totalorder %s55_s19, 0  ;;  %p996_p6 = por %p123_p4, %p65_p1 }
   0x9   : > { %p762_p7 = scmp.ge.s32.totalorder %s938_s16, 2 }
   0xa   : > { %s1001_s22 = scalar_select %p56_p5, %s926_s13, %s58_s20  }
   0xb   : > { %154 = sbr.rel (%p762_p7) target bundleno = 36 (0x24), region = 20 }
  0x10   : > { %157 = sbr.rel (!%p67_p3) target bundleno = 36 (0x24), region = 24  ;;  %s159_s23 = sand.u32 (%p67_p3), 1, %s926_s13  }
  0x11   : > { %s808_s24 = sshll.u32 (%p67_p3), %s934_s15, 4  ;;  %s763_s25 = sshll.u32 (%p67_p3), %s159_s23, 8 }
  0x12   : > { %s1009_s28 = scalar_lea.vmem (%p67_p3), %s1165_s1, %s808_s24  ;;  %s1014_s29 = scalar_lea.vmem (%p67_p3), [#allocation2], %s763_s25 }
  0x13   : > { %v177_v0 = vld [vmem:[%s1009_s28] sm:$0xff] (%p67_p3)  ;;  %v179_v1 = vld [vmem:[%s1009_s28 + $0x8] sm:$0xff] (%p67_p3) }
  0x14   : > { %v181_v2 = vld [vmem:[%s1009_s28 + $0x20] sm:$0xff] (%p67_p3)  ;;  %178 = vst [vmem:[%s1014_s29] sm:$0xff] (%p67_p3), %v177_v0  ;;  %180 = vst [vmem:[%s1014_s29 + $0x8] sm:$0xff] (%p67_p3), %v179_v1  ;;  %v183_v3 = vld [vmem:[%s1009_s28 + $0x28] sm:$0xff] (%p67_p3) }
  0x15   : > { %182 = vst [vmem:[%s1014_s29 + $0x10] sm:$0xff] %v181_v2  ;;  %v185_v4 = vld [vmem:[%s1009_s28 + $0x40] sm:$0xff]  ;;  %v187_v5 = vld [vmem:[%s1009_s28 + $0x48] sm:$0xff]  ;;  %184 = vst [vmem:[%s1014_s29 + $0x18] sm:$0xff] %v183_v3 }
  0x16   : > { %186 = vst [vmem:[%s1014_s29 + $0x20] sm:$0xff] %v185_v4  ;;  %188 = vst [vmem:[%s1014_s29 + $0x28] sm:$0xff] %v187_v5  ;;  %v189_v6 = vld [vmem:[%s1009_s28 + $0x60] sm:$0xff]  ;;  %v191_v7 = vld [vmem:[%s1009_s28 + $0x68] sm:$0xff] }
  0x17   : > { %v193_v8 = vld [vmem:[%s1009_s28 + $0x80] sm:$0xff]  ;;  %190 = vst [vmem:[%s1014_s29 + $0x30] sm:$0xff] %v189_v6  ;;  %192 = vst [vmem:[%s1014_s29 + $0x38] sm:$0xff] %v191_v7  ;;  %v195_v9 = vld [vmem:[%s1009_s28 + $0x88] sm:$0xff] }
  0x18   : > { %194 = vst [vmem:[%s1014_s29 + $0x40] sm:$0xff] %v193_v8  ;;  %v197_v10 = vld [vmem:[%s1009_s28 + $0xa0] sm:$0xff]  ;;  %v199_v11 = vld [vmem:[%s1009_s28 + $0xa8] sm:$0xff]  ;;  %196 = vst [vmem:[%s1014_s29 + $0x48] sm:$0xff] %v195_v9 }
  0x19   : > { %198 = vst [vmem:[%s1014_s29 + $0x50] sm:$0xff] %v197_v10  ;;  %200 = vst [vmem:[%s1014_s29 + $0x58] sm:$0xff] %v199_v11  ;;  %v201_v12 = vld [vmem:[%s1009_s28 + $0xc0] sm:$0xff]  ;;  %v203_v13 = vld [vmem:[%s1009_s28 + $0xc8] sm:$0xff] }
  0x1a   : > { %v205_v14 = vld [vmem:[%s1009_s28 + $0xe0] sm:$0xff]  ;;  %202 = vst [vmem:[%s1014_s29 + $0x60] sm:$0xff] %v201_v12  ;;  %204 = vst [vmem:[%s1014_s29 + $0x68] sm:$0xff] %v203_v13  ;;  %v207_v15 = vld [vmem:[%s1009_s28 + $0xe8] sm:$0xff] }
  0x1b   : > { %206 = vst [vmem:[%s1014_s29 + $0x70] sm:$0xff] %v205_v14  ;;  %v209_v16 = vld [vmem:[%s1009_s28 + $0x100] sm:$0xff]  ;;  %v211_v17 = vld [vmem:[%s1009_s28 + $0x108] sm:$0xff]  ;;  %208 = vst [vmem:[%s1014_s29 + $0x78] sm:$0xff] %v207_v15 }
  0x1c   : > { %210 = vst [vmem:[%s1014_s29 + $0x80] sm:$0xff] %v209_v16  ;;  %212 = vst [vmem:[%s1014_s29 + $0x88] sm:$0xff] %v211_v17  ;;  %v213_v18 = vld [vmem:[%s1009_s28 + $0x120] sm:$0xff]  ;;  %v215_v19 = vld [vmem:[%s1009_s28 + $0x128] sm:$0xff] }
  0x1d   : > { %v217_v20 = vld [vmem:[%s1009_s28 + $0x140] sm:$0xff]  ;;  %214 = vst [vmem:[%s1014_s29 + $0x90] sm:$0xff] %v213_v18  ;;  %216 = vst [vmem:[%s1014_s29 + $0x98] sm:$0xff] %v215_v19  ;;  %v219_v21 = vld [vmem:[%s1009_s28 + $0x148] sm:$0xff] }
  0x1e   : > { %218 = vst [vmem:[%s1014_s29 + $0xa0] sm:$0xff] %v217_v20  ;;  %v221_v22 = vld [vmem:[%s1009_s28 + $0x160] sm:$0xff]  ;;  %v223_v23 = vld [vmem:[%s1009_s28 + $0x168] sm:$0xff]  ;;  %220 = vst [vmem:[%s1014_s29 + $0xa8] sm:$0xff] %v219_v21 }
  0x1f   : > { %222 = vst [vmem:[%s1014_s29 + $0xb0] sm:$0xff] %v221_v22  ;;  %224 = vst [vmem:[%s1014_s29 + $0xb8] sm:$0xff] %v223_v23  ;;  %v225_v24 = vld [vmem:[%s1009_s28 + $0x180] sm:$0xff]  ;;  %v227_v25 = vld [vmem:[%s1009_s28 + $0x188] sm:$0xff] }
  0x20   : > { %v229_v26 = vld [vmem:[%s1009_s28 + $0x1a0] sm:$0xff]  ;;  %226 = vst [vmem:[%s1014_s29 + $0xc0] sm:$0xff] %v225_v24  ;;  %228 = vst [vmem:[%s1014_s29 + $0xc8] sm:$0xff] %v227_v25  ;;  %v231_v27 = vld [vmem:[%s1009_s28 + $0x1a8] sm:$0xff] }
  0x21   : > { %230 = vst [vmem:[%s1014_s29 + $0xd0] sm:$0xff] %v229_v26  ;;  %v233_v28 = vld [vmem:[%s1009_s28 + $0x1c0] sm:$0xff]  ;;  %v235_v29 = vld [vmem:[%s1009_s28 + $0x1c8] sm:$0xff]  ;;  %232 = vst [vmem:[%s1014_s29 + $0xd8] sm:$0xff] %v231_v27 }
  0x22   : > { %234 = vst [vmem:[%s1014_s29 + $0xe0] sm:$0xff] %v233_v28  ;;  %236 = vst [vmem:[%s1014_s29 + $0xe8] sm:$0xff] %v235_v29  ;;  %v237_v30 = vld [vmem:[%s1009_s28 + $0x1e0] sm:$0xff]  ;;  %v239_v31 = vld [vmem:[%s1009_s28 + $0x1e8] sm:$0xff] }
  0x23   : > { %238 = vst [vmem:[%s1014_s29 + $0xf0] sm:$0xff] %v237_v30  ;;  %240 = vst [vmem:[%s1014_s29 + $0xf8] sm:$0xff] %v239_v31 }
  0x24 PF: > { %p766_p8 = scmp.ge.s32.totalorder %s938_s16, 1  ;;  %p253_p9 = scmp.lt.s32.totalorder %s938_s16, 3 }
  0x26   : > { %p254_p10 = pnand %p766_p8, %p253_p9 }
  0x27   : > { %s260_s30 = sand.u32 (!%p254_p10), 1, %s922_s12   ;;  %s769_s8 = sshll.u32 (!%p254_p10), %s930_s14, 2 }
  0x28   : > { %257 = sbr.rel (%p254_p10) target bundleno = 289 (0x121), region = 51  ;;  %s767_s4 = sshll.u32 (!%p254_p10), %s260_s30, 8 }
  0x29   : > { %s1082_s5 = scalar_lea.vmem (!%p254_p10), [#allocation2], %s767_s4  ;;  %p299_p11 = scmp.lt.s32.totalorder (!%p254_p10), %s769_s8, 7 }
  0x2a   : > { %s768_s18 = sshll.u32 (!%p254_p10), %s260_s30, 6 }
  0x2b   : > { %s1125_s19 = scalar_lea.vmem (!%p254_p10), [#allocation3], %s768_s18 }
  0x2d   : > { %v940_v32 = vmov 0   ;;  %v851_v33 = vld [vmem:[%s1082_s5 + $0xe4] ss:$16 sps:$4 sm:$0xff]   ;;  %v853_v34 = vld [vmem:[%s1082_s5 + $0xec] ss:$16 sps:$4 sm:$0xff]   ;;  %v342_v2 = vlaneseq  ;;  %s1176_s8 = smov (!%p299_p11, %s769_s8), 7 }
  0x2e   : > { %560 = vmatprep.mubr.bf16.mxu0 %v940_v32  ;;  %603 = vmatprep.mubr.bf16.mxu1 %v940_v32  ;;  %v855_v35 = vld [vmem:[%s1082_s5 + $0xe0] ss:$16 sps:$4 sm:$0xff]   ;;  %v856_v36 = vld [vmem:[%s1082_s5 + $0xe8] ss:$16 sps:$4 sm:$0xff]   ;;  %v857_v37 = vld [vmem:[%s1082_s5 + $0xc4] ss:$16 sps:$4 sm:$0xff]   ;;  %s301_s11 = scalar_lea.vmem %s1166_s2, %s1176_s8 }
  0x2f   : > { %528 = vmatprep.subr.bf16.mxu0 %v851_v33  ;;  %571 = vmatprep.subr.bf16.mxu1 %v853_v34  ;;  %v859_v38 = vld [vmem:[%s1082_s5 + $0xcc] ss:$16 sps:$4 sm:$0xff]   ;;  %v861_v39 = vld [vmem:[%s1082_s5 + $0xc0] ss:$16 sps:$4 sm:$0xff]   ;;  %v862_v40 = vld [vmem:[%s1082_s5 + $0xc8] ss:$16 sps:$4 sm:$0xff]  }
  0x30   : > { %529 = vmatpush1.bf16.msra.mxu0 %v855_v35  ;;  %572 = vmatpush1.bf16.msra.mxu1 %v856_v36  ;;  %v863_v41 = vld [vmem:[%s1082_s5 + $0xa4] ss:$16 sps:$4 sm:$0xff]   ;;  %v865_v42 = vld [vmem:[%s1082_s5 + $0xac] ss:$16 sps:$4 sm:$0xff]   ;;  %v867_v43 = vld [vmem:[%s1082_s5 + $0xa0] ss:$16 sps:$4 sm:$0xff]  }
  0x31   : > { %530 = vmatprep.subr.bf16.mxu0 %v857_v37  ;;  %573 = vmatprep.subr.bf16.mxu1 %v859_v38  ;;  %v868_v44 = vld [vmem:[%s1082_s5 + $0xa8] ss:$16 sps:$4 sm:$0xff]   ;;  %v869_v45 = vld [vmem:[%s1082_s5 + $0x84] ss:$16 sps:$4 sm:$0xff]   ;;  %v871_v46 = vld [vmem:[%s1082_s5 + $0x8c] ss:$16 sps:$4 sm:$0xff]  }
  0x32   : > { %v873_v47 = vld [vmem:[%s1082_s5 + $0x80] ss:$16 sps:$4 sm:$0xff]   ;;  %v874_v48 = vld [vmem:[%s1082_s5 + $0x88] ss:$16 sps:$4 sm:$0xff]   ;;  %v875_v49 = vld [vmem:[%s1082_s5 + $0x64] ss:$16 sps:$4 sm:$0xff]  }
  0x33   : > { %v877_v50 = vld [vmem:[%s1082_s5 + $0x6c] ss:$16 sps:$4 sm:$0xff]   ;;  %v879_v51 = vld [vmem:[%s1082_s5 + $0x60] ss:$16 sps:$4 sm:$0xff]   ;;  %v880_v52 = vld [vmem:[%s1082_s5 + $0x68] ss:$16 sps:$4 sm:$0xff]  }
  0x34   : > { %531 = vmatpush1.bf16.msra.mxu0 %v861_v39  ;;  %574 = vmatpush1.bf16.msra.mxu1 %v862_v40  ;;  %v881_v53 = vld [vmem:[%s1082_s5 + $0x44] ss:$16 sps:$4 sm:$0xff]   ;;  %v883_v54 = vld [vmem:[%s1082_s5 + $0x4c] ss:$16 sps:$4 sm:$0xff]   ;;  %v885_v55 = vld [vmem:[%s1082_s5 + $0x40] ss:$16 sps:$4 sm:$0xff]  }
  0x35   : > { %532 = vmatprep.subr.bf16.mxu0 %v863_v41  ;;  %575 = vmatprep.subr.bf16.mxu1 %v865_v42  ;;  %v886_v56 = vld [vmem:[%s1082_s5 + $0x48] ss:$16 sps:$4 sm:$0xff]   ;;  %v887_v57 = vld [vmem:[%s1082_s5 + $0x24] ss:$16 sps:$4 sm:$0xff]   ;;  %v889_v58 = vld [vmem:[%s1082_s5 + $0x2c] ss:$16 sps:$4 sm:$0xff]  }
  0x36   : > { %v891_v59 = vld [vmem:[%s1082_s5 + $0x20] ss:$16 sps:$4 sm:$0xff]   ;;  %v892_v60 = vld [vmem:[%s1082_s5 + $0x28] ss:$16 sps:$4 sm:$0xff]   ;;  %v893_v61 = vld [vmem:[%s1082_s5 + $0x4] ss:$16 sps:$4 sm:$0xff]  }
  0x37   : > { %v895_v62 = vld [vmem:[%s1082_s5 + $0xc] ss:$16 sps:$4 sm:$0xff]   ;;  %v897_v63 = vld [vmem:[%s1082_s5] ss:$16 sps:$4 sm:$0xff]   ;;  %v898_v0 = vld [vmem:[%s1082_s5 + $0x8] ss:$16 sps:$4 sm:$0xff]  }
  0x38   : > { %533 = vmatpush1.bf16.msra.mxu0 %v867_v43  ;;  %576 = vmatpush1.bf16.msra.mxu1 %v868_v44  ;;  %v899_v1 = vld [vmem:[%s1164_s0] sm:$0xff]   ;;  %v343_v3 = vshrl.u32 %v342_v2, 7  ;;  %s809_s12 = sshll.u32 (%p996_p6), %s930_s14, 5 }
  0x39   : > { %534 = vmatprep.subr.bf16.mxu0 %v869_v45  ;;  %577 = vmatprep.subr.bf16.mxu1 %v871_v46  ;;  %v340_v6 = vld [vmem:[%s301_s11] sm:$0xf]  ;;  %s634_s24 = scalar_lea.vmem (%p996_p6), %s1167_s3, %s809_s12 }
  0x3a   : > { %v344_v4 = vsub.s32 0, %v343_v3  ;;  %v352_v5 = vsub.s32 2, %v343_v3  ;;  %v348_v7 = vsub.s32 1, %v343_v3  ;;  %v356_v8 = vsub.s32 3, %v343_v3 }
  0x3c   : > { %535 = vmatpush1.bf16.msra.mxu0 %v873_v47  ;;  %578 = vmatpush1.bf16.msra.mxu1 %v874_v48  ;;  %v345_v9 = vrot.slane %v340_v6, %v344_v4  ;;  %v353_v10 = vrot.slane %v340_v6, %v352_v5  ;;  %v349_v11 = vrot.slane %v340_v6, %v348_v7 }
  0x3d   : > { %536 = vmatprep.subr.bf16.mxu0 %v875_v49  ;;  %579 = vmatprep.subr.bf16.mxu1 %v877_v50  ;;  %v357_v12 = vrot.slane %v340_v6, %v356_v8 }
  0x40   : > { %537 = vmatpush1.bf16.msra.mxu0 %v879_v51  ;;  %580 = vmatpush1.bf16.msra.mxu1 %v880_v52 }
  0x41   : > { %538 = vmatprep.subr.bf16.mxu0 %v881_v53  ;;  %581 = vmatprep.subr.bf16.mxu1 %v883_v54 }
  0x44   : > { %539 = vmatpush1.bf16.msra.mxu0 %v885_v55  ;;  %582 = vmatpush1.bf16.msra.mxu1 %v886_v56 }
  0x45   : > { %540 = vmatprep.subr.bf16.mxu0 %v887_v57  ;;  %583 = vmatprep.subr.bf16.mxu1 %v889_v58 }
  0x48   : > { %541 = vmatpush1.bf16.msra.mxu0 %v891_v59  ;;  %584 = vmatpush1.bf16.msra.mxu1 %v892_v60 }
  0x49   : > { %542 = vmatprep.subr.bf16.mxu0 %v893_v61  ;;  %585 = vmatprep.subr.bf16.mxu1 %v895_v62 }
  0x4c   : > { %543 = vmatpush1.bf16.msra.mxu0 %v897_v63  ;;  %586 = vmatpush1.bf16.msra.mxu1 %v898_v0 }
  0x4f   : > { %561 = vmatmul.mubr.bf16.vlgmr.msra.gmra.mxu0 %v899_v1  ;;  %604 = vmatmul.mubr.bf16.vlgmr.msra.gmra.mxu1 %v899_v1 }
 0x10f   : > { %v562_v13 = vpop.f32.mrf.mxu0  ;;  %v605_v14 = vpop.f32.mrf.mxu1 }
 0x110   : > { %v563_v15 = vadd.f32 %v562_v13, %v345_v9  ;;  %v606_v16 = vadd.f32 %v605_v14, %v353_v10 }
 0x111   : > { %v564_v17 = vpop.f32.mrf.mxu0  ;;  %v607_v18 = vpop.f32.mrf.mxu1 }
 0x112   : > { %614 = vst [vmem:[%s1125_s19] sm:$0xff] %v563_v15  ;;  %616 = vst [vmem:[%s1125_s19 + $0x10] sm:$0xff] %v606_v16  ;;  %v565_v19 = vadd.f32 %v564_v17, %v349_v11  ;;  %v608_v20 = vadd.f32 %v607_v18, %v357_v12 }
 0x113   : > { %v566_v21 = vpop.f32.mrf.mxu0  ;;  %v609_v22 = vpop.f32.mrf.mxu1 }
 0x114   : > { %615 = vst [vmem:[%s1125_s19 + $0x8] sm:$0xff] %v565_v19  ;;  %617 = vst [vmem:[%s1125_s19 + $0x18] sm:$0xff] %v608_v20  ;;  %v567_v23 = vadd.f32 %v566_v21, %v345_v9  ;;  %v610_v24 = vadd.f32 %v609_v22, %v353_v10  ;;  %628 = sbr.rel (!%p996_p6) target bundleno = 289 (0x121), region = 59 }
 0x115   : > { %v568_v25 = vpop.f32.mrf.mxu0  ;;  %v611_v26 = vpop.f32.mrf.mxu1 }
 0x116   : > { %618 = vst [vmem:[%s1125_s19 + $0x20] sm:$0xff] %v567_v23  ;;  %620 = vst [vmem:[%s1125_s19 + $0x30] sm:$0xff] %v610_v24  ;;  %v569_v27 = vadd.f32 %v568_v25, %v349_v11  ;;  %v612_v28 = vadd.f32 %v611_v26, %v357_v12 }
 0x118   : > { %619 = vst [vmem:[%s1125_s19 + $0x28] sm:$0xff] %v569_v27  ;;  %621 = vst [vmem:[%s1125_s19 + $0x38] sm:$0xff] %v612_v28 }
 0x119   : > { %v647_v29 = vld [vmem:[%s1125_s19] sm:$0xff]  ;;  %v651_v31 = vld [vmem:[%s1125_s19 + $0x10] sm:$0xff] }
 0x11a   : > { %648 = vst [vmem:[%s634_s24] sm:$0xff] %v647_v29  ;;  %652 = vst [vmem:[%s634_s24 + $0x10] sm:$0xff] %v651_v31 }
 0x11b   : > { %v649_v30 = vld [vmem:[%s1125_s19 + $0x8] sm:$0xff]  ;;  %v653_v32 = vld [vmem:[%s1125_s19 + $0x18] sm:$0xff] }
 0x11c   : > { %650 = vst [vmem:[%s634_s24 + $0x8] sm:$0xff] %v649_v30  ;;  %654 = vst [vmem:[%s634_s24 + $0x18] sm:$0xff] %v653_v32 }
 0x11d   : > { %v655_v33 = vld [vmem:[%s1125_s19 + $0x20] sm:$0xff]  ;;  %v659_v35 = vld [vmem:[%s1125_s19 + $0x30] sm:$0xff] }
 0x11e   : > { %656 = vst [vmem:[%s634_s24 + $0x40] sm:$0xff] %v655_v33  ;;  %660 = vst [vmem:[%s634_s24 + $0x50] sm:$0xff] %v659_v35 }
 0x11f   : > { %v657_v34 = vld [vmem:[%s1125_s19 + $0x28] sm:$0xff]  ;;  %v661_v36 = vld [vmem:[%s1125_s19 + $0x38] sm:$0xff] }
 0x120   : > { %658 = vst [vmem:[%s634_s24 + $0x48] sm:$0xff] %v657_v34  ;;  %662 = vst [vmem:[%s634_s24 + $0x58] sm:$0xff] %v661_v36 }
 0x121 PF: > { %s13_s16 = sadd.s32 1, %s938_s16   ;;  %s1169_s12 = smov %s926_s13 }
 0x122   : > { %p10_p12 = scmp.ge.s32.totalorder %s13_s16, 4   ;;  %s1170_s13 = smov %s1001_s22 }
 0x123   : > { %s1171_s14 = smov %s934_s15  ;;  %s1172_s15 = smov %s1174_s17 }
 0x124   :  { %12 = sbr.rel (!%p10_p12) target bundleno = 3 (0x3), region = 119 }

// kernel: lstm_model_forward.9
= control target key start
LH: loop header
LB: loop body
LE: loop exit
PB: predicated region body
PF: predicated region fallthrough
CT: control target
= control target key end

     0   :  { %s1304_s12 = smov 0   ;;  %s1306_s13 = smov 0   ;;  %s1606_s0 = inlined_call_operand.vmem [shape: bf16[16,256], index: 0, kind: input, shape index: {}]   ;;  %s1607_s1 = inlined_call_operand.vmem [shape: bf16[256,1024], index: 1, kind: input, shape index: {}]   ;;  %s1608_s2 = inlined_call_operand.vmem [shape: f32[1,1024], index: 2, kind: input, shape index: {}]   ;;  %s1609_s3 = inlined_call_operand.vmem [shape: f32[16,1024], index: 3, kind: output, shape index: {}]  }
   0x1   :  { %s1308_s14 = smov 0   ;;  %s1310_s15 = smov 0  }
   0x2   :  { %s1312_s16 = smov 0  }
   0x3 LB: > { %s22_s17 = sadd.s32 1, %s1278_s15  ;;  %s1020_s18 = sadd.s32 4294967295, %s1282_s16   ;;  %s1282_s16 = sphi %s1312_s16, %s13_s16   ;;  %s1278_s15 = sphi %s1310_s15, %s1614_s15   ;;  %s1274_s14 = sphi %s1308_s14, %s1613_s14   ;;  %s1270_s13 = sphi %s1306_s13, %s1612_s13   ;;  %s1266_s12 = sphi %s1304_s12, %s1611_s12  }
   0x4   : > { %p23_p0 = scmp.ge.s32.totalorder %s22_s17, 2  ;;  %p65_p1 = scmp.ne.s32.totalorder %s1270_s13, %s1266_s12 }
   0x5   : > { %p66_p2 = scmp.eq.s32.totalorder %s1282_s16, 0  ;;  %p123_p4 = scmp.eq.s32.totalorder %s1020_s18, 1 }
   0x6   : > { %s1616_s17 = smov (%p23_p0, %s22_s17), 0  ;;  %s58_s20 = sadd.s32 1, %s1270_s13 }
   0x7   : > { %p67_p3 = por %p66_p2, %p65_p1  ;;  %s55_s19 = ssub.s32 %s1278_s15, %s1616_s17 }
   0x8   : > { %p56_p5 = scmp.eq.s32.totalorder %s55_s19, 0  ;;  %p1339_p6 = por %p123_p4, %p65_p1 }
   0x9   : > { %p1024_p7 = scmp.ge.s32.totalorder %s1282_s16, 2 }
   0xa   : > { %s1344_s22 = scalar_select %p56_p5, %s1270_s13, %s58_s20  }
   0xb   : > { %155 = sbr.rel (%p1024_p7) target bundleno = 52 (0x34), region = 20 }
  0x10   : > { %158 = sbr.rel (!%p67_p3) target bundleno = 52 (0x34), region = 24  ;;  %s160_s23 = sand.u32 (%p67_p3), 1, %s1270_s13  }
  0x11   : > { %s1103_s24 = sshll.u32 (%p67_p3), %s1278_s15, 4  ;;  %s1025_s25 = sshll.u32 (%p67_p3), %s160_s23, 9 }
  0x12   : > { %s1352_s28 = scalar_lea.vmem (%p67_p3), %s1607_s1, %s1103_s24  ;;  %s1357_s29 = scalar_lea.vmem (%p67_p3), [#allocation2], %s1025_s25 }
  0x13   : > { %v178_v0 = vld [vmem:[%s1352_s28] sm:$0xff] (%p67_p3)  ;;  %v180_v1 = vld [vmem:[%s1352_s28 + $0x8] sm:$0xff] (%p67_p3) }
  0x14   : > { %v182_v2 = vld [vmem:[%s1352_s28 + $0x20] sm:$0xff] (%p67_p3)  ;;  %179 = vst [vmem:[%s1357_s29] sm:$0xff] (%p67_p3), %v178_v0  ;;  %181 = vst [vmem:[%s1357_s29 + $0x8] sm:$0xff] (%p67_p3), %v180_v1  ;;  %v184_v3 = vld [vmem:[%s1352_s28 + $0x28] sm:$0xff] (%p67_p3) }
  0x15   : > { %183 = vst [vmem:[%s1357_s29 + $0x10] sm:$0xff] %v182_v2  ;;  %v186_v4 = vld [vmem:[%s1352_s28 + $0x40] sm:$0xff]  ;;  %v188_v5 = vld [vmem:[%s1352_s28 + $0x48] sm:$0xff]  ;;  %185 = vst [vmem:[%s1357_s29 + $0x18] sm:$0xff] %v184_v3 }
  0x16   : > { %187 = vst [vmem:[%s1357_s29 + $0x20] sm:$0xff] %v186_v4  ;;  %189 = vst [vmem:[%s1357_s29 + $0x28] sm:$0xff] %v188_v5  ;;  %v190_v6 = vld [vmem:[%s1352_s28 + $0x60] sm:$0xff]  ;;  %v192_v7 = vld [vmem:[%s1352_s28 + $0x68] sm:$0xff] }
  0x17   : > { %v194_v8 = vld [vmem:[%s1352_s28 + $0x80] sm:$0xff]  ;;  %191 = vst [vmem:[%s1357_s29 + $0x30] sm:$0xff] %v190_v6  ;;  %193 = vst [vmem:[%s1357_s29 + $0x38] sm:$0xff] %v192_v7  ;;  %v196_v9 = vld [vmem:[%s1352_s28 + $0x88] sm:$0xff] }
  0x18   : > { %195 = vst [vmem:[%s1357_s29 + $0x40] sm:$0xff] %v194_v8  ;;  %v198_v10 = vld [vmem:[%s1352_s28 + $0xa0] sm:$0xff]  ;;  %v200_v11 = vld [vmem:[%s1352_s28 + $0xa8] sm:$0xff]  ;;  %197 = vst [vmem:[%s1357_s29 + $0x48] sm:$0xff] %v196_v9 }
  0x19   : > { %199 = vst [vmem:[%s1357_s29 + $0x50] sm:$0xff] %v198_v10  ;;  %201 = vst [vmem:[%s1357_s29 + $0x58] sm:$0xff] %v200_v11  ;;  %v202_v12 = vld [vmem:[%s1352_s28 + $0xc0] sm:$0xff]  ;;  %v204_v13 = vld [vmem:[%s1352_s28 + $0xc8] sm:$0xff] }
  0x1a   : > { %v206_v14 = vld [vmem:[%s1352_s28 + $0xe0] sm:$0xff]  ;;  %203 = vst [vmem:[%s1357_s29 + $0x60] sm:$0xff] %v202_v12  ;;  %205 = vst [vmem:[%s1357_s29 + $0x68] sm:$0xff] %v204_v13  ;;  %v208_v15 = vld [vmem:[%s1352_s28 + $0xe8] sm:$0xff] }
  0x1b   : > { %207 = vst [vmem:[%s1357_s29 + $0x70] sm:$0xff] %v206_v14  ;;  %v210_v16 = vld [vmem:[%s1352_s28 + $0x100] sm:$0xff]  ;;  %v212_v17 = vld [vmem:[%s1352_s28 + $0x108] sm:$0xff]  ;;  %209 = vst [vmem:[%s1357_s29 + $0x78] sm:$0xff] %v208_v15 }
  0x1c   : > { %211 = vst [vmem:[%s1357_s29 + $0x80] sm:$0xff] %v210_v16  ;;  %213 = vst [vmem:[%s1357_s29 + $0x88] sm:$0xff] %v212_v17  ;;  %v214_v18 = vld [vmem:[%s1352_s28 + $0x120] sm:$0xff]  ;;  %v216_v19 = vld [vmem:[%s1352_s28 + $0x128] sm:$0xff] }
  0x1d   : > { %v218_v20 = vld [vmem:[%s1352_s28 + $0x140] sm:$0xff]  ;;  %215 = vst [vmem:[%s1357_s29 + $0x90] sm:$0xff] %v214_v18  ;;  %217 = vst [vmem:[%s1357_s29 + $0x98] sm:$0xff] %v216_v19  ;;  %v220_v21 = vld [vmem:[%s1352_s28 + $0x148] sm:$0xff] }
  0x1e   : > { %219 = vst [vmem:[%s1357_s29 + $0xa0] sm:$0xff] %v218_v20  ;;  %v222_v22 = vld [vmem:[%s1352_s28 + $0x160] sm:$0xff]  ;;  %v224_v23 = vld [vmem:[%s1352_s28 + $0x168] sm:$0xff]  ;;  %221 = vst [vmem:[%s1357_s29 + $0xa8] sm:$0xff] %v220_v21 }
  0x1f   : > { %223 = vst [vmem:[%s1357_s29 + $0xb0] sm:$0xff] %v222_v22  ;;  %225 = vst [vmem:[%s1357_s29 + $0xb8] sm:$0xff] %v224_v23  ;;  %v226_v24 = vld [vmem:[%s1352_s28 + $0x180] sm:$0xff]  ;;  %v228_v25 = vld [vmem:[%s1352_s28 + $0x188] sm:$0xff] }
  0x20   : > { %v230_v26 = vld [vmem:[%s1352_s28 + $0x1a0] sm:$0xff]  ;;  %227 = vst [vmem:[%s1357_s29 + $0xc0] sm:$0xff] %v226_v24  ;;  %229 = vst [vmem:[%s1357_s29 + $0xc8] sm:$0xff] %v228_v25  ;;  %v232_v27 = vld [vmem:[%s1352_s28 + $0x1a8] sm:$0xff] }
  0x21   : > { %231 = vst [vmem:[%s1357_s29 + $0xd0] sm:$0xff] %v230_v26  ;;  %v234_v28 = vld [vmem:[%s1352_s28 + $0x1c0] sm:$0xff]  ;;  %v236_v29 = vld [vmem:[%s1352_s28 + $0x1c8] sm:$0xff]  ;;  %233 = vst [vmem:[%s1357_s29 + $0xd8] sm:$0xff] %v232_v27 }
  0x22   : > { %235 = vst [vmem:[%s1357_s29 + $0xe0] sm:$0xff] %v234_v28  ;;  %237 = vst [vmem:[%s1357_s29 + $0xe8] sm:$0xff] %v236_v29  ;;  %v238_v30 = vld [vmem:[%s1352_s28 + $0x1e0] sm:$0xff]  ;;  %v240_v31 = vld [vmem:[%s1352_s28 + $0x1e8] sm:$0xff] }
  0x23   : > { %v242_v32 = vld [vmem:[%s1352_s28 + $0x200] sm:$0xff]  ;;  %239 = vst [vmem:[%s1357_s29 + $0xf0] sm:$0xff] %v238_v30  ;;  %241 = vst [vmem:[%s1357_s29 + $0xf8] sm:$0xff] %v240_v31  ;;  %v244_v33 = vld [vmem:[%s1352_s28 + $0x208] sm:$0xff] }
  0x24   : > { %243 = vst [vmem:[%s1357_s29 + $0x100] sm:$0xff] %v242_v32  ;;  %v246_v34 = vld [vmem:[%s1352_s28 + $0x220] sm:$0xff]  ;;  %v248_v35 = vld [vmem:[%s1352_s28 + $0x228] sm:$0xff]  ;;  %245 = vst [vmem:[%s1357_s29 + $0x108] sm:$0xff] %v244_v33 }
  0x25   : > { %247 = vst [vmem:[%s1357_s29 + $0x110] sm:$0xff] %v246_v34  ;;  %249 = vst [vmem:[%s1357_s29 + $0x118] sm:$0xff] %v248_v35  ;;  %v250_v36 = vld [vmem:[%s1352_s28 + $0x240] sm:$0xff]  ;;  %v252_v37 = vld [vmem:[%s1352_s28 + $0x248] sm:$0xff] }
  0x26   : > { %v254_v38 = vld [vmem:[%s1352_s28 + $0x260] sm:$0xff]  ;;  %251 = vst [vmem:[%s1357_s29 + $0x120] sm:$0xff] %v250_v36  ;;  %253 = vst [vmem:[%s1357_s29 + $0x128] sm:$0xff] %v252_v37  ;;  %v256_v39 = vld [vmem:[%s1352_s28 + $0x268] sm:$0xff] }
  0x27   : > { %255 = vst [vmem:[%s1357_s29 + $0x130] sm:$0xff] %v254_v38  ;;  %v258_v40 = vld [vmem:[%s1352_s28 + $0x280] sm:$0xff]  ;;  %v260_v41 = vld [vmem:[%s1352_s28 + $0x288] sm:$0xff]  ;;  %257 = vst [vmem:[%s1357_s29 + $0x138] sm:$0xff] %v256_v39 }
  0x28   : > { %259 = vst [vmem:[%s1357_s29 + $0x140] sm:$0xff] %v258_v40  ;;  %261 = vst [vmem:[%s1357_s29 + $0x148] sm:$0xff] %v260_v41  ;;  %v262_v42 = vld [vmem:[%s1352_s28 + $0x2a0] sm:$0xff]  ;;  %v264_v43 = vld [vmem:[%s1352_s28 + $0x2a8] sm:$0xff] }
  0x29   : > { %v266_v44 = vld [vmem:[%s1352_s28 + $0x2c0] sm:$0xff]  ;;  %263 = vst [vmem:[%s1357_s29 + $0x150] sm:$0xff] %v262_v42  ;;  %265 = vst [vmem:[%s1357_s29 + $0x158] sm:$0xff] %v264_v43  ;;  %v268_v45 = vld [vmem:[%s1352_s28 + $0x2c8] sm:$0xff] }
  0x2a   : > { %267 = vst [vmem:[%s1357_s29 + $0x160] sm:$0xff] %v266_v44  ;;  %v270_v46 = vld [vmem:[%s1352_s28 + $0x2e0] sm:$0xff]  ;;  %v272_v47 = vld [vmem:[%s1352_s28 + $0x2e8] sm:$0xff]  ;;  %269 = vst [vmem:[%s1357_s29 + $0x168] sm:$0xff] %v268_v45 }
  0x2b   : > { %271 = vst [vmem:[%s1357_s29 + $0x170] sm:$0xff] %v270_v46  ;;  %273 = vst [vmem:[%s1357_s29 + $0x178] sm:$0xff] %v272_v47  ;;  %v274_v48 = vld [vmem:[%s1352_s28 + $0x300] sm:$0xff]  ;;  %v276_v49 = vld [vmem:[%s1352_s28 + $0x308] sm:$0xff] }
  0x2c   : > { %v278_v50 = vld [vmem:[%s1352_s28 + $0x320] sm:$0xff]  ;;  %275 = vst [vmem:[%s1357_s29 + $0x180] sm:$0xff] %v274_v48  ;;  %277 = vst [vmem:[%s1357_s29 + $0x188] sm:$0xff] %v276_v49  ;;  %v280_v51 = vld [vmem:[%s1352_s28 + $0x328] sm:$0xff] }
  0x2d   : > { %279 = vst [vmem:[%s1357_s29 + $0x190] sm:$0xff] %v278_v50  ;;  %v282_v52 = vld [vmem:[%s1352_s28 + $0x340] sm:$0xff]  ;;  %v284_v53 = vld [vmem:[%s1352_s28 + $0x348] sm:$0xff]  ;;  %281 = vst [vmem:[%s1357_s29 + $0x198] sm:$0xff] %v280_v51 }
  0x2e   : > { %283 = vst [vmem:[%s1357_s29 + $0x1a0] sm:$0xff] %v282_v52  ;;  %285 = vst [vmem:[%s1357_s29 + $0x1a8] sm:$0xff] %v284_v53  ;;  %v286_v54 = vld [vmem:[%s1352_s28 + $0x360] sm:$0xff]  ;;  %v288_v55 = vld [vmem:[%s1352_s28 + $0x368] sm:$0xff] }
  0x2f   : > { %v290_v56 = vld [vmem:[%s1352_s28 + $0x380] sm:$0xff]  ;;  %287 = vst [vmem:[%s1357_s29 + $0x1b0] sm:$0xff] %v286_v54  ;;  %289 = vst [vmem:[%s1357_s29 + $0x1b8] sm:$0xff] %v288_v55  ;;  %v292_v57 = vld [vmem:[%s1352_s28 + $0x388] sm:$0xff] }
  0x30   : > { %291 = vst [vmem:[%s1357_s29 + $0x1c0] sm:$0xff] %v290_v56  ;;  %v294_v58 = vld [vmem:[%s1352_s28 + $0x3a0] sm:$0xff]  ;;  %v296_v59 = vld [vmem:[%s1352_s28 + $0x3a8] sm:$0xff]  ;;  %293 = vst [vmem:[%s1357_s29 + $0x1c8] sm:$0xff] %v292_v57 }
  0x31   : > { %295 = vst [vmem:[%s1357_s29 + $0x1d0] sm:$0xff] %v294_v58  ;;  %297 = vst [vmem:[%s1357_s29 + $0x1d8] sm:$0xff] %v296_v59  ;;  %v298_v60 = vld [vmem:[%s1352_s28 + $0x3c0] sm:$0xff]  ;;  %v300_v61 = vld [vmem:[%s1352_s28 + $0x3c8] sm:$0xff] }
  0x32   : > { %v302_v62 = vld [vmem:[%s1352_s28 + $0x3e0] sm:$0xff]  ;;  %299 = vst [vmem:[%s1357_s29 + $0x1e0] sm:$0xff] %v298_v60  ;;  %301 = vst [vmem:[%s1357_s29 + $0x1e8] sm:$0xff] %v300_v61  ;;  %v304_v63 = vld [vmem:[%s1352_s28 + $0x3e8] sm:$0xff] }
  0x33   : > { %303 = vst [vmem:[%s1357_s29 + $0x1f0] sm:$0xff] %v302_v62  ;;  %305 = vst [vmem:[%s1357_s29 + $0x1f8] sm:$0xff] %v304_v63 }
  0x34 PF: > { %p1028_p8 = scmp.ge.s32.totalorder %s1282_s16, 1  ;;  %p318_p9 = scmp.lt.s32.totalorder %s1282_s16, 3 }
  0x36   : > { %p319_p10 = pnand %p1028_p8, %p318_p9 }
  0x37   : > { %s325_s30 = sand.u32 (!%p319_p10), 1, %s1266_s12   ;;  %s1031_s10 = sshll.u32 (!%p319_p10), %s1274_s14, 2 }
  0x38   : > { %322 = sbr.rel (%p319_p10) target bundleno = 337 (0x151), region = 51  ;;  %s1029_s4 = sshll.u32 (!%p319_p10), %s325_s30, 9 }
  0x39   : > { %s1492_s7 = scalar_lea.vmem (!%p319_p10), [#allocation2], %s1029_s4  ;;  %p366_p11 = scmp.lt.s32.totalorder (!%p319_p10), %s1031_s10, 7 }
  0x3a   : > { %s1030_s20 = sshll.u32 (!%p319_p10), %s325_s30, 6 }
  0x3b   : > { %s1567_s23 = scalar_lea.vmem (!%p319_p10), [#allocation3], %s1030_s20 }
  0x3d   : > { %v1243_v0 = vld [vmem:[%s1606_s0 + $0x4] ss:$8 sps:$4 sm:$0xff]   ;;  %v1149_v3 = vld [vmem:[%s1492_s7 + $0xe0] ss:$16 sps:$4 sm:$0xff]   ;;  %v1150_v4 = vld [vmem:[%s1492_s7 + $0xe8] ss:$16 sps:$4 sm:$0xff]  }
  0x3e   : > { %v1145_v1 = vld [vmem:[%s1492_s7 + $0xe4] ss:$16 sps:$4 sm:$0xff]   ;;  %822 = vmatprep.mubr.bf16.mxu0 %v1243_v0  ;;  %865 = vmatprep.mubr.bf16.mxu1 %v1243_v0  ;;  %v1147_v2 = vld [vmem:[%s1492_s7 + $0xec] ss:$16 sps:$4 sm:$0xff]   ;;  %v1155_v7 = vld [vmem:[%s1492_s7 + $0xc0] ss:$16 sps:$4 sm:$0xff]  }
  0x3f   : > { %790 = vmatprep.subr.bf16.mxu0 %v1145_v1  ;;  %833 = vmatprep.subr.bf16.mxu1 %v1147_v2  ;;  %v1151_v5 = vld [vmem:[%s1492_s7 + $0xc4] ss:$16 sps:$4 sm:$0xff]   ;;  %v1153_v6 = vld [vmem:[%s1492_s7 + $0xcc] ss:$16 sps:$4 sm:$0xff]   ;;  %v1156_v8 = vld [vmem:[%s1492_s7 + $0xc8] ss:$16 sps:$4 sm:$0xff]   ;;  %v440_v2 = vlaneseq }
  0x40   : > { %791 = vmatpush1.bf16.msra.mxu0 %v1149_v3  ;;  %834 = vmatpush1.bf16.msra.mxu1 %v1150_v4  ;;  %v1157_v9 = vld [vmem:[%s1492_s7 + $0xa4] ss:$16 sps:$4 sm:$0xff]   ;;  %v1159_v10 = vld [vmem:[%s1492_s7 + $0xac] ss:$16 sps:$4 sm:$0xff]   ;;  %v1161_v11 = vld [vmem:[%s1492_s7 + $0xa0] ss:$16 sps:$4 sm:$0xff]  }
  0x41   : > { %792 = vmatprep.subr.bf16.mxu0 %v1151_v5  ;;  %835 = vmatprep.subr.bf16.mxu1 %v1153_v6  ;;  %v1162_v12 = vld [vmem:[%s1492_s7 + $0xa8] ss:$16 sps:$4 sm:$0xff]   ;;  %v1163_v13 = vld [vmem:[%s1492_s7 + $0x84] ss:$16 sps:$4 sm:$0xff]   ;;  %v1165_v14 = vld [vmem:[%s1492_s7 + $0x8c] ss:$16 sps:$4 sm:$0xff]  }
  0x42   : > { %v1167_v15 = vld [vmem:[%s1492_s7 + $0x80] ss:$16 sps:$4 sm:$0xff]   ;;  %v1168_v16 = vld [vmem:[%s1492_s7 + $0x88] ss:$16 sps:$4 sm:$0xff]   ;;  %v1169_v17 = vld [vmem:[%s1492_s7 + $0x64] ss:$16 sps:$4 sm:$0xff]  }
  0x43   : > { %v1171_v18 = vld [vmem:[%s1492_s7 + $0x6c] ss:$16 sps:$4 sm:$0xff]   ;;  %v1173_v19 = vld [vmem:[%s1492_s7 + $0x60] ss:$16 sps:$4 sm:$0xff]   ;;  %v1174_v20 = vld [vmem:[%s1492_s7 + $0x68] ss:$16 sps:$4 sm:$0xff]  }
  0x44   : > { %793 = vmatpush1.bf16.msra.mxu0 %v1155_v7  ;;  %836 = vmatpush1.bf16.msra.mxu1 %v1156_v8  ;;  %v1175_v21 = vld [vmem:[%s1492_s7 + $0x44] ss:$16 sps:$4 sm:$0xff]   ;;  %v1177_v22 = vld [vmem:[%s1492_s7 + $0x4c] ss:$16 sps:$4 sm:$0xff]   ;;  %v1179_v23 = vld [vmem:[%s1492_s7 + $0x40] ss:$16 sps:$4 sm:$0xff]  }
  0x45   : > { %794 = vmatprep.subr.bf16.mxu0 %v1157_v9  ;;  %837 = vmatprep.subr.bf16.mxu1 %v1159_v10  ;;  %v1180_v24 = vld [vmem:[%s1492_s7 + $0x48] ss:$16 sps:$4 sm:$0xff]   ;;  %v1181_v25 = vld [vmem:[%s1492_s7 + $0x24] ss:$16 sps:$4 sm:$0xff]   ;;  %v1183_v26 = vld [vmem:[%s1492_s7 + $0x2c] ss:$16 sps:$4 sm:$0xff]  }
  0x46   : > { %v1185_v27 = vld [vmem:[%s1492_s7 + $0x20] ss:$16 sps:$4 sm:$0xff]   ;;  %v1186_v28 = vld [vmem:[%s1492_s7 + $0x28] ss:$16 sps:$4 sm:$0xff]   ;;  %v1187_v29 = vld [vmem:[%s1492_s7 + $0x4] ss:$16 sps:$4 sm:$0xff]  }
  0x47   : > { %v1189_v30 = vld [vmem:[%s1492_s7 + $0xc] ss:$16 sps:$4 sm:$0xff]   ;;  %v1191_v31 = vld [vmem:[%s1492_s7] ss:$16 sps:$4 sm:$0xff]   ;;  %v1192_v32 = vld [vmem:[%s1492_s7 + $0x8] ss:$16 sps:$4 sm:$0xff]  }
  0x48   : > { %795 = vmatpush1.bf16.msra.mxu0 %v1161_v11  ;;  %838 = vmatpush1.bf16.msra.mxu1 %v1162_v12  ;;  %v1193_v33 = vld [vmem:[%s1492_s7 + $0x1e4] ss:$16 sps:$4 sm:$0xff]   ;;  %v1195_v34 = vld [vmem:[%s1492_s7 + $0x1ec] ss:$16 sps:$4 sm:$0xff]   ;;  %v1197_v35 = vld [vmem:[%s1492_s7 + $0x1e0] ss:$16 sps:$4 sm:$0xff]  }
  0x49   : > { %796 = vmatprep.subr.bf16.mxu0 %v1163_v13  ;;  %839 = vmatprep.subr.bf16.mxu1 %v1165_v14  ;;  %v1198_v36 = vld [vmem:[%s1492_s7 + $0x1e8] ss:$16 sps:$4 sm:$0xff]   ;;  %v1199_v37 = vld [vmem:[%s1492_s7 + $0x1c4] ss:$16 sps:$4 sm:$0xff]   ;;  %v1201_v38 = vld [vmem:[%s1492_s7 + $0x1cc] ss:$16 sps:$4 sm:$0xff]  }
  0x4a   : > { %v1203_v39 = vld [vmem:[%s1492_s7 + $0x1c0] ss:$16 sps:$4 sm:$0xff]   ;;  %v1204_v40 = vld [vmem:[%s1492_s7 + $0x1c8] ss:$16 sps:$4 sm:$0xff]   ;;  %v1205_v41 = vld [vmem:[%s1492_s7 + $0x1a4] ss:$16 sps:$4 sm:$0xff]  }
  0x4b   : > { %v1207_v42 = vld [vmem:[%s1492_s7 + $0x1ac] ss:$16 sps:$4 sm:$0xff]   ;;  %v1209_v43 = vld [vmem:[%s1492_s7 + $0x1a0] ss:$16 sps:$4 sm:$0xff]   ;;  %v1210_v44 = vld [vmem:[%s1492_s7 + $0x1a8] ss:$16 sps:$4 sm:$0xff]  }
  0x4c   : > { %797 = vmatpush1.bf16.msra.mxu0 %v1167_v15  ;;  %840 = vmatpush1.bf16.msra.mxu1 %v1168_v16  ;;  %v1211_v45 = vld [vmem:[%s1492_s7 + $0x184] ss:$16 sps:$4 sm:$0xff]   ;;  %v1213_v46 = vld [vmem:[%s1492_s7 + $0x18c] ss:$16 sps:$4 sm:$0xff]   ;;  %v1215_v47 = vld [vmem:[%s1492_s7 + $0x180] ss:$16 sps:$4 sm:$0xff]  }
  0x4d   : > { %798 = vmatprep.subr.bf16.mxu0 %v1169_v17  ;;  %841 = vmatprep.subr.bf16.mxu1 %v1171_v18  ;;  %v1216_v48 = vld [vmem:[%s1492_s7 + $0x188] ss:$16 sps:$4 sm:$0xff]   ;;  %v1217_v49 = vld [vmem:[%s1492_s7 + $0x164] ss:$16 sps:$4 sm:$0xff]   ;;  %v1219_v50 = vld [vmem:[%s1492_s7 + $0x16c] ss:$16 sps:$4 sm:$0xff]  }
  0x4e   : > { %v1221_v51 = vld [vmem:[%s1492_s7 + $0x160] ss:$16 sps:$4 sm:$0xff]   ;;  %v1222_v52 = vld [vmem:[%s1492_s7 + $0x168] ss:$16 sps:$4 sm:$0xff]   ;;  %v1223_v53 = vld [vmem:[%s1492_s7 + $0x144] ss:$16 sps:$4 sm:$0xff]  }
  0x4f   : > { %v1225_v54 = vld [vmem:[%s1492_s7 + $0x14c] ss:$16 sps:$4 sm:$0xff]   ;;  %v1227_v55 = vld [vmem:[%s1492_s7 + $0x140] ss:$16 sps:$4 sm:$0xff]   ;;  %v1228_v56 = vld [vmem:[%s1492_s7 + $0x148] ss:$16 sps:$4 sm:$0xff]  }
  0x50   : > { %799 = vmatpush1.bf16.msra.mxu0 %v1173_v19  ;;  %842 = vmatpush1.bf16.msra.mxu1 %v1174_v20  ;;  %v1229_v57 = vld [vmem:[%s1492_s7 + $0x124] ss:$16 sps:$4 sm:$0xff]   ;;  %v1231_v58 = vld [vmem:[%s1492_s7 + $0x12c] ss:$16 sps:$4 sm:$0xff]   ;;  %v1233_v59 = vld [vmem:[%s1492_s7 + $0x120] ss:$16 sps:$4 sm:$0xff]  }
  0x51   : > { %800 = vmatprep.subr.bf16.mxu0 %v1175_v21  ;;  %843 = vmatprep.subr.bf16.mxu1 %v1177_v22  ;;  %v1234_v60 = vld [vmem:[%s1492_s7 + $0x128] ss:$16 sps:$4 sm:$0xff]   ;;  %v1235_v61 = vld [vmem:[%s1492_s7 + $0x104] ss:$16 sps:$4 sm:$0xff]   ;;  %v1237_v62 = vld [vmem:[%s1492_s7 + $0x10c] ss:$16 sps:$4 sm:$0xff]  }
  0x52   : > { %v1239_v63 = vld [vmem:[%s1492_s7 + $0x100] ss:$16 sps:$4 sm:$0xff]   ;;  %v1240_v0 = vld [vmem:[%s1492_s7 + $0x108] ss:$16 sps:$4 sm:$0xff]   ;;  %s1618_s10 = smov (!%p366_p11, %s1031_s10), 7  ;;  %v441_v3 = vshrl.u32 %v440_v2, 7 }
  0x53   : > { %v1241_v1 = vld [vmem:[%s1606_s0] ss:$8 sps:$4 sm:$0xff]   ;;  %s368_s19 = scalar_lea.vmem %s1608_s2, %s1618_s10  ;;  %s1104_s12 = sshll.u32 (%p1339_p6), %s1274_s14, 5 }
  0x54   : > { %801 = vmatpush1.bf16.msra.mxu0 %v1179_v23  ;;  %844 = vmatpush1.bf16.msra.mxu1 %v1180_v24  ;;  %v442_v4 = vsub.s32 0, %v441_v3  ;;  %v450_v5 = vsub.s32 2, %v441_v3  ;;  %v438_v6 = vld [vmem:[%s368_s19] sm:$0xf]  ;;  %v446_v7 = vsub.s32 1, %v441_v3  ;;  %v454_v8 = vsub.s32 3, %v441_v3  ;;  %s896_s26 = scalar_lea.vmem (%p1339_p6), %s1609_s3, %s1104_s12 }
  0x55   : > { %802 = vmatprep.subr.bf16.mxu0 %v1181_v25  ;;  %845 = vmatprep.subr.bf16.mxu1 %v1183_v26 }
  0x56   : > { %v443_v9 = vrot.slane %v438_v6, %v442_v4  ;;  %v451_v10 = vrot.slane %v438_v6, %v450_v5  ;;  %v447_v11 = vrot.slane %v438_v6, %v446_v7  ;;  %v455_v12 = vrot.slane %v438_v6, %v454_v8 }
  0x58   : > { %803 = vmatpush1.bf16.msra.mxu0 %v1185_v27  ;;  %846 = vmatpush1.bf16.msra.mxu1 %v1186_v28 }
  0x59   : > { %804 = vmatprep.subr.bf16.mxu0 %v1187_v29  ;;  %847 = vmatprep.subr.bf16.mxu1 %v1189_v30 }
  0x5c   : > { %805 = vmatpush1.bf16.msra.mxu0 %v1191_v31  ;;  %848 = vmatpush1.bf16.msra.mxu1 %v1192_v32 }
  0x5d   : > { %806 = vmatprep.subr.bf16.mxu0 %v1193_v33  ;;  %849 = vmatprep.subr.bf16.mxu1 %v1195_v34 }
  0x60   : > { %807 = vmatpush2.bf16.msra.mxu0 %v1197_v35  ;;  %850 = vmatpush2.bf16.msra.mxu1 %v1198_v36 }
  0x61   : > { %808 = vmatprep.subr.bf16.mxu0 %v1199_v37  ;;  %851 = vmatprep.subr.bf16.mxu1 %v1201_v38 }
  0x64   : > { %809 = vmatpush2.bf16.msra.mxu0 %v1203_v39  ;;  %852 = vmatpush2.bf16.msra.mxu1 %v1204_v40 }
  0x65   : > { %810 = vmatprep.subr.bf16.mxu0 %v1205_v41  ;;  %853 = vmatprep.subr.bf16.mxu1 %v1207_v42 }
  0x68   : > { %811 = vmatpush2.bf16.msra.mxu0 %v1209_v43  ;;  %854 = vmatpush2.bf16.msra.mxu1 %v1210_v44 }
  0x69   : > { %812 = vmatprep.subr.bf16.mxu0 %v1211_v45  ;;  %855 = vmatprep.subr.bf16.mxu1 %v1213_v46 }
  0x6c   : > { %813 = vmatpush2.bf16.msra.mxu0 %v1215_v47  ;;  %856 = vmatpush2.bf16.msra.mxu1 %v1216_v48 }
  0x6d   : > { %814 = vmatprep.subr.bf16.mxu0 %v1217_v49  ;;  %857 = vmatprep.subr.bf16.mxu1 %v1219_v50 }
  0x70   : > { %815 = vmatpush2.bf16.msra.mxu0 %v1221_v51  ;;  %858 = vmatpush2.bf16.msra.mxu1 %v1222_v52 }
  0x71   : > { %816 = vmatprep.subr.bf16.mxu0 %v1223_v53  ;;  %859 = vmatprep.subr.bf16.mxu1 %v1225_v54 }
  0x74   : > { %817 = vmatpush2.bf16.msra.mxu0 %v1227_v55  ;;  %860 = vmatpush2.bf16.msra.mxu1 %v1228_v56 }
  0x75   : > { %818 = vmatprep.subr.bf16.mxu0 %v1229_v57  ;;  %861 = vmatprep.subr.bf16.mxu1 %v1231_v58 }
  0x78   : > { %819 = vmatpush2.bf16.msra.mxu0 %v1233_v59  ;;  %862 = vmatpush2.bf16.msra.mxu1 %v1234_v60 }
  0x79   : > { %820 = vmatprep.subr.bf16.mxu0 %v1235_v61  ;;  %863 = vmatprep.subr.bf16.mxu1 %v1237_v62 }
  0x7c   : > { %821 = vmatpush2.bf16.msra.mxu0 %v1239_v63  ;;  %864 = vmatpush2.bf16.msra.mxu1 %v1240_v0 }
  0x7f   : > { %823 = vmatmul.mubr.bf16.vlgmr.msra.gmra.mxu0 %v1241_v1  ;;  %866 = vmatmul.mubr.bf16.vlgmr.msra.gmra.mxu1 %v1241_v1 }
 0x13f   : > { %v824_v13 = vpop.f32.mrf.mxu0  ;;  %v867_v14 = vpop.f32.mrf.mxu1 }
 0x140   : > { %v825_v15 = vadd.f32 %v824_v13, %v443_v9  ;;  %v868_v16 = vadd.f32 %v867_v14, %v451_v10 }
 0x141   : > { %v826_v17 = vpop.f32.mrf.mxu0  ;;  %v869_v18 = vpop.f32.mrf.mxu1 }
 0x142   : > { %876 = vst [vmem:[%s1567_s23] sm:$0xff] %v825_v15  ;;  %878 = vst [vmem:[%s1567_s23 + $0x10] sm:$0xff] %v868_v16  ;;  %v827_v19 = vadd.f32 %v826_v17, %v447_v11  ;;  %v870_v20 = vadd.f32 %v869_v18, %v455_v12 }
 0x143   : > { %v828_v21 = vpop.f32.mrf.mxu0  ;;  %v871_v22 = vpop.f32.mrf.mxu1 }
 0x144   : > { %877 = vst [vmem:[%s1567_s23 + $0x8] sm:$0xff] %v827_v19  ;;  %879 = vst [vmem:[%s1567_s23 + $0x18] sm:$0xff] %v870_v20  ;;  %v829_v23 = vadd.f32 %v828_v21, %v443_v9  ;;  %v872_v24 = vadd.f32 %v871_v22, %v451_v10  ;;  %890 = sbr.rel (!%p1339_p6) target bundleno = 337 (0x151), region = 59 }
 0x145   : > { %v830_v25 = vpop.f32.mrf.mxu0  ;;  %v873_v26 = vpop.f32.mrf.mxu1 }
 0x146   : > { %880 = vst [vmem:[%s1567_s23 + $0x20] sm:$0xff] %v829_v23  ;;  %882 = vst [vmem:[%s1567_s23 + $0x30] sm:$0xff] %v872_v24  ;;  %v831_v27 = vadd.f32 %v830_v25, %v447_v11  ;;  %v874_v28 = vadd.f32 %v873_v26, %v455_v12 }
 0x148   : > { %881 = vst [vmem:[%s1567_s23 + $0x28] sm:$0xff] %v831_v27  ;;  %883 = vst [vmem:[%s1567_s23 + $0x38] sm:$0xff] %v874_v28 }
 0x149   : > { %v909_v29 = vld [vmem:[%s1567_s23] sm:$0xff]  ;;  %v913_v31 = vld [vmem:[%s1567_s23 + $0x10] sm:$0xff] }
 0x14a   : > { %910 = vst [vmem:[%s896_s26] sm:$0xff] %v909_v29  ;;  %914 = vst [vmem:[%s896_s26 + $0x10] sm:$0xff] %v913_v31 }
 0x14b   : > { %v911_v30 = vld [vmem:[%s1567_s23 + $0x8] sm:$0xff]  ;;  %v915_v32 = vld [vmem:[%s1567_s23 + $0x18] sm:$0xff] }
 0x14c   : > { %912 = vst [vmem:[%s896_s26 + $0x8] sm:$0xff] %v911_v30  ;;  %916 = vst [vmem:[%s896_s26 + $0x18] sm:$0xff] %v915_v32 }
 0x14d   : > { %v917_v33 = vld [vmem:[%s1567_s23 + $0x20] sm:$0xff]  ;;  %v921_v35 = vld [vmem:[%s1567_s23 + $0x30] sm:$0xff] }
 0x14e   : > { %918 = vst [vmem:[%s896_s26 + $0x40] sm:$0xff] %v917_v33  ;;  %922 = vst [vmem:[%s896_s26 + $0x50] sm:$0xff] %v921_v35 }
 0x14f   : > { %v919_v34 = vld [vmem:[%s1567_s23 + $0x28] sm:$0xff]  ;;  %v923_v36 = vld [vmem:[%s1567_s23 + $0x38] sm:$0xff] }
 0x150   : > { %920 = vst [vmem:[%s896_s26 + $0x48] sm:$0xff] %v919_v34  ;;  %924 = vst [vmem:[%s896_s26 + $0x58] sm:$0xff] %v923_v36 }
 0x151 PF: > { %s13_s16 = sadd.s32 1, %s1282_s16   ;;  %s1611_s12 = smov %s1270_s13 }
 0x152   : > { %p10_p12 = scmp.ge.s32.totalorder %s13_s16, 4   ;;  %s1612_s13 = smov %s1344_s22 }
 0x153   : > { %s1613_s14 = smov %s1278_s15  ;;  %s1614_s15 = smov %s1616_s17 }
 0x154   :  { %12 = sbr.rel (!%p10_p12) target bundleno = 3 (0x3), region = 119 }

// kernel: lstm_model_forward.13
= control target key start
LH: loop header
LB: loop body
LE: loop exit
PB: predicated region body
PF: predicated region fallthrough
CT: control target
= control target key end

     0   :  { %s352_s1 = inlined_call_operand.vmem [shape: bf16[256,128], index: 1, kind: input, shape index: {}]   ;;  %s353_s0 = inlined_call_operand.vmem [shape: bf16[16,256], index: 0, kind: input, shape index: {}]   ;;  %s354_s2 = inlined_call_operand.vmem [shape: f32[1,128], index: 2, kind: input, shape index: {}]   ;;  %s355_s3 = inlined_call_operand.vmem [shape: f32[16,128], index: 3, kind: output, shape index: {}]  }
   0x1   :  { %v250_v0 = vld [vmem:[%s352_s1 + $0x78] sm:$0xff]   ;;  %v252_v2 = vld [vmem:[%s352_s1 + $0x70] sm:$0xff]   ;;  %v254_v4 = vld [vmem:[%s352_s1 + $0x68] sm:$0xff]  }
   0x2   :  { %v251_v1 = vld [vmem:[%s352_s1 + $0x38] sm:$0xff]   ;;  %228 = vmatprep.subr.bf16.mxu0 %v250_v0  ;;  %v253_v3 = vld [vmem:[%s352_s1 + $0x30] sm:$0xff]   ;;  %v255_v5 = vld [vmem:[%s352_s1 + $0x28] sm:$0xff]  }
   0x3   :  { %229 = vmatpush3.bf16.msra.mxu0 %v251_v1  ;;  %v256_v6 = vld [vmem:[%s352_s1 + $0x60] sm:$0xff]   ;;  %v258_v8 = vld [vmem:[%s352_s1 + $0x58] sm:$0xff]   ;;  %v260_v10 = vld [vmem:[%s352_s1 + $0x50] sm:$0xff]  }
   0x4   :  { %230 = vmatprep.subr.bf16.mxu0 %v252_v2  ;;  %v257_v7 = vld [vmem:[%s352_s1 + $0x20] sm:$0xff]   ;;  %v259_v9 = vld [vmem:[%s352_s1 + $0x18] sm:$0xff]   ;;  %v261_v12 = vld [vmem:[%s352_s1 + $0x10] sm:$0xff]  }
   0x5   :  { %v268_v11 = vld [vmem:[%s353_s0 + $0x4] ss:$8 sps:$4 sm:$0xff]   ;;  %v266_v17 = vld [vmem:[%s353_s0] ss:$8 sps:$4 sm:$0xff]  }
   0x6   :  { %194 = vmatprep.mubr.bf16.mxu0 %v268_v11  ;;  %v262_v13 = vld [vmem:[%s352_s1 + $0x48] sm:$0xff]   ;;  %v264_v15 = vld [vmem:[%s352_s1 + $0x40] sm:$0xff]  }
   0x7   :  { %231 = vmatpush3.bf16.msra.mxu0 %v253_v3  ;;  %v263_v14 = vld [vmem:[%s352_s1 + $0x8] sm:$0xff]   ;;  %v265_v16 = vld [vmem:[%s352_s1] sm:$0xff]  }
   0x8   :  { %232 = vmatprep.subr.bf16.mxu0 %v254_v4  ;;  %v209_v19 = vld [vmem:[%s354_s2] ss:$0 sm:$0xff] }
   0xb   :  { %233 = vmatpush3.bf16.msra.mxu0 %v255_v5 }
   0xc   :  { %234 = vmatprep.subr.bf16.mxu0 %v256_v6 }
   0xf   :  { %235 = vmatpush3.bf16.msra.mxu0 %v257_v7 }
  0x10   :  { %236 = vmatprep.subr.bf16.mxu0 %v258_v8 }
  0x13   :  { %237 = vmatpush3.bf16.msra.mxu0 %v259_v9 }
  0x14   :  { %238 = vmatprep.subr.bf16.mxu0 %v260_v10 }
  0x17   :  { %239 = vmatpush3.bf16.msra.mxu0 %v261_v12 }
  0x18   :  { %240 = vmatprep.subr.bf16.mxu0 %v262_v13 }
  0x1b   :  { %241 = vmatpush3.bf16.msra.mxu0 %v263_v14 }
  0x1c   :  { %242 = vmatprep.subr.bf16.mxu0 %v264_v15 }
  0x1f   :  { %243 = vmatpush3.bf16.msra.mxu0 %v265_v16 }
  0x22   :  { %195 = vmatmul.mubr.bf16.vlgmr.msra.gmra.mxu0 %v266_v17 }
  0xe2   :  { %v244_v18 = vpop.f32.mrf.mxu0 }
  0xe4   :  { %v245_v20 = vpop.f32.mrf.mxu0 }
  0xe5   :  { %v246_v21 = vadd.f32 %v245_v20, %v244_v18 }
  0xe6   :  { %v247_v22 = vpop.f32.mrf.mxu0 }
  0xe7   :  { %v197_v23 = vadd.f32 %v246_v21, %v209_v19 }
  0xe8   :  { %v248_v24 = vpop.f32.mrf.mxu0 }
  0xe9   :  { %203 = vst [vmem:[%s355_s3] sm:$0xff] %v197_v23  ;;  %v249_v25 = vadd.f32 %v248_v24, %v247_v22 }
  0xeb   :  { %v200_v26 = vadd.f32 %v249_v25, %v209_v19 }
  0xed   :  { %204 = vst [vmem:[%s355_s3 + $0x8] sm:$0xff] %v200_v26 }

// kernel: lstm_model_forward.8
= control target key start
LH: loop header
LB: loop body
LE: loop exit
PB: predicated region body
PF: predicated region fallthrough
CT: control target
= control target key end

     0   :  { %s3928_s9 = smov 0   ;;  %s3930_s10 = smov 0   ;;  %s4641_s0 = inlined_call_operand.vmem [shape: f32[8,2,1024], index: 0, kind: input, shape index: {}]   ;;  %s4642_s1 = inlined_call_operand.vmem [shape: bf16[128,1024], index: 1, kind: input, shape index: {}]   ;;  %s4643_s2 = inlined_call_operand.vmem [shape: bf16[8,2,256], index: 2, kind: output, shape index: {}]  }
   0x1   :  { %s3932_s11 = smov 0   ;;  %s3934_s12 = smov 0  }
   0x2   :  { %s3936_s13 = smov 0  }
   0x3 LB: > { %s24_s14 = sadd.s32 1, %s3904_s12  ;;  %s3280_s15 = sadd.s32 4294967295, %s3908_s13   ;;  %s3908_s13 = sphi %s3936_s13, %s12_s13   ;;  %s3904_s12 = sphi %s3934_s12, %s4649_s12   ;;  %s3900_s11 = sphi %s3932_s11, %s4648_s11   ;;  %s3896_s10 = sphi %s3930_s10, %s4647_s10   ;;  %s3892_s9 = sphi %s3928_s9, %s4646_s9  }
   0x4   : > { %p26_p0 = scmp.ge.s32.totalorder %s24_s14, 2  ;;  %p48_p1 = scmp.ne.s32.totalorder %s3896_s10, %s3892_s9 }
   0x5   : > { %p49_p2 = scmp.eq.s32.totalorder %s3908_s13, 0  ;;  %p114_p4 = scmp.eq.s32.totalorder %s3280_s15, 1 }
   0x6   : > { %s4651_s14 = smov (%p26_p0, %s24_s14), 0  ;;  %s41_s18 = sadd.s32 1, %s3896_s10 }
   0x7   : > { %p3960_p3 = por %p49_p2, %p48_p1  ;;  %s37_s17 = ssub.s32 %s3904_s12, %s4651_s14 }
   0x8   : > { %p39_p5 = scmp.eq.s32.totalorder %s37_s17, 0  ;;  %p3967_p6 = por %p114_p4, %p48_p1 }
   0x9   : > { %p3283_p7 = scmp.ge.s32.totalorder %s3908_s13, 2 }
   0xa   : > { %s3972_s20 = scalar_select %p39_p5, %s3896_s10, %s41_s18  }
   0xb   : > { %136 = sbr.rel (%p3283_p7) target bundleno = 44 (0x2c), region = 16 }
  0x10   : > { %139 = sbr.rel (!%p3960_p3) target bundleno = 24 (0x18), region = 20  ;;  %s141_s21 = sand.u32 (%p3960_p3), 1, %s3896_s10  }
  0x11   : > { %s3599_s22 = sshll.u32 (%p3960_p3), %s3904_s12, 3  ;;  %s3284_s23 = sshll.u32 (%p3960_p3), %s141_s21, 6 }
  0x12   : > { %s153_s26 = scalar_lea.vmem (%p3960_p3), %s4641_s0, %s3599_s22  ;;  %s143_s27 = scalar_lea.vmem (%p3960_p3), [#allocation4], %s3284_s23 }
  0x13   : > { %v196_v0 = vld [vmem:[%s153_s26] sm:$0xff] (%p3960_p3)  ;;  %v198_v1 = vld [vmem:[%s153_s26 + $0x10] sm:$0xff] (%p3960_p3) }
  0x14   : > { %v200_v2 = vld [vmem:[%s153_s26 + $0x20] sm:$0xff] (%p3960_p3)  ;;  %197 = vst [vmem:[%s143_s27] sm:$0xff] (%p3960_p3), %v196_v0  ;;  %199 = vst [vmem:[%s143_s27 + $0x8] sm:$0xff] (%p3960_p3), %v198_v1  ;;  %v202_v3 = vld [vmem:[%s153_s26 + $0x30] sm:$0xff] (%p3960_p3) }
  0x15   : > { %201 = vst [vmem:[%s143_s27 + $0x10] sm:$0xff] %v200_v2  ;;  %v204_v4 = vld [vmem:[%s153_s26 + $0x40] sm:$0xff]  ;;  %v206_v5 = vld [vmem:[%s153_s26 + $0x50] sm:$0xff]  ;;  %203 = vst [vmem:[%s143_s27 + $0x18] sm:$0xff] %v202_v3 }
  0x16   : > { %205 = vst [vmem:[%s143_s27 + $0x20] sm:$0xff] %v204_v4  ;;  %207 = vst [vmem:[%s143_s27 + $0x28] sm:$0xff] %v206_v5  ;;  %v208_v6 = vld [vmem:[%s153_s26 + $0x60] sm:$0xff]  ;;  %v210_v7 = vld [vmem:[%s153_s26 + $0x70] sm:$0xff] }
  0x17   : > { %209 = vst [vmem:[%s143_s27 + $0x30] sm:$0xff] %v208_v6  ;;  %211 = vst [vmem:[%s143_s27 + $0x38] sm:$0xff] %v210_v7 }
  0x18 PF: > { %217 = sbr.rel (!%p3960_p3) target bundleno = 44 (0x2c), region = 58  ;;  %s219_s28 = sand.u32 (%p3960_p3), 1, %s3896_s10  }
  0x19   : > { %s3600_s29 = sshll.u32 (%p3960_p3), %s3904_s12, 4  ;;  %s3287_s30 = sshll.u32 (%p3960_p3), %s219_s28, 8 }
  0x1a   : > { %s3989_s5 = scalar_lea.vmem (%p3960_p3), %s4642_s1, %s3600_s29  ;;  %s3994_s6 = scalar_lea.vmem (%p3960_p3), [#allocation5], %s3287_s30 }
  0x1b   : > { %v237_v8 = vld [vmem:[%s3989_s5] sm:$0xff] (%p3960_p3)  ;;  %v239_v9 = vld [vmem:[%s3989_s5 + $0x8] sm:$0xff] (%p3960_p3) }
  0x1c   : > { %v241_v10 = vld [vmem:[%s3989_s5 + $0x20] sm:$0xff] (%p3960_p3)  ;;  %238 = vst [vmem:[%s3994_s6] sm:$0xff] (%p3960_p3), %v237_v8  ;;  %240 = vst [vmem:[%s3994_s6 + $0x8] sm:$0xff] (%p3960_p3), %v239_v9  ;;  %v243_v11 = vld [vmem:[%s3989_s5 + $0x28] sm:$0xff] (%p3960_p3) }
  0x1d   : > { %242 = vst [vmem:[%s3994_s6 + $0x10] sm:$0xff] %v241_v10  ;;  %v245_v12 = vld [vmem:[%s3989_s5 + $0x40] sm:$0xff]  ;;  %v247_v13 = vld [vmem:[%s3989_s5 + $0x48] sm:$0xff]  ;;  %244 = vst [vmem:[%s3994_s6 + $0x18] sm:$0xff] %v243_v11 }
  0x1e   : > { %246 = vst [vmem:[%s3994_s6 + $0x20] sm:$0xff] %v245_v12  ;;  %248 = vst [vmem:[%s3994_s6 + $0x28] sm:$0xff] %v247_v13  ;;  %v249_v14 = vld [vmem:[%s3989_s5 + $0x60] sm:$0xff]  ;;  %v251_v15 = vld [vmem:[%s3989_s5 + $0x68] sm:$0xff] }
  0x1f   : > { %v253_v16 = vld [vmem:[%s3989_s5 + $0x80] sm:$0xff]  ;;  %250 = vst [vmem:[%s3994_s6 + $0x30] sm:$0xff] %v249_v14  ;;  %252 = vst [vmem:[%s3994_s6 + $0x38] sm:$0xff] %v251_v15  ;;  %v255_v17 = vld [vmem:[%s3989_s5 + $0x88] sm:$0xff] }
  0x20   : > { %254 = vst [vmem:[%s3994_s6 + $0x40] sm:$0xff] %v253_v16  ;;  %v257_v18 = vld [vmem:[%s3989_s5 + $0xa0] sm:$0xff]  ;;  %v259_v19 = vld [vmem:[%s3989_s5 + $0xa8] sm:$0xff]  ;;  %256 = vst [vmem:[%s3994_s6 + $0x48] sm:$0xff] %v255_v17 }
  0x21   : > { %258 = vst [vmem:[%s3994_s6 + $0x50] sm:$0xff] %v257_v18  ;;  %260 = vst [vmem:[%s3994_s6 + $0x58] sm:$0xff] %v259_v19  ;;  %v261_v20 = vld [vmem:[%s3989_s5 + $0xc0] sm:$0xff]  ;;  %v263_v21 = vld [vmem:[%s3989_s5 + $0xc8] sm:$0xff] }
  0x22   : > { %v265_v22 = vld [vmem:[%s3989_s5 + $0xe0] sm:$0xff]  ;;  %262 = vst [vmem:[%s3994_s6 + $0x60] sm:$0xff] %v261_v20  ;;  %264 = vst [vmem:[%s3994_s6 + $0x68] sm:$0xff] %v263_v21  ;;  %v267_v23 = vld [vmem:[%s3989_s5 + $0xe8] sm:$0xff] }
  0x23   : > { %266 = vst [vmem:[%s3994_s6 + $0x70] sm:$0xff] %v265_v22  ;;  %v269_v24 = vld [vmem:[%s3989_s5 + $0x100] sm:$0xff]  ;;  %v271_v25 = vld [vmem:[%s3989_s5 + $0x108] sm:$0xff]  ;;  %268 = vst [vmem:[%s3994_s6 + $0x78] sm:$0xff] %v267_v23 }
  0x24   : > { %270 = vst [vmem:[%s3994_s6 + $0x80] sm:$0xff] %v269_v24  ;;  %272 = vst [vmem:[%s3994_s6 + $0x88] sm:$0xff] %v271_v25  ;;  %v273_v26 = vld [vmem:[%s3989_s5 + $0x120] sm:$0xff]  ;;  %v275_v27 = vld [vmem:[%s3989_s5 + $0x128] sm:$0xff] }
  0x25   : > { %v277_v28 = vld [vmem:[%s3989_s5 + $0x140] sm:$0xff]  ;;  %274 = vst [vmem:[%s3994_s6 + $0x90] sm:$0xff] %v273_v26  ;;  %276 = vst [vmem:[%s3994_s6 + $0x98] sm:$0xff] %v275_v27  ;;  %v279_v29 = vld [vmem:[%s3989_s5 + $0x148] sm:$0xff] }
  0x26   : > { %278 = vst [vmem:[%s3994_s6 + $0xa0] sm:$0xff] %v277_v28  ;;  %v281_v30 = vld [vmem:[%s3989_s5 + $0x160] sm:$0xff]  ;;  %v283_v31 = vld [vmem:[%s3989_s5 + $0x168] sm:$0xff]  ;;  %280 = vst [vmem:[%s3994_s6 + $0xa8] sm:$0xff] %v279_v29 }
  0x27   : > { %282 = vst [vmem:[%s3994_s6 + $0xb0] sm:$0xff] %v281_v30  ;;  %284 = vst [vmem:[%s3994_s6 + $0xb8] sm:$0xff] %v283_v31  ;;  %v285_v32 = vld [vmem:[%s3989_s5 + $0x180] sm:$0xff]  ;;  %v287_v33 = vld [vmem:[%s3989_s5 + $0x188] sm:$0xff] }
  0x28   : > { %v289_v34 = vld [vmem:[%s3989_s5 + $0x1a0] sm:$0xff]  ;;  %286 = vst [vmem:[%s3994_s6 + $0xc0] sm:$0xff] %v285_v32  ;;  %288 = vst [vmem:[%s3994_s6 + $0xc8] sm:$0xff] %v287_v33  ;;  %v291_v35 = vld [vmem:[%s3989_s5 + $0x1a8] sm:$0xff] }
  0x29   : > { %290 = vst [vmem:[%s3994_s6 + $0xd0] sm:$0xff] %v289_v34  ;;  %v293_v36 = vld [vmem:[%s3989_s5 + $0x1c0] sm:$0xff]  ;;  %v295_v37 = vld [vmem:[%s3989_s5 + $0x1c8] sm:$0xff]  ;;  %292 = vst [vmem:[%s3994_s6 + $0xd8] sm:$0xff] %v291_v35 }
  0x2a   : > { %294 = vst [vmem:[%s3994_s6 + $0xe0] sm:$0xff] %v293_v36  ;;  %296 = vst [vmem:[%s3994_s6 + $0xe8] sm:$0xff] %v295_v37  ;;  %v297_v38 = vld [vmem:[%s3989_s5 + $0x1e0] sm:$0xff]  ;;  %v299_v39 = vld [vmem:[%s3989_s5 + $0x1e8] sm:$0xff] }
  0x2b   : > { %298 = vst [vmem:[%s3994_s6 + $0xf0] sm:$0xff] %v297_v38  ;;  %300 = vst [vmem:[%s3994_s6 + $0xf8] sm:$0xff] %v299_v39 }
  0x2c PF: > { %p3290_p8 = scmp.ge.s32.totalorder %s3908_s13, 1  ;;  %p305_p9 = scmp.lt.s32.totalorder %s3908_s13, 3 }
  0x2e   : > { %p306_p10 = pnand %p3290_p8, %p305_p9 }
  0x2f   : > { %s4060_s7 = sand.u32 (!%p306_p10), 1, %s3892_s9   ;;  %s3601_s16 = smul.u32 (!%p306_p10), 56, %s3900_s11 }
  0x30   : > { %309 = sbr.rel (%p306_p10) target bundleno = 2172 (0x87c), region = 81  ;;  %s3292_s8 = sshll.u32 (!%p306_p10), %s4060_s7, 8 }
  0x31   : > { %s4065_s15 = scalar_lea.vmem (!%p306_p10), [#allocation5], %s3292_s8  ;;  %s3291_s9 = sshll.u32 (!%p306_p10), %s4060_s7, 6 }
  0x32   : > { %s4235_s17 = scalar_lea.vmem (!%p306_p10), [#allocation4], %s3291_s9  ;;  %s3293_s21 = sshll.u32 (!%p306_p10), %s4060_s7, 3 }
  0x33   : > { %s367_s18 = scalar_lea.vmem (!%p306_p10), %s4235_s17, %s3601_s16 [#allocation4]  ;;  %s364_s22 = smul.u32 (!%p306_p10), 7, %s3900_s11 }
  0x34   : > { %s4245_s23 = scalar_lea.vmem (!%p306_p10), [#allocation6], %s3293_s21  ;;  %s3331_s25 = smul.u32 (!%p306_p10), 40, %s3900_s11 }
  0x35   : > { %v3910_v40 = vmov 0   ;;  %v3911_v41 = vmov 0.0   ;;  %v4068_v42 = vld [vmem:[%s4065_s15 + $0xe4] ss:$16 sps:$4 sm:$0xff]   ;;  %v4071_v43 = vld [vmem:[%s4065_s15 + $0xec] ss:$16 sps:$4 sm:$0xff]   ;;  %v653_v14 = vlaneseq  ;;  %s699_s24 = scalar_lea.vmem %s4245_s23, %s364_s22 [#allocation6]  ;;  %s3199_s7 = scalar_lea.vmem %s4245_s23, %s3900_s11 [#allocation6] }
  0x36   : > { %594 = vmatprep.mubr.bf16.mxu0 %v3910_v40  ;;  %635 = vmatprep.mubr.bf16.mxu1 %v3910_v40  ;;  %360 = vst [vmem:[#allocation2] sm:$0x3] %v3911_v41  ;;  %361 = vst [vmem:[#allocation3] sm:$0x3] %v3911_v41  ;;  %v4075_v44 = vld [vmem:[%s4065_s15 + $0xe0] ss:$16 sps:$4 sm:$0xff]   ;;  %s3184_s26 = scalar_lea.vmem %s4235_s17, %s3331_s25 [#allocation4] }
  0x37   : > { %562 = vmatprep.subr.bf16.mxu0 %v4068_v42  ;;  %v4078_v45 = vld [vmem:[%s4065_s15 + $0xe8] ss:$16 sps:$4 sm:$0xff]   ;;  %603 = vmatprep.subr.bf16.mxu1 %v4071_v43  ;;  %v4082_v46 = vld [vmem:[%s4065_s15 + $0xc4] ss:$16 sps:$4 sm:$0xff]   ;;  %v4087_v47 = vld [vmem:[%s4065_s15 + $0xcc] ss:$16 sps:$4 sm:$0xff]  }
  0x38   : > { %563 = vmatpush1.bf16.msra.mxu0 %v4075_v44  ;;  %604 = vmatpush1.bf16.msra.mxu1 %v4078_v45  ;;  %v4090_v48 = vld [vmem:[%s4065_s15 + $0xc0] ss:$16 sps:$4 sm:$0xff]   ;;  %v4094_v49 = vld [vmem:[%s4065_s15 + $0xc8] ss:$16 sps:$4 sm:$0xff]   ;;  %v4098_v50 = vld [vmem:[%s4065_s15 + $0xa4] ss:$16 sps:$4 sm:$0xff]  }
  0x39   : > { %564 = vmatprep.subr.bf16.mxu0 %v4082_v46  ;;  %605 = vmatprep.subr.bf16.mxu1 %v4087_v47  ;;  %v4101_v51 = vld [vmem:[%s4065_s15 + $0xac] ss:$16 sps:$4 sm:$0xff]   ;;  %v4104_v52 = vld [vmem:[%s4065_s15 + $0xa0] ss:$16 sps:$4 sm:$0xff]   ;;  %v4107_v53 = vld [vmem:[%s4065_s15 + $0xa8] ss:$16 sps:$4 sm:$0xff]  }
  0x3a   : > { %v4112_v54 = vld [vmem:[%s4065_s15 + $0x84] ss:$16 sps:$4 sm:$0xff]   ;;  %v4117_v55 = vld [vmem:[%s4065_s15 + $0x8c] ss:$16 sps:$4 sm:$0xff]   ;;  %v4120_v56 = vld [vmem:[%s4065_s15 + $0x80] ss:$16 sps:$4 sm:$0xff]  }
  0x3b   : > { %v4125_v57 = vld [vmem:[%s4065_s15 + $0x88] ss:$16 sps:$4 sm:$0xff]   ;;  %v4128_v58 = vld [vmem:[%s4065_s15 + $0x64] ss:$16 sps:$4 sm:$0xff]   ;;  %v4133_v59 = vld [vmem:[%s4065_s15 + $0x6c] ss:$16 sps:$4 sm:$0xff]  }
  0x3c   : > { %565 = vmatpush1.bf16.msra.mxu0 %v4090_v48  ;;  %606 = vmatpush1.bf16.msra.mxu1 %v4094_v49  ;;  %v4136_v60 = vld [vmem:[%s4065_s15 + $0x60] ss:$16 sps:$4 sm:$0xff]   ;;  %v4139_v61 = vld [vmem:[%s4065_s15 + $0x68] ss:$16 sps:$4 sm:$0xff]   ;;  %v4144_v62 = vld [vmem:[%s4065_s15 + $0x44] ss:$16 sps:$4 sm:$0xff]  }
  0x3d   : > { %566 = vmatprep.subr.bf16.mxu0 %v4098_v50  ;;  %607 = vmatprep.subr.bf16.mxu1 %v4101_v51  ;;  %v4149_v63 = vld [vmem:[%s4065_s15 + $0x4c] ss:$16 sps:$4 sm:$0xff]   ;;  %v4154_v0 = vld [vmem:[%s4065_s15 + $0x40] ss:$16 sps:$4 sm:$0xff]   ;;  %v4157_v1 = vld [vmem:[%s4065_s15 + $0x48] ss:$16 sps:$4 sm:$0xff]  }
  0x3e   : > { %v4162_v2 = vld [vmem:[%s4065_s15 + $0x24] ss:$16 sps:$4 sm:$0xff]   ;;  %v4165_v3 = vld [vmem:[%s4065_s15 + $0x2c] ss:$16 sps:$4 sm:$0xff]   ;;  %v4168_v4 = vld [vmem:[%s4065_s15 + $0x20] ss:$16 sps:$4 sm:$0xff]  }
  0x3f   : > { %v4171_v5 = vld [vmem:[%s4065_s15 + $0x28] ss:$16 sps:$4 sm:$0xff]   ;;  %v4174_v6 = vld [vmem:[%s4065_s15 + $0x4] ss:$16 sps:$4 sm:$0xff]   ;;  %v4177_v7 = vld [vmem:[%s4065_s15 + $0xc] ss:$16 sps:$4 sm:$0xff]  }
  0x40   : > { %567 = vmatpush1.bf16.msra.mxu0 %v4104_v52  ;;  %608 = vmatpush1.bf16.msra.mxu1 %v4107_v53  ;;  %v4184_v8 = vld [vmem:[%s4065_s15] ss:$16 sps:$4 sm:$0xff]   ;;  %v4187_v9 = vld [vmem:[%s4065_s15 + $0x8] ss:$16 sps:$4 sm:$0xff]   ;;  %v362_v10 = vld [vmem:[#allocation2] sm:$0x3] }
  0x41   : > { %568 = vmatprep.subr.bf16.mxu0 %v4112_v54  ;;  %609 = vmatprep.subr.bf16.mxu1 %v4117_v55  ;;  %v369_v11 = vpack.c.bf16 %v362_v10, %v362_v10  ;;  %v3912_v12 = vmov 1983009808   ;;  %v654_v16 = vshrl.u32 %v653_v14, 7  ;;  %v368_v28 = vld [vmem:[%s367_s18] sm:$0xff]  ;;  %s3186_s27 = smul.u32 5, %s3900_s11  ;;  %s3407_s5 = sshll.u32 %s3900_s11, 3 }
  0x42   : > { %v651_v13 = vunpack.c.l.s4 %v3912_v12  ;;  %v363_v14 = vld [vmem:[#allocation3] sm:$0x3]  ;;  %s3369_s29 = smul.u32 24, %s3900_s11  ;;  %s3197_s6 = scalar_lea.vmem %s4235_s17, %s3407_s5 [#allocation4] }
  0x43   : > { %s3187_s28 = scalar_lea.vmem %s4245_s23, %s3186_s27 [#allocation6]  ;;  %s3193_s3 = smul.u32 3, %s3900_s11 }
  0x44   : > { %569 = vmatpush1.bf16.msra.mxu0 %v4120_v56  ;;  %610 = vmatpush1.bf16.msra.mxu1 %v4125_v57  ;;  %v652_v15 = vunpack.c.0.s8 %v651_v13  ;;  %s3191_s30 = scalar_lea.vmem %s4235_s17, %s3369_s29 [#allocation4]  ;;  %s1711_s8 = ssub.s32 4, %s3900_s11 }
  0x45   : > { %570 = vmatprep.subr.bf16.mxu0 %v4128_v58  ;;  %611 = vmatprep.subr.bf16.mxu1 %v4133_v59  ;;  %s3194_s4 = scalar_lea.vmem %s4245_s23, %s3193_s3 [#allocation6]  ;;  %s2045_s16 = scalar_lea.vmem %s4245_s23, %s1711_s8 [#allocation6] }
  0x46   : > { %v4233_v19 = vsub.s32 %v652_v15, %v654_v16  ;;  %s3482_s18 = smul.u32 4294967272, %s3900_s11 }
  0x47   : > { %s3208_s22 = smul.u32 4294967293, %s3900_s11 }
  0x48   : > { %571 = vmatpush1.bf16.msra.mxu0 %v4136_v60  ;;  %612 = vmatpush1.bf16.msra.mxu1 %v4139_v61  ;;  %s3206_s21 = scalar_lea.vmem %s4235_s17, %s3482_s18 [#allocation4]  ;;  %s3520_s25 = smul.u32 4294967256, %s3900_s11 }
  0x49   : > { %572 = vmatprep.subr.bf16.mxu0 %v4144_v62  ;;  %613 = vmatprep.subr.bf16.mxu1 %v4149_v63  ;;  %s3215_s27 = smul.u32 4294967291, %s3900_s11 }
  0x4a   : > { %s3558_s29 = smul.u32 4294967240, %s3900_s11 }
  0x4c   : > { %573 = vmatpush1.bf16.msra.mxu0 %v4154_v0  ;;  %614 = vmatpush1.bf16.msra.mxu1 %v4157_v1 }
  0x4d   : > { %574 = vmatprep.subr.bf16.mxu0 %v4162_v2  ;;  %615 = vmatprep.subr.bf16.mxu1 %v4165_v3 }
  0x50   : > { %575 = vmatpush1.bf16.msra.mxu0 %v4168_v4  ;;  %616 = vmatpush1.bf16.msra.mxu1 %v4171_v5 }
  0x51   : > { %576 = vmatprep.subr.bf16.mxu0 %v4174_v6  ;;  %617 = vmatprep.subr.bf16.mxu1 %v4177_v7 }
  0x54   : > { %577 = vmatpush1.bf16.msra.mxu0 %v4184_v8  ;;  %618 = vmatpush1.bf16.msra.mxu1 %v4187_v9 }
  0x55   : > { %899 = vmatprep.subr.bf16.mxu0 %v4068_v42  ;;  %940 = vmatprep.subr.bf16.mxu1 %v4071_v43 }
  0x57   : > { %595 = vmatmul.mubr.bf16.vlgmr.msra.gmra.mxu0 %v369_v11  ;;  %636 = vmatmul.mubr.bf16.vlgmr.msra.gmra.mxu1 %v369_v11 }
  0x58   : > { %900 = vmatpush1.bf16.msra.mxu0 %v4075_v44  ;;  %941 = vmatpush1.bf16.msra.mxu1 %v4078_v45 }
  0x59   : > { %901 = vmatprep.subr.bf16.mxu0 %v4082_v46  ;;  %942 = vmatprep.subr.bf16.mxu1 %v4087_v47 }
  0x5a   : > { %931 = vmatprep.mubr.bf16.mxu0 %v3910_v40  ;;  %972 = vmatprep.mubr.bf16.mxu1 %v3910_v40 }
  0x5c   : > { %902 = vmatpush1.bf16.msra.mxu0 %v4090_v48  ;;  %943 = vmatpush1.bf16.msra.mxu1 %v4094_v49 }
  0x5d   : > { %903 = vmatprep.subr.bf16.mxu0 %v4098_v50  ;;  %944 = vmatprep.subr.bf16.mxu1 %v4101_v51 }
  0x60   : > { %904 = vmatpush1.bf16.msra.mxu0 %v4104_v52  ;;  %945 = vmatpush1.bf16.msra.mxu1 %v4107_v53 }
  0x61   : > { %905 = vmatprep.subr.bf16.mxu0 %v4112_v54  ;;  %946 = vmatprep.subr.bf16.mxu1 %v4117_v55 }
  0x64   : > { %906 = vmatpush1.bf16.msra.mxu0 %v4120_v56  ;;  %947 = vmatpush1.bf16.msra.mxu1 %v4125_v57 }
  0x65   : > { %907 = vmatprep.subr.bf16.mxu0 %v4128_v58  ;;  %948 = vmatprep.subr.bf16.mxu1 %v4133_v59 }
  0x68   : > { %908 = vmatpush1.bf16.msra.mxu0 %v4136_v60  ;;  %949 = vmatpush1.bf16.msra.mxu1 %v4139_v61 }
  0x69   : > { %909 = vmatprep.subr.bf16.mxu0 %v4144_v62  ;;  %950 = vmatprep.subr.bf16.mxu1 %v4149_v63 }
  0x6c   : > { %910 = vmatpush1.bf16.msra.mxu0 %v4154_v0  ;;  %951 = vmatpush1.bf16.msra.mxu1 %v4157_v1 }
  0x6d   : > { %911 = vmatprep.subr.bf16.mxu0 %v4162_v2  ;;  %952 = vmatprep.subr.bf16.mxu1 %v4165_v3 }
  0x70   : > { %912 = vmatpush1.bf16.msra.mxu0 %v4168_v4  ;;  %953 = vmatpush1.bf16.msra.mxu1 %v4171_v5 }
  0x71   : > { %913 = vmatprep.subr.bf16.mxu0 %v4174_v6  ;;  %954 = vmatprep.subr.bf16.mxu1 %v4177_v7 }
  0x74   : > { %914 = vmatpush1.bf16.msra.mxu0 %v4184_v8  ;;  %955 = vmatpush1.bf16.msra.mxu1 %v4187_v9 }
  0x75   : > { %1236 = vmatprep.subr.bf16.mxu0 %v4068_v42  ;;  %1277 = vmatprep.subr.bf16.mxu1 %v4071_v43 }
 0x117   : > { %v596_v17 = vpop.f32.mrf.mxu0  ;;  %v637_v18 = vpop.f32.mrf.mxu1 }
 0x119   : > { %v598_v20 = vpop.f32.mrf.mxu0  ;;  %v639_v21 = vpop.f32.mrf.mxu1 }
 0x11a   : > { %v648_v22 = vcombine.low %v596_v17, %v598_v20  ;;  %v649_v23 = vcombine.low %v637_v18, %v639_v21 }
 0x11b   : > { %v600_v24 = vpop.f32.mrf.mxu0  ;;  %v641_v25 = vpop.f32.mrf.mxu1 }
 0x11c   : > { %v656_v26 = vrot.slane %v648_v22, %v4233_v19  ;;  %v663_v27 = vrot.slane %v649_v23, %v4233_v19 }
 0x11d   : > { %v601_v29 = vpop.f32.mrf.mxu0  ;;  %v642_v30 = vpop.f32.mrf.mxu1 }
 0x11e   : > { %v664_v31 = vcombine.low %v656_v26, %v663_v27 }
 0x120   : > { %v666_v32 = vadd.f32 %v664_v31, %v368_v28 }
 0x122   : > { %v3328_v33 = vmul.f32 -1.442695, %v666_v32  ;;  %v674_v34 = vrot.slane %v666_v32, 2  ;;  %v685_v36 = vrot.slane %v666_v32, 6  ;;  %v682_v39 = vrot.slane %v666_v32, 4 }
 0x124   : > { %3742 = vpow2.f32 %v3328_v33  ;;  %v3329_v35 = vmul.f32 -1.442695, %v674_v34  ;;  %v3330_v37 = vmul.f32 -1.442695, %v685_v36  ;;  %v3332_v36 = vld [vmem:[%s3184_s26 + $0x8] sm:$0xff]  ;;  %s3213_s26 = scalar_lea.vmem %s4235_s17, %s3520_s25 [#allocation4] }
 0x126   : > { %3744 = vpow2.f32 %v3329_v35 }
 0x127   : > { %3746 = vpow2.f32 %v3330_v37 }
 0x131   : > { %v3743_v38 = vpop.eup %3742 }
 0x132   : > { %v670_v41 = vadd.f32 1.0, %v3743_v38 }
 0x133   : > { %v3745_v10 = vpop.eup %3744 }
 0x134   : > { %3748 = vrcp.f32 %v670_v41  ;;  %v679_v11 = vadd.f32 1.0, %v3745_v10  ;;  %v3747_v12 = vpop.eup %3746 }
 0x135   : > { %3750 = vtanh.f32 %v682_v39  ;;  %v690_v17 = vadd.f32 1.0, %v3747_v12 }
 0x136   : > { %3752 = vrcp.f32 %v679_v11 }
 0x137   : > { %3754 = vrcp.f32 %v690_v17 }
 0x141   : > { %v3749_v13 = vpop.eup %3748 }
 0x142   : > { %v3751_v15 = vpop.eup %3750 }
 0x143   : > { %v3753_v16 = vpop.eup %3752  ;;  %v694_v20 = vmul.f32 %v3751_v15, %v3749_v13 }
 0x144   : > { %v693_v18 = vmul.f32 %v3753_v16, %v363_v14  ;;  %v3755_v22 = vpop.eup %3754 }
 0x146   : > { %v4240_v21 = vadd.f32 %v694_v20, %v693_v18 }
 0x148   : > { %3756 = vtanh.f32 %v4240_v21 }
 0x155   : > { %v3757_v23 = vpop.eup %3756 }
 0x156   : > { %v697_v24 = vmul.f32 %v3757_v23, %v3755_v22 }
 0x158   : > { %v698_v25 = vpack.c.bf16 %v697_v24, %v697_v24 }
 0x15a   : > { %700 = vst [vmem:[%s699_s24] sm:$0x1] %v698_v25  ;;  %932 = vmatmul.mubr.bf16.vlgmr.msra.gmra.mxu0 %v698_v25  ;;  %973 = vmatmul.mubr.bf16.vlgmr.msra.gmra.mxu1 %v698_v25  ;;  %s3209_s24 = scalar_lea.vmem %s4245_s23, %s3208_s22 [#allocation6] }
 0x15b   : > { %1237 = vmatpush1.bf16.msra.mxu0 %v4075_v44  ;;  %1278 = vmatpush1.bf16.msra.mxu1 %v4078_v45 }
 0x15c   : > { %1238 = vmatprep.subr.bf16.mxu0 %v4082_v46  ;;  %1279 = vmatprep.subr.bf16.mxu1 %v4087_v47 }
 0x15d   : > { %1268 = vmatprep.mubr.bf16.mxu0 %v3910_v40  ;;  %1309 = vmatprep.mubr.bf16.mxu1 %v3910_v40 }
 0x15f   : > { %1239 = vmatpush1.bf16.msra.mxu0 %v4090_v48  ;;  %1280 = vmatpush1.bf16.msra.mxu1 %v4094_v49 }
 0x160   : > { %1240 = vmatprep.subr.bf16.mxu0 %v4098_v50  ;;  %1281 = vmatprep.subr.bf16.mxu1 %v4101_v51 }
 0x163   : > { %1241 = vmatpush1.bf16.msra.mxu0 %v4104_v52  ;;  %1282 = vmatpush1.bf16.msra.mxu1 %v4107_v53 }
 0x164   : > { %1242 = vmatprep.subr.bf16.mxu0 %v4112_v54  ;;  %1283 = vmatprep.subr.bf16.mxu1 %v4117_v55 }
 0x167   : > { %1243 = vmatpush1.bf16.msra.mxu0 %v4120_v56  ;;  %1284 = vmatpush1.bf16.msra.mxu1 %v4125_v57 }
 0x168   : > { %1244 = vmatprep.subr.bf16.mxu0 %v4128_v58  ;;  %1285 = vmatprep.subr.bf16.mxu1 %v4133_v59 }
 0x16b   : > { %1245 = vmatpush1.bf16.msra.mxu0 %v4136_v60  ;;  %1286 = vmatpush1.bf16.msra.mxu1 %v4139_v61 }
 0x16c   : > { %1246 = vmatprep.subr.bf16.mxu0 %v4144_v62  ;;  %1287 = vmatprep.subr.bf16.mxu1 %v4149_v63 }
 0x16f   : > { %1247 = vmatpush1.bf16.msra.mxu0 %v4154_v0  ;;  %1288 = vmatpush1.bf16.msra.mxu1 %v4157_v1 }
 0x170   : > { %1248 = vmatprep.subr.bf16.mxu0 %v4162_v2  ;;  %1289 = vmatprep.subr.bf16.mxu1 %v4165_v3 }
 0x173   : > { %1249 = vmatpush1.bf16.msra.mxu0 %v4168_v4  ;;  %1290 = vmatpush1.bf16.msra.mxu1 %v4171_v5 }
 0x174   : > { %1250 = vmatprep.subr.bf16.mxu0 %v4174_v6  ;;  %1291 = vmatprep.subr.bf16.mxu1 %v4177_v7 }
 0x177   : > { %1251 = vmatpush1.bf16.msra.mxu0 %v4184_v8  ;;  %1292 = vmatpush1.bf16.msra.mxu1 %v4187_v9 }
 0x178   : > { %1572 = vmatprep.subr.bf16.mxu0 %v4068_v42  ;;  %1613 = vmatprep.subr.bf16.mxu1 %v4071_v43 }
 0x21a   : > { %v933_v26 = vpop.f32.mrf.mxu0  ;;  %v974_v27 = vpop.f32.mrf.mxu1 }
 0x21c   : > { %v935_v28 = vpop.f32.mrf.mxu0  ;;  %v976_v29 = vpop.f32.mrf.mxu1 }
 0x21d   : > { %v985_v30 = vcombine.low %v933_v26, %v935_v28  ;;  %v986_v31 = vcombine.low %v974_v27, %v976_v29 }
 0x21e   : > { %v937_v32 = vpop.f32.mrf.mxu0  ;;  %v978_v33 = vpop.f32.mrf.mxu1 }
 0x21f   : > { %v993_v34 = vrot.slane %v985_v30, %v4233_v19  ;;  %v1000_v35 = vrot.slane %v986_v31, %v4233_v19 }
 0x220   : > { %v938_v37 = vpop.f32.mrf.mxu0  ;;  %v979_v38 = vpop.f32.mrf.mxu1 }
 0x221   : > { %v1001_v42 = vcombine.low %v993_v34, %v1000_v35  ;;  %v4337_v38 = vld [vmem:[%s4065_s15 + $0xe0] ss:$16 sps:$4 sm:$0xff]  }
 0x223   : > { %v1003_v39 = vadd.f32 %v3332_v36, %v1001_v42  ;;  %v4340_v42 = vld [vmem:[%s4065_s15 + $0xe4] ss:$16 sps:$4 sm:$0xff]  }
 0x225   : > { %v3365_v43 = vmul.f32 -1.442695, %v1003_v39  ;;  %v1011_v41 = vrot.slane %v1003_v39, 2  ;;  %v1022_v11 = vrot.slane %v1003_v39, 6  ;;  %v1019_v14 = vrot.slane %v1003_v39, 4 }
 0x226   : > { %v4343_v39 = vld [vmem:[%s4065_s15 + $0xe8] ss:$16 sps:$4 sm:$0xff]  }
 0x227   : > { %3758 = vpow2.f32 %v3365_v43  ;;  %v3366_v10 = vmul.f32 -1.442695, %v1011_v41  ;;  %v3367_v12 = vmul.f32 -1.442695, %v1022_v11  ;;  %v4346_v43 = vld [vmem:[%s4065_s15 + $0xec] ss:$16 sps:$4 sm:$0xff]  }
 0x228   : > { %v4349_v41 = vld [vmem:[%s4065_s15 + $0xc4] ss:$16 sps:$4 sm:$0xff]   ;;  %v4358_v11 = vld [vmem:[%s4065_s15 + $0xc0] ss:$16 sps:$4 sm:$0xff]  }
 0x229   : > { %3760 = vpow2.f32 %v3366_v10  ;;  %v4353_v10 = vld [vmem:[%s4065_s15 + $0xcc] ss:$16 sps:$4 sm:$0xff]  }
 0x22a   : > { %3762 = vpow2.f32 %v3367_v12  ;;  %v4363_v12 = vld [vmem:[%s4065_s15 + $0xc8] ss:$16 sps:$4 sm:$0xff]  }
 0x234   : > { %v3759_v13 = vpop.eup %3758 }
 0x235   : > { %v1007_v15 = vadd.f32 1.0, %v3759_v13  ;;  %v4366_v13 = vld [vmem:[%s4065_s15 + $0xa4] ss:$16 sps:$4 sm:$0xff]  }
 0x236   : > { %v3761_v16 = vpop.eup %3760 }
 0x237   : > { %3764 = vrcp.f32 %v1007_v15  ;;  %v1016_v17 = vadd.f32 1.0, %v3761_v16  ;;  %v3763_v18 = vpop.eup %3762  ;;  %v4374_v15 = vld [vmem:[%s4065_s15 + $0xa0] ss:$16 sps:$4 sm:$0xff]   ;;  %v4379_v16 = vld [vmem:[%s4065_s15 + $0xa8] ss:$16 sps:$4 sm:$0xff]  }
 0x238   : > { %3766 = vtanh.f32 %v1019_v14  ;;  %v1027_v24 = vadd.f32 1.0, %v3763_v18  ;;  %v4370_v14 = vld [vmem:[%s4065_s15 + $0xac] ss:$16 sps:$4 sm:$0xff]  }
 0x239   : > { %3768 = vrcp.f32 %v1016_v17  ;;  %v4382_v17 = vld [vmem:[%s4065_s15 + $0x84] ss:$16 sps:$4 sm:$0xff]   ;;  %v4386_v18 = vld [vmem:[%s4065_s15 + $0x8c] ss:$16 sps:$4 sm:$0xff]  }
 0x23a   : > { %3770 = vrcp.f32 %v1027_v24  ;;  %v4402_v24 = vld [vmem:[%s4065_s15 + $0x6c] ss:$16 sps:$4 sm:$0xff]  }
 0x244   : > { %v3765_v20 = vpop.eup %3764 }
 0x245   : > { %v3767_v22 = vpop.eup %3766 }
 0x246   : > { %v3769_v23 = vpop.eup %3768  ;;  %v1031_v26 = vmul.f32 %v3767_v22, %v3765_v20  ;;  %v4390_v20 = vld [vmem:[%s4065_s15 + $0x80] ss:$16 sps:$4 sm:$0xff]   ;;  %v4395_v22 = vld [vmem:[%s4065_s15 + $0x88] ss:$16 sps:$4 sm:$0xff]  }
 0x247   : > { %v1030_v25 = vmul.f32 %v3769_v23, %v4240_v21  ;;  %v3771_v28 = vpop.eup %3770  ;;  %v4398_v23 = vld [vmem:[%s4065_s15 + $0x64] ss:$16 sps:$4 sm:$0xff]  }
 0x249   : > { %v4287_v27 = vadd.f32 %v1031_v26, %v1030_v25  ;;  %v4406_v25 = vld [vmem:[%s4065_s15 + $0x60] ss:$16 sps:$4 sm:$0xff]   ;;  %v4411_v26 = vld [vmem:[%s4065_s15 + $0x68] ss:$16 sps:$4 sm:$0xff]  }
 0x24b   : > { %3772 = vtanh.f32 %v4287_v27 }
 0x258   : > { %v3773_v29 = vpop.eup %3772 }
 0x259   : > { %v1034_v30 = vmul.f32 %v3773_v29, %v3771_v28  ;;  %v4418_v28 = vld [vmem:[%s4065_s15 + $0x4c] ss:$16 sps:$4 sm:$0xff]   ;;  %v4422_v29 = vld [vmem:[%s4065_s15 + $0x40] ss:$16 sps:$4 sm:$0xff]  }
 0x25b   : > { %v1035_v31 = vpack.c.bf16 %v1034_v30, %v1034_v30  ;;  %v4427_v30 = vld [vmem:[%s4065_s15 + $0x48] ss:$16 sps:$4 sm:$0xff]  }
 0x25d   : > { %3368 = vst [vmem:[%s3187_s28 + $0x1] sm:$0x1] %v1035_v31  ;;  %1269 = vmatmul.mubr.bf16.vlgmr.msra.gmra.mxu0 %v1035_v31  ;;  %1310 = vmatmul.mubr.bf16.vlgmr.msra.gmra.mxu1 %v1035_v31  ;;  %v4430_v31 = vld [vmem:[%s4065_s15 + $0x24] ss:$16 sps:$4 sm:$0xff]   ;;  %s3216_s28 = scalar_lea.vmem %s4245_s23, %s3215_s27 [#allocation6] }
 0x25e   : > { %1573 = vmatpush1.bf16.msra.mxu0 %v4075_v44  ;;  %1614 = vmatpush1.bf16.msra.mxu1 %v4078_v45 }
 0x25f   : > { %1574 = vmatprep.subr.bf16.mxu0 %v4082_v46  ;;  %1615 = vmatprep.subr.bf16.mxu1 %v4087_v47 }
 0x260   : > { %1604 = vmatprep.mubr.bf16.mxu0 %v3910_v40  ;;  %1645 = vmatprep.mubr.bf16.mxu1 %v3910_v40 }
 0x262   : > { %1575 = vmatpush1.bf16.msra.mxu0 %v4090_v48  ;;  %1616 = vmatpush1.bf16.msra.mxu1 %v4094_v49 }
 0x263   : > { %1576 = vmatprep.subr.bf16.mxu0 %v4098_v50  ;;  %1617 = vmatprep.subr.bf16.mxu1 %v4101_v51 }
 0x266   : > { %1577 = vmatpush1.bf16.msra.mxu0 %v4104_v52  ;;  %1618 = vmatpush1.bf16.msra.mxu1 %v4107_v53 }
 0x267   : > { %1578 = vmatprep.subr.bf16.mxu0 %v4112_v54  ;;  %1619 = vmatprep.subr.bf16.mxu1 %v4117_v55  ;;  %v3370_v54 = vld [vmem:[%s3191_s30 + $0x10] sm:$0xff]  ;;  %s3220_s30 = scalar_lea.vmem %s4235_s17, %s3558_s29 [#allocation4] }
 0x26a   : > { %1579 = vmatpush1.bf16.msra.mxu0 %v4120_v56  ;;  %1620 = vmatpush1.bf16.msra.mxu1 %v4125_v57 }
 0x26b   : > { %1580 = vmatprep.subr.bf16.mxu0 %v4128_v58  ;;  %1621 = vmatprep.subr.bf16.mxu1 %v4133_v59 }
 0x26e   : > { %1581 = vmatpush1.bf16.msra.mxu0 %v4136_v60  ;;  %1622 = vmatpush1.bf16.msra.mxu1 %v4139_v61 }
 0x26f   : > { %1582 = vmatprep.subr.bf16.mxu0 %v4144_v62  ;;  %1623 = vmatprep.subr.bf16.mxu1 %v4149_v63 }
 0x272   : > { %1583 = vmatpush1.bf16.msra.mxu0 %v4154_v0  ;;  %1624 = vmatpush1.bf16.msra.mxu1 %v4157_v1 }
 0x273   : > { %1584 = vmatprep.subr.bf16.mxu0 %v4162_v2  ;;  %1625 = vmatprep.subr.bf16.mxu1 %v4165_v3 }
 0x276   : > { %1585 = vmatpush1.bf16.msra.mxu0 %v4168_v4  ;;  %1626 = vmatpush1.bf16.msra.mxu1 %v4171_v5 }
 0x277   : > { %1586 = vmatprep.subr.bf16.mxu0 %v4174_v6  ;;  %1627 = vmatprep.subr.bf16.mxu1 %v4177_v7 }
 0x27a   : > { %1587 = vmatpush1.bf16.msra.mxu0 %v4184_v8  ;;  %1628 = vmatpush1.bf16.msra.mxu1 %v4187_v9 }
 0x27b   : > { %1908 = vmatprep.subr.bf16.mxu0 %v4340_v42  ;;  %1949 = vmatprep.subr.bf16.mxu1 %v4346_v43 }
 0x31d   : > { %v1270_v44 = vpop.f32.mrf.mxu0  ;;  %v1311_v45 = vpop.f32.mrf.mxu1 }
 0x31f   : > { %v1272_v46 = vpop.f32.mrf.mxu0  ;;  %v1313_v47 = vpop.f32.mrf.mxu1 }
 0x320   : > { %v1322_v48 = vcombine.low %v1270_v44, %v1272_v46  ;;  %v1323_v49 = vcombine.low %v1311_v45, %v1313_v47  ;;  %v4434_v44 = vld [vmem:[%s4065_s15 + $0x2c] ss:$16 sps:$4 sm:$0xff]   ;;  %v4438_v45 = vld [vmem:[%s4065_s15 + $0x20] ss:$16 sps:$4 sm:$0xff]   ;;  %v4443_v46 = vld [vmem:[%s4065_s15 + $0x28] ss:$16 sps:$4 sm:$0xff]  }
 0x321   : > { %v1274_v50 = vpop.f32.mrf.mxu0  ;;  %v1315_v51 = vpop.f32.mrf.mxu1  ;;  %v4446_v47 = vld [vmem:[%s4065_s15 + $0x4] ss:$16 sps:$4 sm:$0xff]  }
 0x322   : > { %v1330_v52 = vrot.slane %v1322_v48, %v4233_v19  ;;  %v1337_v53 = vrot.slane %v1323_v49, %v4233_v19  ;;  %v4450_v48 = vld [vmem:[%s4065_s15 + $0xc] ss:$16 sps:$4 sm:$0xff]   ;;  %v4454_v49 = vld [vmem:[%s4065_s15] ss:$16 sps:$4 sm:$0xff]   ;;  %v4459_v50 = vld [vmem:[%s4065_s15 + $0x8] ss:$16 sps:$4 sm:$0xff]  }
 0x323   : > { %v1275_v55 = vpop.f32.mrf.mxu0  ;;  %v1316_v56 = vpop.f32.mrf.mxu1 }
 0x324   : > { %v1338_v57 = vcombine.low %v1330_v52, %v1337_v53 }
 0x326   : > { %v1340_v58 = vadd.f32 %v3370_v54, %v1338_v57 }
 0x328   : > { %v3403_v59 = vmul.f32 -1.442695, %v1340_v58  ;;  %v1348_v60 = vrot.slane %v1340_v58, 2  ;;  %v1359_v62 = vrot.slane %v1340_v58, 6  ;;  %v1356_v1 = vrot.slane %v1340_v58, 4 }
 0x32a   : > { %3774 = vpow2.f32 %v3403_v59  ;;  %v3404_v61 = vmul.f32 -1.442695, %v1348_v60  ;;  %v3405_v63 = vmul.f32 -1.442695, %v1359_v62 }
 0x32c   : > { %3776 = vpow2.f32 %v3404_v61  ;;  %v3408_v61 = vld [vmem:[%s3197_s6 + $0x18] sm:$0xff]  ;;  %s3074_s6 = scalar_lea.vmem (%p3967_p6), %s4643_s2, %s3900_s11 }
 0x32d   : > { %3778 = vpow2.f32 %v3405_v63 }
 0x337   : > { %v3775_v0 = vpop.eup %3774 }
 0x338   : > { %v1344_v2 = vadd.f32 1.0, %v3775_v0 }
 0x339   : > { %v3777_v3 = vpop.eup %3776 }
 0x33a   : > { %3780 = vrcp.f32 %v1344_v2  ;;  %v1353_v4 = vadd.f32 1.0, %v3777_v3  ;;  %v3779_v5 = vpop.eup %3778 }
 0x33b   : > { %3782 = vtanh.f32 %v1356_v1  ;;  %v1364_v9 = vadd.f32 1.0, %v3779_v5 }
 0x33c   : > { %3784 = vrcp.f32 %v1353_v4 }
 0x33d   : > { %3786 = vrcp.f32 %v1364_v9 }
 0x347   : > { %v3781_v6 = vpop.eup %3780 }
 0x348   : > { %v3783_v7 = vpop.eup %3782 }
 0x349   : > { %v3785_v8 = vpop.eup %3784  ;;  %v1368_v32 = vmul.f32 %v3783_v7, %v3781_v6 }
 0x34a   : > { %v1367_v21 = vmul.f32 %v3785_v8, %v4287_v27  ;;  %v3787_v34 = vpop.eup %3786  ;;  %v4414_v27 = vld [vmem:[%s4065_s15 + $0x44] ss:$16 sps:$4 sm:$0xff]   ;;  %s3602_s15 = sshll.u32 %s1711_s8, 3 }
 0x34b   : > { %s1714_s9 = scalar_lea.vmem %s4235_s17, %s3602_s15 [#allocation4]  ;;  %s3222_s17 = smul.u32 4294967289, %s3900_s11 }
 0x34c   : > { %v4329_v33 = vadd.f32 %v1368_v32, %v1367_v21 }
 0x34d   : > { %s3223_s3 = scalar_lea.vmem %s4245_s23, %s3222_s17 [#allocation6] }
 0x34e   : > { %3788 = vtanh.f32 %v4329_v33 }
 0x35b   : > { %v3789_v35 = vpop.eup %3788 }
 0x35c   : > { %v1371_v36 = vmul.f32 %v3789_v35, %v3787_v34 }
 0x35e   : > { %v1372_v37 = vpack.c.bf16 %v1371_v36, %v1371_v36 }
 0x360   : > { %3406 = vst [vmem:[%s3194_s4 + $0x2] sm:$0x1] %v1372_v37  ;;  %1605 = vmatmul.mubr.bf16.vlgmr.msra.gmra.mxu0 %v1372_v37  ;;  %1646 = vmatmul.mubr.bf16.vlgmr.msra.gmra.mxu1 %v1372_v37 }
 0x361   : > { %1940 = vmatprep.mubr.bf16.mxu0 %v3910_v40  ;;  %1981 = vmatprep.mubr.bf16.mxu1 %v3910_v40 }
 0x362   : > { %1909 = vmatpush1.bf16.msra.mxu0 %v4337_v38  ;;  %1950 = vmatpush1.bf16.msra.mxu1 %v4343_v39 }
 0x363   : > { %1910 = vmatprep.subr.bf16.mxu0 %v4349_v41  ;;  %1951 = vmatprep.subr.bf16.mxu1 %v4353_v10 }
 0x366   : > { %1911 = vmatpush1.bf16.msra.mxu0 %v4358_v11  ;;  %1952 = vmatpush1.bf16.msra.mxu1 %v4363_v12 }
 0x367   : > { %1912 = vmatprep.subr.bf16.mxu0 %v4366_v13  ;;  %1953 = vmatprep.subr.bf16.mxu1 %v4370_v14 }
 0x36a   : > { %1913 = vmatpush1.bf16.msra.mxu0 %v4374_v15  ;;  %1954 = vmatpush1.bf16.msra.mxu1 %v4379_v16 }
 0x36b   : > { %1914 = vmatprep.subr.bf16.mxu0 %v4382_v17  ;;  %1955 = vmatprep.subr.bf16.mxu1 %v4386_v18 }
 0x36e   : > { %1915 = vmatpush1.bf16.msra.mxu0 %v4390_v20  ;;  %1956 = vmatpush1.bf16.msra.mxu1 %v4395_v22 }
 0x36f   : > { %1916 = vmatprep.subr.bf16.mxu0 %v4398_v23  ;;  %1957 = vmatprep.subr.bf16.mxu1 %v4402_v24 }
 0x372   : > { %1917 = vmatpush1.bf16.msra.mxu0 %v4406_v25  ;;  %1958 = vmatpush1.bf16.msra.mxu1 %v4411_v26 }
 0x373   : > { %1918 = vmatprep.subr.bf16.mxu0 %v4414_v27  ;;  %1959 = vmatprep.subr.bf16.mxu1 %v4418_v28 }
 0x376   : > { %1919 = vmatpush1.bf16.msra.mxu0 %v4422_v29  ;;  %1960 = vmatpush1.bf16.msra.mxu1 %v4427_v30 }
 0x377   : > { %1920 = vmatprep.subr.bf16.mxu0 %v4430_v31  ;;  %1961 = vmatprep.subr.bf16.mxu1 %v4434_v44 }
 0x37a   : > { %1921 = vmatpush1.bf16.msra.mxu0 %v4438_v45  ;;  %1962 = vmatpush1.bf16.msra.mxu1 %v4443_v46 }
 0x37b   : > { %1922 = vmatprep.subr.bf16.mxu0 %v4446_v47  ;;  %1963 = vmatprep.subr.bf16.mxu1 %v4450_v48 }
 0x37e   : > { %1923 = vmatpush1.bf16.msra.mxu0 %v4454_v49  ;;  %1964 = vmatpush1.bf16.msra.mxu1 %v4459_v50 }
 0x37f   : > { %2245 = vmatprep.subr.bf16.mxu0 %v4340_v42  ;;  %2286 = vmatprep.subr.bf16.mxu1 %v4346_v43 }
 0x420   : > { %v1606_v51 = vpop.f32.mrf.mxu0  ;;  %v1647_v52 = vpop.f32.mrf.mxu1 }
 0x422   : > { %v1608_v53 = vpop.f32.mrf.mxu0  ;;  %v1649_v54 = vpop.f32.mrf.mxu1 }
 0x423   : > { %v1658_v55 = vcombine.low %v1606_v51, %v1608_v53  ;;  %v1659_v56 = vcombine.low %v1647_v52, %v1649_v54 }
 0x424   : > { %v1610_v57 = vpop.f32.mrf.mxu0  ;;  %v1651_v58 = vpop.f32.mrf.mxu1 }
 0x425   : > { %v1666_v59 = vrot.slane %v1658_v55, %v4233_v19  ;;  %v1673_v60 = vrot.slane %v1659_v56, %v4233_v19 }
 0x426   : > { %v1611_v62 = vpop.f32.mrf.mxu0  ;;  %v1652_v63 = vpop.f32.mrf.mxu1 }
 0x427   : > { %v1674_v0 = vcombine.low %v1666_v59, %v1673_v60 }
 0x429   : > { %v1676_v1 = vadd.f32 %v3408_v61, %v1674_v0 }
 0x42b   : > { %v3441_v2 = vmul.f32 -1.442695, %v1676_v1  ;;  %v1684_v3 = vrot.slane %v1676_v1, 2  ;;  %v1695_v5 = vrot.slane %v1676_v1, 6  ;;  %v1692_v8 = vrot.slane %v1676_v1, 4 }
 0x42d   : > { %3790 = vpow2.f32 %v3441_v2  ;;  %v3442_v4 = vmul.f32 -1.442695, %v1684_v3  ;;  %v3443_v6 = vmul.f32 -1.442695, %v1695_v5 }
 0x42f   : > { %3792 = vpow2.f32 %v3442_v4  ;;  %v1715_v4 = vld [vmem:[%s1714_s9] sm:$0xff] }
 0x430   : > { %3794 = vpow2.f32 %v3443_v6 }
 0x43a   : > { %v3791_v7 = vpop.eup %3790 }
 0x43b   : > { %v1680_v9 = vadd.f32 1.0, %v3791_v7 }
 0x43c   : > { %v3793_v21 = vpop.eup %3792 }
 0x43d   : > { %3796 = vrcp.f32 %v1680_v9  ;;  %v1689_v32 = vadd.f32 1.0, %v3793_v21  ;;  %v3795_v34 = vpop.eup %3794 }
 0x43e   : > { %3798 = vtanh.f32 %v1692_v8  ;;  %v1700_v51 = vadd.f32 1.0, %v3795_v34 }
 0x43f   : > { %3800 = vrcp.f32 %v1689_v32 }
 0x440   : > { %3802 = vrcp.f32 %v1700_v51 }
 0x44a   : > { %v3797_v35 = vpop.eup %3796 }
 0x44b   : > { %v3799_v36 = vpop.eup %3798 }
 0x44c   : > { %v3801_v37 = vpop.eup %3800  ;;  %v1704_v53 = vmul.f32 %v3799_v36, %v3797_v35 }
 0x44d   : > { %v1703_v52 = vmul.f32 %v3801_v37, %v4329_v33  ;;  %v3803_v55 = vpop.eup %3802 }
 0x44f   : > { %v4471_v54 = vadd.f32 %v1704_v53, %v1703_v52 }
 0x451   : > { %3804 = vtanh.f32 %v4471_v54 }
 0x45e   : > { %v3805_v56 = vpop.eup %3804 }
 0x45f   : > { %v1707_v57 = vmul.f32 %v3805_v56, %v3803_v55 }
 0x461   : > { %v1708_v58 = vpack.c.bf16 %v1707_v57, %v1707_v57 }
 0x463   : > { %3444 = vst [vmem:[%s3199_s7 + $0x3] sm:$0x1] %v1708_v58  ;;  %1941 = vmatmul.mubr.bf16.vlgmr.msra.gmra.mxu0 %v1708_v58  ;;  %1982 = vmatmul.mubr.bf16.vlgmr.msra.gmra.mxu1 %v1708_v58 }
 0x464   : > { %2246 = vmatpush1.bf16.msra.mxu0 %v4337_v38  ;;  %2287 = vmatpush1.bf16.msra.mxu1 %v4343_v39 }
 0x465   : > { %2247 = vmatprep.subr.bf16.mxu0 %v4349_v41  ;;  %2288 = vmatprep.subr.bf16.mxu1 %v4353_v10 }
 0x466   : > { %2277 = vmatprep.mubr.bf16.mxu0 %v3910_v40  ;;  %2318 = vmatprep.mubr.bf16.mxu1 %v3910_v40 }
 0x468   : > { %2248 = vmatpush1.bf16.msra.mxu0 %v4358_v11  ;;  %2289 = vmatpush1.bf16.msra.mxu1 %v4363_v12 }
 0x469   : > { %2249 = vmatprep.subr.bf16.mxu0 %v4366_v13  ;;  %2290 = vmatprep.subr.bf16.mxu1 %v4370_v14 }
 0x46c   : > { %2250 = vmatpush1.bf16.msra.mxu0 %v4374_v15  ;;  %2291 = vmatpush1.bf16.msra.mxu1 %v4379_v16 }
 0x46d   : > { %2251 = vmatprep.subr.bf16.mxu0 %v4382_v17  ;;  %2292 = vmatprep.subr.bf16.mxu1 %v4386_v18 }
 0x470   : > { %2252 = vmatpush1.bf16.msra.mxu0 %v4390_v20  ;;  %2293 = vmatpush1.bf16.msra.mxu1 %v4395_v22 }
 0x471   : > { %2253 = vmatprep.subr.bf16.mxu0 %v4398_v23  ;;  %2294 = vmatprep.subr.bf16.mxu1 %v4402_v24 }
 0x474   : > { %2254 = vmatpush1.bf16.msra.mxu0 %v4406_v25  ;;  %2295 = vmatpush1.bf16.msra.mxu1 %v4411_v26 }
 0x475   : > { %2255 = vmatprep.subr.bf16.mxu0 %v4414_v27  ;;  %2296 = vmatprep.subr.bf16.mxu1 %v4418_v28 }
 0x478   : > { %2256 = vmatpush1.bf16.msra.mxu0 %v4422_v29  ;;  %2297 = vmatpush1.bf16.msra.mxu1 %v4427_v30 }
 0x479   : > { %2257 = vmatprep.subr.bf16.mxu0 %v4430_v31  ;;  %2298 = vmatprep.subr.bf16.mxu1 %v4434_v44 }
 0x47c   : > { %2258 = vmatpush1.bf16.msra.mxu0 %v4438_v45  ;;  %2299 = vmatpush1.bf16.msra.mxu1 %v4443_v46 }
 0x47d   : > { %2259 = vmatprep.subr.bf16.mxu0 %v4446_v47  ;;  %2300 = vmatprep.subr.bf16.mxu1 %v4450_v48 }
 0x480   : > { %2260 = vmatpush1.bf16.msra.mxu0 %v4454_v49  ;;  %2301 = vmatpush1.bf16.msra.mxu1 %v4459_v50 }
 0x481   : > { %2582 = vmatprep.subr.bf16.mxu0 %v4340_v42  ;;  %2623 = vmatprep.subr.bf16.mxu1 %v4346_v43 }
 0x523   : > { %v1942_v33 = vpop.f32.mrf.mxu0  ;;  %v1983_v59 = vpop.f32.mrf.mxu1 }
 0x525   : > { %v1944_v60 = vpop.f32.mrf.mxu0  ;;  %v1985_v61 = vpop.f32.mrf.mxu1 }
 0x526   : > { %v1994_v62 = vcombine.low %v1942_v33, %v1944_v60  ;;  %v1995_v63 = vcombine.low %v1983_v59, %v1985_v61 }
 0x527   : > { %v1946_v0 = vpop.f32.mrf.mxu0  ;;  %v1987_v1 = vpop.f32.mrf.mxu1 }
 0x528   : > { %v2002_v2 = vrot.slane %v1994_v62, %v4233_v19  ;;  %v2009_v3 = vrot.slane %v1995_v63, %v4233_v19 }
 0x529   : > { %v1947_v5 = vpop.f32.mrf.mxu0  ;;  %v1988_v6 = vpop.f32.mrf.mxu1 }
 0x52a   : > { %v2010_v7 = vcombine.low %v2002_v2, %v2009_v3 }
 0x52c   : > { %v2012_v8 = vadd.f32 %v2010_v7, %v1715_v4 }
 0x52e   : > { %v3479_v9 = vmul.f32 -1.442695, %v2012_v8  ;;  %v2020_v21 = vrot.slane %v2012_v8, 2  ;;  %v2031_v34 = vrot.slane %v2012_v8, 6  ;;  %v2028_v37 = vrot.slane %v2012_v8, 4 }
 0x530   : > { %3806 = vpow2.f32 %v3479_v9  ;;  %v3480_v32 = vmul.f32 -1.442695, %v2020_v21  ;;  %v3481_v35 = vmul.f32 -1.442695, %v2031_v34 }
 0x532   : > { %3808 = vpow2.f32 %v3480_v32  ;;  %v3483_v32 = vld [vmem:[%s3206_s21 + $0x28] sm:$0xff] }
 0x533   : > { %3810 = vpow2.f32 %v3481_v35 }
 0x53d   : > { %v3807_v36 = vpop.eup %3806 }
 0x53e   : > { %v2016_v51 = vadd.f32 1.0, %v3807_v36 }
 0x53f   : > { %v3809_v52 = vpop.eup %3808 }
 0x540   : > { %3812 = vrcp.f32 %v2016_v51  ;;  %v2025_v53 = vadd.f32 1.0, %v3809_v52  ;;  %v3811_v55 = vpop.eup %3810 }
 0x541   : > { %3814 = vtanh.f32 %v2028_v37  ;;  %v2036_v33 = vadd.f32 1.0, %v3811_v55 }
 0x542   : > { %3816 = vrcp.f32 %v2025_v53 }
 0x543   : > { %3818 = vrcp.f32 %v2036_v33 }
 0x54d   : > { %v3813_v56 = vpop.eup %3812 }
 0x54e   : > { %v3815_v57 = vpop.eup %3814 }
 0x54f   : > { %v3817_v58 = vpop.eup %3816  ;;  %v2040_v60 = vmul.f32 %v3815_v57, %v3813_v56 }
 0x550   : > { %v2039_v59 = vmul.f32 %v3817_v58, %v4471_v54  ;;  %v3819_v62 = vpop.eup %3818 }
 0x552   : > { %v4517_v61 = vadd.f32 %v2040_v60, %v2039_v59 }
 0x554   : > { %3820 = vtanh.f32 %v4517_v61 }
 0x561   : > { %v3821_v63 = vpop.eup %3820 }
 0x562   : > { %v2043_v0 = vmul.f32 %v3821_v63, %v3819_v62 }
 0x564   : > { %v2044_v1 = vpack.c.bf16 %v2043_v0, %v2043_v0 }
 0x566   : > { %2046 = vst [vmem:[%s2045_s16] sm:$0x1] %v2044_v1  ;;  %2278 = vmatmul.mubr.bf16.vlgmr.msra.gmra.mxu0 %v2044_v1  ;;  %2319 = vmatmul.mubr.bf16.vlgmr.msra.gmra.mxu1 %v2044_v1 }
 0x567   : > { %2583 = vmatpush1.bf16.msra.mxu0 %v4337_v38  ;;  %2624 = vmatpush1.bf16.msra.mxu1 %v4343_v39 }
 0x568   : > { %2584 = vmatprep.subr.bf16.mxu0 %v4349_v41  ;;  %2625 = vmatprep.subr.bf16.mxu1 %v4353_v10 }
 0x569   : > { %2614 = vmatprep.mubr.bf16.mxu0 %v3910_v40  ;;  %2655 = vmatprep.mubr.bf16.mxu1 %v3910_v40 }
 0x56b   : > { %2585 = vmatpush1.bf16.msra.mxu0 %v4358_v11  ;;  %2626 = vmatpush1.bf16.msra.mxu1 %v4363_v12 }
 0x56c   : > { %2586 = vmatprep.subr.bf16.mxu0 %v4366_v13  ;;  %2627 = vmatprep.subr.bf16.mxu1 %v4370_v14 }
 0x56f   : > { %2587 = vmatpush1.bf16.msra.mxu0 %v4374_v15  ;;  %2628 = vmatpush1.bf16.msra.mxu1 %v4379_v16 }
 0x570   : > { %2588 = vmatprep.subr.bf16.mxu0 %v4382_v17  ;;  %2629 = vmatprep.subr.bf16.mxu1 %v4386_v18 }
 0x573   : > { %2589 = vmatpush1.bf16.msra.mxu0 %v4390_v20  ;;  %2630 = vmatpush1.bf16.msra.mxu1 %v4395_v22 }
 0x574   : > { %2590 = vmatprep.subr.bf16.mxu0 %v4398_v23  ;;  %2631 = vmatprep.subr.bf16.mxu1 %v4402_v24 }
 0x577   : > { %2591 = vmatpush1.bf16.msra.mxu0 %v4406_v25  ;;  %2632 = vmatpush1.bf16.msra.mxu1 %v4411_v26 }
 0x578   : > { %2592 = vmatprep.subr.bf16.mxu0 %v4414_v27  ;;  %2633 = vmatprep.subr.bf16.mxu1 %v4418_v28 }
 0x57b   : > { %2593 = vmatpush1.bf16.msra.mxu0 %v4422_v29  ;;  %2634 = vmatpush1.bf16.msra.mxu1 %v4427_v30 }
 0x57c   : > { %2594 = vmatprep.subr.bf16.mxu0 %v4430_v31  ;;  %2635 = vmatprep.subr.bf16.mxu1 %v4434_v44 }
 0x57f   : > { %2595 = vmatpush1.bf16.msra.mxu0 %v4438_v45  ;;  %2636 = vmatpush1.bf16.msra.mxu1 %v4443_v46 }
 0x580   : > { %2596 = vmatprep.subr.bf16.mxu0 %v4446_v47  ;;  %2637 = vmatprep.subr.bf16.mxu1 %v4450_v48 }
 0x583   : > { %2597 = vmatpush1.bf16.msra.mxu0 %v4454_v49  ;;  %2638 = vmatpush1.bf16.msra.mxu1 %v4459_v50 }
 0x584   : > { %2919 = vmatprep.subr.bf16.mxu0 %v4340_v42  ;;  %2960 = vmatprep.subr.bf16.mxu1 %v4346_v43 }
 0x626   : > { %v2279_v54 = vpop.f32.mrf.mxu0  ;;  %v2320_v2 = vpop.f32.mrf.mxu1 }
 0x628   : > { %v2281_v3 = vpop.f32.mrf.mxu0  ;;  %v2322_v4 = vpop.f32.mrf.mxu1 }
 0x629   : > { %v2331_v5 = vcombine.low %v2279_v54, %v2281_v3  ;;  %v2332_v6 = vcombine.low %v2320_v2, %v2322_v4 }
 0x62a   : > { %v2283_v7 = vpop.f32.mrf.mxu0  ;;  %v2324_v8 = vpop.f32.mrf.mxu1 }
 0x62b   : > { %v2339_v9 = vrot.slane %v2331_v5, %v4233_v19  ;;  %v2346_v21 = vrot.slane %v2332_v6, %v4233_v19 }
 0x62c   : > { %v2284_v34 = vpop.f32.mrf.mxu0  ;;  %v2325_v35 = vpop.f32.mrf.mxu1 }
 0x62d   : > { %v2347_v42 = vcombine.low %v2339_v9, %v2346_v21 }
 0x62f   : > { %v2349_v36 = vadd.f32 %v3483_v32, %v2347_v42 }
 0x631   : > { %v3516_v43 = vmul.f32 -1.442695, %v2349_v36  ;;  %v2357_v37 = vrot.slane %v2349_v36, 2  ;;  %v2368_v52 = vrot.slane %v2349_v36, 6  ;;  %v2365_v56 = vrot.slane %v2349_v36, 4 }
 0x633   : > { %3822 = vpow2.f32 %v3516_v43  ;;  %v3517_v51 = vmul.f32 -1.442695, %v2357_v37  ;;  %v3518_v53 = vmul.f32 -1.442695, %v2368_v52 }
 0x635   : > { %3824 = vpow2.f32 %v3517_v51 }
 0x636   : > { %3826 = vpow2.f32 %v3518_v53 }
 0x640   : > { %v3823_v55 = vpop.eup %3822 }
 0x641   : > { %v2353_v57 = vadd.f32 1.0, %v3823_v55 }
 0x642   : > { %v3825_v58 = vpop.eup %3824 }
 0x643   : > { %3828 = vrcp.f32 %v2353_v57  ;;  %v2362_v33 = vadd.f32 1.0, %v3825_v58  ;;  %v3827_v59 = vpop.eup %3826 }
 0x644   : > { %3830 = vtanh.f32 %v2365_v56  ;;  %v2373_v0 = vadd.f32 1.0, %v3827_v59  ;;  %v3559_v56 = vld [vmem:[%s3220_s30 + $0x38] sm:$0xff] }
 0x645   : > { %3832 = vrcp.f32 %v2362_v33 }
 0x646   : > { %3834 = vrcp.f32 %v2373_v0 }
 0x650   : > { %v3829_v60 = vpop.eup %3828 }
 0x651   : > { %v3831_v62 = vpop.eup %3830 }
 0x652   : > { %v3833_v63 = vpop.eup %3832  ;;  %v2377_v54 = vmul.f32 %v3831_v62, %v3829_v60 }
 0x653   : > { %v2376_v1 = vmul.f32 %v3833_v63, %v4517_v61  ;;  %v3835_v3 = vpop.eup %3834 }
 0x655   : > { %v4562_v2 = vadd.f32 %v2377_v54, %v2376_v1 }
 0x657   : > { %3836 = vtanh.f32 %v4562_v2 }
 0x664   : > { %v3837_v4 = vpop.eup %3836 }
 0x665   : > { %v2380_v5 = vmul.f32 %v3837_v4, %v3835_v3 }
 0x667   : > { %v2381_v6 = vpack.c.bf16 %v2380_v5, %v2380_v5 }
 0x669   : > { %3519 = vst [vmem:[%s3209_s24 + $0x5] sm:$0x1] %v2381_v6  ;;  %2615 = vmatmul.mubr.bf16.vlgmr.msra.gmra.mxu0 %v2381_v6  ;;  %2656 = vmatmul.mubr.bf16.vlgmr.msra.gmra.mxu1 %v2381_v6 }
 0x66a   : > { %2920 = vmatpush1.bf16.msra.mxu0 %v4337_v38  ;;  %2961 = vmatpush1.bf16.msra.mxu1 %v4343_v39 }
 0x66b   : > { %2921 = vmatprep.subr.bf16.mxu0 %v4349_v41  ;;  %2962 = vmatprep.subr.bf16.mxu1 %v4353_v10 }
 0x66c   : > { %2951 = vmatprep.mubr.bf16.mxu0 %v3910_v40  ;;  %2992 = vmatprep.mubr.bf16.mxu1 %v3910_v40 }
 0x66e   : > { %2922 = vmatpush1.bf16.msra.mxu0 %v4358_v11  ;;  %2963 = vmatpush1.bf16.msra.mxu1 %v4363_v12 }
 0x66f   : > { %2923 = vmatprep.subr.bf16.mxu0 %v4366_v13  ;;  %2964 = vmatprep.subr.bf16.mxu1 %v4370_v14 }
 0x672   : > { %2924 = vmatpush1.bf16.msra.mxu0 %v4374_v15  ;;  %2965 = vmatpush1.bf16.msra.mxu1 %v4379_v16  ;;  %v3521_v16 = vld [vmem:[%s3213_s26 + $0x30] sm:$0xff] }
 0x673   : > { %2925 = vmatprep.subr.bf16.mxu0 %v4382_v17  ;;  %2966 = vmatprep.subr.bf16.mxu1 %v4386_v18 }
 0x676   : > { %2926 = vmatpush1.bf16.msra.mxu0 %v4390_v20  ;;  %2967 = vmatpush1.bf16.msra.mxu1 %v4395_v22 }
 0x677   : > { %2927 = vmatprep.subr.bf16.mxu0 %v4398_v23  ;;  %2968 = vmatprep.subr.bf16.mxu1 %v4402_v24 }
 0x67a   : > { %2928 = vmatpush1.bf16.msra.mxu0 %v4406_v25  ;;  %2969 = vmatpush1.bf16.msra.mxu1 %v4411_v26 }
 0x67b   : > { %2929 = vmatprep.subr.bf16.mxu0 %v4414_v27  ;;  %2970 = vmatprep.subr.bf16.mxu1 %v4418_v28 }
 0x67e   : > { %2930 = vmatpush1.bf16.msra.mxu0 %v4422_v29  ;;  %2971 = vmatpush1.bf16.msra.mxu1 %v4427_v30 }
 0x67f   : > { %2931 = vmatprep.subr.bf16.mxu0 %v4430_v31  ;;  %2972 = vmatprep.subr.bf16.mxu1 %v4434_v44 }
 0x682   : > { %2932 = vmatpush1.bf16.msra.mxu0 %v4438_v45  ;;  %2973 = vmatpush1.bf16.msra.mxu1 %v4443_v46 }
 0x683   : > { %2933 = vmatprep.subr.bf16.mxu0 %v4446_v47  ;;  %2974 = vmatprep.subr.bf16.mxu1 %v4450_v48 }
 0x686   : > { %2934 = vmatpush1.bf16.msra.mxu0 %v4454_v49  ;;  %2975 = vmatpush1.bf16.msra.mxu1 %v4459_v50 }
 0x729   : > { %v2616_v40 = vpop.f32.mrf.mxu0  ;;  %v2657_v38 = vpop.f32.mrf.mxu1 }
 0x72b   : > { %v2618_v39 = vpop.f32.mrf.mxu0  ;;  %v2659_v41 = vpop.f32.mrf.mxu1 }
 0x72c   : > { %v2668_v10 = vcombine.low %v2616_v40, %v2618_v39  ;;  %v2669_v11 = vcombine.low %v2657_v38, %v2659_v41 }
 0x72d   : > { %v2620_v12 = vpop.f32.mrf.mxu0  ;;  %v2661_v13 = vpop.f32.mrf.mxu1 }
 0x72e   : > { %v2676_v14 = vrot.slane %v2668_v10, %v4233_v19  ;;  %v2683_v15 = vrot.slane %v2669_v11, %v4233_v19 }
 0x72f   : > { %v2621_v17 = vpop.f32.mrf.mxu0  ;;  %v2662_v18 = vpop.f32.mrf.mxu1 }
 0x730   : > { %v2684_v20 = vcombine.low %v2676_v14, %v2683_v15 }
 0x732   : > { %v2686_v22 = vadd.f32 %v3521_v16, %v2684_v20 }
 0x734   : > { %v3554_v23 = vmul.f32 -1.442695, %v2686_v22  ;;  %v2694_v24 = vrot.slane %v2686_v22, 2  ;;  %v2705_v26 = vrot.slane %v2686_v22, 6  ;;  %v2702_v29 = vrot.slane %v2686_v22, 4 }
 0x736   : > { %3838 = vpow2.f32 %v3554_v23  ;;  %v3555_v25 = vmul.f32 -1.442695, %v2694_v24  ;;  %v3556_v27 = vmul.f32 -1.442695, %v2705_v26 }
 0x738   : > { %3840 = vpow2.f32 %v3555_v25 }
 0x739   : > { %3842 = vpow2.f32 %v3556_v27 }
 0x743   : > { %v3839_v28 = vpop.eup %3838 }
 0x744   : > { %v2690_v30 = vadd.f32 1.0, %v3839_v28 }
 0x745   : > { %v3841_v31 = vpop.eup %3840 }
 0x746   : > { %3844 = vrcp.f32 %v2690_v30  ;;  %v2699_v44 = vadd.f32 1.0, %v3841_v31  ;;  %v3843_v45 = vpop.eup %3842 }
 0x747   : > { %3846 = vtanh.f32 %v2702_v29  ;;  %v2710_v49 = vadd.f32 1.0, %v3843_v45 }
 0x748   : > { %3848 = vrcp.f32 %v2699_v44 }
 0x749   : > { %3850 = vrcp.f32 %v2710_v49 }
 0x753   : > { %v3845_v46 = vpop.eup %3844 }
 0x754   : > { %v3847_v47 = vpop.eup %3846 }
 0x755   : > { %v3849_v48 = vpop.eup %3848  ;;  %v2714_v61 = vmul.f32 %v3847_v47, %v3845_v46 }
 0x756   : > { %v2713_v50 = vmul.f32 %v3849_v48, %v4562_v2  ;;  %v3851_v8 = vpop.eup %3850 }
 0x758   : > { %v2715_v7 = vadd.f32 %v2714_v61, %v2713_v50 }
 0x75a   : > { %3852 = vtanh.f32 %v2715_v7 }
 0x767   : > { %v3853_v9 = vpop.eup %3852 }
 0x768   : > { %v2717_v21 = vmul.f32 %v3853_v9, %v3851_v8 }
 0x76a   : > { %v2718_v32 = vpack.c.bf16 %v2717_v21, %v2717_v21 }
 0x76c   : > { %3557 = vst [vmem:[%s3216_s28 + $0x6] sm:$0x1] %v2718_v32  ;;  %2952 = vmatmul.mubr.bf16.vlgmr.msra.gmra.mxu0 %v2718_v32  ;;  %2993 = vmatmul.mubr.bf16.vlgmr.msra.gmra.mxu1 %v2718_v32 }
 0x82c   : > { %v2953_v34 = vpop.f32.mrf.mxu0  ;;  %v2994_v35 = vpop.f32.mrf.mxu1 }
 0x82e   : > { %v2955_v42 = vpop.f32.mrf.mxu0  ;;  %v2996_v36 = vpop.f32.mrf.mxu1 }
 0x82f   : > { %v3005_v43 = vcombine.low %v2953_v34, %v2955_v42  ;;  %v3006_v37 = vcombine.low %v2994_v35, %v2996_v36 }
 0x830   : > { %v2957_v51 = vpop.f32.mrf.mxu0  ;;  %v2998_v52 = vpop.f32.mrf.mxu1 }
 0x831   : > { %v3013_v53 = vrot.slane %v3005_v43, %v4233_v19  ;;  %v3020_v55 = vrot.slane %v3006_v37, %v4233_v19 }
 0x832   : > { %v2958_v57 = vpop.f32.mrf.mxu0  ;;  %v2999_v58 = vpop.f32.mrf.mxu1 }
 0x833   : > { %v3021_v33 = vcombine.low %v3013_v53, %v3020_v55 }
 0x835   : > { %v3023_v59 = vadd.f32 %v3559_v56, %v3021_v33 }
 0x837   : > { %v3592_v60 = vmul.f32 -1.442695, %v3023_v59  ;;  %v3031_v62 = vrot.slane %v3023_v59, 2  ;;  %v3042_v0 = vrot.slane %v3023_v59, 6  ;;  %v3039_v2 = vrot.slane %v3023_v59, 4 }
 0x839   : > { %3854 = vpow2.f32 %v3592_v60  ;;  %v3593_v63 = vmul.f32 -1.442695, %v3031_v62  ;;  %v3594_v1 = vmul.f32 -1.442695, %v3042_v0 }
 0x83b   : > { %3856 = vpow2.f32 %v3593_v63 }
 0x83c   : > { %3858 = vpow2.f32 %v3594_v1 }
 0x846   : > { %v3855_v54 = vpop.eup %3854 }
 0x847   : > { %v3027_v3 = vadd.f32 1.0, %v3855_v54 }
 0x848   : > { %v3857_v4 = vpop.eup %3856 }
 0x849   : > { %3860 = vrcp.f32 %v3027_v3  ;;  %v3036_v19 = vadd.f32 1.0, %v3857_v4  ;;  %v3859_v5 = vpop.eup %3858 }
 0x84a   : > { %3862 = vtanh.f32 %v3039_v2  ;;  %v3047_v39 = vadd.f32 1.0, %v3859_v5 }
 0x84b   : > { %3864 = vrcp.f32 %v3036_v19 }
 0x84c   : > { %3866 = vrcp.f32 %v3047_v39 }
 0x856   : > { %v3861_v6 = vpop.eup %3860 }
 0x857   : > { %v3863_v40 = vpop.eup %3862 }
 0x858   : > { %v3865_v38 = vpop.eup %3864  ;;  %v3051_v10 = vmul.f32 %v3863_v40, %v3861_v6 }
 0x859   : > { %v3050_v41 = vmul.f32 %v3865_v38, %v2715_v7  ;;  %v3867_v12 = vpop.eup %3866 }
 0x85b   : > { %v3052_v11 = vadd.f32 %v3051_v10, %v3050_v41 }
 0x85d   : > { %3868 = vtanh.f32 %v3052_v11  ;;  %3059 = vst [vmem:[#allocation3] sm:$0x3] %v3052_v11 }
 0x86a   : > { %v3869_v13 = vpop.eup %3868 }
 0x86b   : > { %v3054_v14 = vmul.f32 %v3869_v13, %v3867_v12  ;;  %3066 = sbr.rel (!%p3967_p6) target bundleno = 2172 (0x87c), region = 97 }
 0x86d   : > { %v3055_v15 = vpack.c.bf16 %v3054_v14, %v3054_v14  ;;  %3058 = vst [vmem:[#allocation2] sm:$0x3] %v3054_v14 }
 0x86f   : > { %3595 = vst [vmem:[%s3223_s3 + $0x7] sm:$0x1] %v3055_v15 }
 0x876   : > { %v3091_v16 = vld [vmem:[%s4245_s23] sm:$0x1]  ;;  %v3093_v17 = vld [vmem:[%s4245_s23 + $0x1] sm:$0x1]  ;;  %v3095_v18 = vld [vmem:[%s4245_s23 + $0x2] sm:$0x1] }
 0x877   : > { %3092 = vst [vmem:[%s3074_s6] sm:$0x1] %v3091_v16  ;;  %3094 = vst [vmem:[%s3074_s6 + $0x2] sm:$0x1] %v3093_v17  ;;  %v3097_v20 = vld [vmem:[%s4245_s23 + $0x3] sm:$0x1] }
 0x878   : > { %3096 = vst [vmem:[%s3074_s6 + $0x4] sm:$0x1] %v3095_v18  ;;  %v3099_v22 = vld [vmem:[%s4245_s23 + $0x4] sm:$0x1]  ;;  %v3101_v23 = vld [vmem:[%s4245_s23 + $0x5] sm:$0x1] }
 0x879   : > { %3098 = vst [vmem:[%s3074_s6 + $0x6] sm:$0x1] %v3097_v20  ;;  %3100 = vst [vmem:[%s3074_s6 + $0x8] sm:$0x1] %v3099_v22  ;;  %v3103_v24 = vld [vmem:[%s4245_s23 + $0x6] sm:$0x1] }
 0x87a   : > { %3102 = vst [vmem:[%s3074_s6 + $0xa] sm:$0x1] %v3101_v23  ;;  %v3105_v25 = vld [vmem:[%s4245_s23 + $0x7] sm:$0x1]  ;;  %3104 = vst [vmem:[%s3074_s6 + $0xc] sm:$0x1] %v3103_v24 }
 0x87b   : > { %3106 = vst [vmem:[%s3074_s6 + $0xe] sm:$0x1] %v3105_v25 }
 0x87c PF: > { %s12_s13 = sadd.s32 1, %s3908_s13   ;;  %s4646_s9 = smov %s3896_s10 }
 0x87d   : > { %p9_p11 = scmp.ge.s32.totalorder %s12_s13, 4   ;;  %s4647_s10 = smov %s3972_s20 }
 0x87e   : > { %s4648_s11 = smov %s3904_s12  ;;  %s4649_s12 = smov %s4651_s14 }
 0x87f   :  { %11 = sbr.rel (!%p9_p11) target bundleno = 3 (0x3), region = 193 }

</bundles_post_ra>
